<compile_context>
chip_gen: v7x
topology: tpu7x:2x2x1
jax: 0.10.0
libtpu: 0.0.40
codegen_flags: <defaults>
</compile_context>

<pallas_src>
import jax
import jax.numpy as jnp
from jax.experimental import pallas as pl
from jax.experimental.pallas import tpu as pltpu


# ----------------------------------------------------------------------------
# Fused kernel: radial MLP + basis contraction + source-feature contraction
# for one output degree, all input degrees, one edge tile per grid step.
# In-kernel layouts (TE = edge_tile, edges always in the lane axis):
#   feat  : [Fin, TE]
#   hid/R : [32 or d3, TE]       (dense rows x lanes, MXU matmuls)
#   basis : [Q, F, P, TE]        (leading-axis indexing only)
#   src   : [I*Q, TE]
#   out   : [O, P, TE]
# ----------------------------------------------------------------------------
def _ln_rows(x, g, b, eps=1e-5):
    """LayerNorm over axis 0 (feature axis). x: [M, TE]; g, b: [M, 1]."""
    mu = jnp.mean(x, axis=0, keepdims=True)
    var = jnp.mean((x - mu) ** 2, axis=0, keepdims=True)
    return (x - mu) * jax.lax.rsqrt(var + eps) * g + b


def _make_fused_kernel(f_in_struct, mo, d_out, fin):
    p_dim = 2 * d_out + 1

    def kernel(*refs):
        feat_ref = refs[0]
        out_ref = refs[-1]
        te = out_ref.shape[-1]
        x = feat_ref[...]                                        # [Fin, TE]
        acc = [jnp.zeros((p_dim, te), jnp.float32) for _ in range(mo)]

        base = 1
        for (mi, di) in f_in_struct:
            (w1, b1, g1, be1, w2, b2, g2, be2, w3, b3,
             bas_ref, src_ref) = refs[base:base + 12]
            base += 12
            q_dim = 2 * di + 1
            nf = 2 * min(di, d_out) + 1

            # ---- RadialFunc MLP (fused: R never leaves VMEM/vregs) ----
            if fin == 1:
                hid = w1[...] * x                 # K=1 contraction -> VPU outer product
            else:
                hid = jnp.dot(w1[...], x, preferred_element_type=jnp.float32)
            hid = jnp.maximum(_ln_rows(hid + b1[...], g1[...], be1[...]), 0.0)
            hid = jnp.dot(w2[...], hid, preferred_element_type=jnp.float32) + b2[...]
            hid = jnp.maximum(_ln_rows(hid, g2[...], be2[...]), 0.0)
            rad = jnp.dot(w3[...], hid, preferred_element_type=jnp.float32) + b3[...]
            # rad: [mo*mi*nf, TE]; row = o*(mi*nf) + i*nf + f   (PyTorch view order)

            bas = bas_ref[...]                                   # [Q, F, P, TE]
            src = src_ref[...]                                   # [mi*Q, TE]

            # ---- contraction, direct accumulation (no [O,P,F,TE] temporary) ----
            for i in range(mi):
                for f in range(nf):
                    # t_if[p, e] = sum_q src[i, q, e] * basis[p, q, f, e]
                    t_if = src[i * q_dim][None, :] * bas[0, f]   # [P, TE]
                    for q in range(1, q_dim):
                        t_if = t_if + src[i * q_dim + q][None, :] * bas[q, f]
                    # acc[o][p, e] += R[o, i, f, e] * t_if[p, e]
                    for o in range(mo):
                        r_row = rad[o * mi * nf + i * nf + f][None, :]
                        acc[o] = acc[o] + r_row * t_if

        for o in range(mo):
            out_ref[o] = acc[o]

    return kernel


# ----------------------------------------------------------------------------
# Forward pass (x_ij=None path of GConvSE3Partial).
# ----------------------------------------------------------------------------
def gconv_se3_partial_forward(h, src_idx, r, basis, params, f_in, f_out,
                              w=None, edge_tile=1024):
    """h: {str(d): [N, mult, 2d+1]}, src_idx: [E], r: [E,1],
    basis: {'di,do': [E,1,2do+1,1,2di+1,F]}, params: {'(di,do)': MLP params}.
    Returns {str(do): [E, mult_out, 2do+1]}.
    edge_tile: multiple of 128; 512-1024 recommended (keep >=4 tiles for v7x)."""
    # TODO(synk): x_ij='cat'/'add' relative-position branches not implemented.
    feat = r if w is None else jnp.concatenate([w, r], axis=-1)       # [E, Fin]
    n_e, fin = feat.shape
    e_pad = pl.cdiv(n_e, edge_tile) * edge_tile
    pad = e_pad - n_e

    feat_t = jnp.pad(feat.astype(jnp.float32).T, ((0, 0), (0, pad)))  # [Fin, E_pad]

    # Source-node features per input degree: gather via a node-sized
    # pre-transpose so the result is already edges-last (no edge-sized
    # transpose in the hot XLA path).
    # TODO(synk): the per-edge gather itself (DGL edges.src) stays in XLA; it
    # is not expressible as a rectangular BlockSpec.
    src_flat = {}
    for (mi, di) in f_in:
        q_dim = 2 * di + 1
        h_t = jnp.transpose(h[str(di)].astype(jnp.float32), (1, 2, 0))  # [mi, Q, N]
        s = h_t[:, :, src_idx].reshape(mi * q_dim, n_e)                 # [mi*Q, E]
        src_flat[di] = jnp.pad(s, ((0, 0), (0, pad)))

    # Basis pre-laid-out once per graph as [Q, F, P, E_pad] (edges in lanes).
    basis_t = {}
    for (mi, di) in f_in:
        for (mo, do) in f_out:
            nf = 2 * min(di, do) + 1
            p_dim = 2 * do + 1
            q_dim = 2 * di + 1
            bb = basis[f'{di},{do}'].astype(jnp.float32)
            bb = bb.reshape(n_e, p_dim, q_dim, nf)                      # [E, P, Q, F]
            bb = jnp.transpose(bb, (2, 3, 1, 0))                        # [Q, F, P, E]
            basis_t[(di, do)] = jnp.pad(bb, ((0, 0), (0, 0), (0, 0), (0, pad)))

    def _col(v):
        return v.reshape(-1, 1).astype(jnp.float32)

    out = {}
    for (mo, do) in f_out:
        p_dim = 2 * do + 1
        operands = [feat_t]
        in_specs = [pl.BlockSpec((fin, edge_tile), lambda k: (0, k))]
        flops = 0
        for (mi, di) in f_in:
            q_dim = 2 * di + 1
            nf = 2 * min(di, do) + 1
            p = params[f'({di},{do})']
            ws = [p['w1'].astype(jnp.float32), _col(p['b1']), _col(p['g1']),
                  _col(p['be1']), p['w2'].astype(jnp.float32), _col(p['b2']),
                  _col(p['g2']), _col(p['be2']), p['w3'].astype(jnp.float32),
                  _col(p['b3'])]
            operands += ws
            in_specs += [pl.BlockSpec(a.shape, lambda k: (0, 0)) for a in ws]
            operands.append(basis_t[(di, do)])
            in_specs.append(pl.BlockSpec((q_dim, nf, p_dim, edge_tile),
                                         lambda k: (0, 0, 0, k)))
            operands.append(src_flat[di])
            in_specs.append(pl.BlockSpec((mi * q_dim, edge_tile),
                                         lambda k: (0, k)))
            d3 = mo * mi * nf
            flops += 2 * e_pad * (fin * 32 + 32 * 32 + 32 * d3
                                  + mi * q_dim * nf * p_dim
                                  + mo * mi * nf * p_dim)
        bytes_accessed = (sum(int(a.size) * 4 for a in operands)
                          + mo * p_dim * e_pad * 4)
        transcendentals = 2 * len(f_in) * e_pad                # rsqrt in the LayerNorms

        o_t = pl.pallas_call(
            _make_fused_kernel(tuple(f_in), mo, do, fin),
            out_shape=jax.ShapeDtypeStruct((mo, p_dim, e_pad), jnp.float32),
            grid_spec=pltpu.PrefetchScalarGridSpec(
                num_scalar_prefetch=0,
                grid=(e_pad // edge_tile,),
                in_specs=in_specs,
                out_specs=pl.BlockSpec((mo, p_dim, edge_tile),
                                       lambda k: (0, 0, k)),
            ),
            compiler_params=pltpu.CompilerParams(
                dimension_semantics=("parallel",),
                vmem_limit_bytes=32 * 1024 * 1024,
            ),
            cost_estimate=pl.CostEstimate(flops=flops,
                                          transcendentals=transcendentals,
                                          bytes_accessed=bytes_accessed),
        )(*operands)
        # TODO(synk): drop this edge-sized transpose if the consumer (attention
        # value embedding) can take edges-last [mo, 2do+1, E] directly.
        out[str(do)] = jnp.transpose(o_t[:, :, :n_e], (2, 0, 1))        # [E, mo, P]
    return out


# ----------------------------------------------------------------------------
# Plain-JAX reference (mirrors the PyTorch module op-for-op).
# ----------------------------------------------------------------------------
def _layernorm_ref(x, g, b, eps=1e-5):
    mu = jnp.mean(x, axis=-1, keepdims=True)
    var = jnp.mean((x - mu) ** 2, axis=-1, keepdims=True)
    return (x - mu) * jax.lax.rsqrt(var + eps) * g + b


def reference_forward(h, src_idx, r, basis, params, f_in, f_out, w=None):
    hp = jax.lax.Precision.HIGHEST
    feat = r if w is None else jnp.concatenate([w, r], axis=-1)
    n_e = feat.shape[0]
    kernels = {}
    for (mi, di) in f_in:
        for (mo, do) in f_out:
            nf = 2 * min(di, do) + 1
            p = params[f'({di},{do})']
            y = jnp.dot(feat, p['w1'].T, precision=hp) + p['b1']
            y = jnp.maximum(_layernorm_ref(y, p['g1'], p['be1']), 0.0)
            y = jnp.dot(y, p['w2'].T, precision=hp) + p['b2']
            y = jnp.maximum(_layernorm_ref(y, p['g2'], p['be2']), 0.0)
            y = jnp.dot(y, p['w3'].T, precision=hp) + p['b3']
            rr = y.reshape(n_e, mo, 1, mi, 1, nf)
            kk = jnp.sum(rr * basis[f'{di},{do}'], axis=-1)   # [E, mo, P, mi, Q]
            kernels[(di, do)] = kk.reshape(n_e, mo * (2 * do + 1), mi * (2 * di + 1))
    out = {}
    for (mo, do) in f_out:
        msg = 0.0
        for (mi, di) in f_in:
            src = h[str(di)][src_idx].reshape(n_e, mi * (2 * di + 1), 1)
            msg = msg + jnp.matmul(kernels[(di, do)], src, precision=hp)
        out[str(do)] = msg.reshape(n_e, mo, 2 * do + 1)
    return out


if __name__ == "__main__":
    key = jax.random.PRNGKey(0)

    # Small demo: 32 nodes, fully-connected graph (incl. self loops) -> 1024
    # edges; fibers with 4 channels of degree 0 and 4 of degree 1; edge_dim=0.
    # edge_tile=512 -> 2 parallel grid steps (exercises k > 0 index maps).
    n_nodes = 32
    f_in = [(4, 0), (4, 1)]
    f_out = [(4, 0), (4, 1)]
    mid = 32

    src_idx = jnp.tile(jnp.arange(n_nodes, dtype=jnp.int32), n_nodes)   # [1024]
    n_edges = int(src_idx.shape[0])

    keys = iter(jax.random.split(key, 64))
    h = {str(d): jax.random.normal(next(keys), (n_nodes, m, 2 * d + 1), jnp.float32)
         for (m, d) in f_in}
    r = jnp.abs(jax.random.normal(next(keys), (n_edges, 1), jnp.float32)) + 0.1

    basis, params = {}, {}
    for (mi, di) in f_in:
        for (mo, do) in f_out:
            nf = 2 * min(di, do) + 1
            basis[f'{di},{do}'] = jax.random.normal(
                next(keys), (n_edges, 1, 2 * do + 1, 1, 2 * di + 1, nf), jnp.float32)
            d3 = nf * mi * mo
            params[f'({di},{do})'] = {
                'w1': jax.random.normal(next(keys), (mid, 1), jnp.float32),
                'b1': 0.1 * jax.random.normal(next(keys), (mid,), jnp.float32),
                'g1': 1.0 + 0.1 * jax.random.normal(next(keys), (mid,), jnp.float32),
                'be1': 0.1 * jax.random.normal(next(keys), (mid,), jnp.float32),
                'w2': jax.random.normal(next(keys), (mid, mid), jnp.float32) / jnp.sqrt(mid),
                'b2': 0.1 * jax.random.normal(next(keys), (mid,), jnp.float32),
                'g2': 1.0 + 0.1 * jax.random.normal(next(keys), (mid,), jnp.float32),
                'be2': 0.1 * jax.random.normal(next(keys), (mid,), jnp.float32),
                'w3': jax.random.normal(next(keys), (d3, mid), jnp.float32) / jnp.sqrt(mid),
                'b3': 0.1 * jax.random.normal(next(keys), (d3,), jnp.float32),
            }

    out = gconv_se3_partial_forward(h, src_idx, r, basis, params, f_in, f_out,
                                    edge_tile=512)
    out = jax.block_until_ready(out)

    ref = reference_forward(h, src_idx, r, basis, params, f_in, f_out)
    for (mo, do) in f_out:
        o, rf = out[str(do)], ref[str(do)]
        assert o.shape == (n_edges, mo, 2 * do + 1), o.shape
        err = float(jnp.max(jnp.abs(o - rf)))
        assert jnp.allclose(o, rf, atol=5e-4, rtol=5e-4), f"deg {do} max err {err}"

    print("KERNEL_OK")
</pallas_src>

<mosaic_0001>
module attributes {stable_mosaic.version = 11 : i64} {
  func.func @kernel(%arg0: i32, %arg1: memref<1x512xf32, #tpu.memory_space<vmem>>, %arg2: memref<32x1xf32, #tpu.memory_space<vmem>>, %arg3: memref<32x1xf32, #tpu.memory_space<vmem>>, %arg4: memref<32x1xf32, #tpu.memory_space<vmem>>, %arg5: memref<32x1xf32, #tpu.memory_space<vmem>>, %arg6: memref<32x32xf32, #tpu.memory_space<vmem>>, %arg7: memref<32x1xf32, #tpu.memory_space<vmem>>, %arg8: memref<32x1xf32, #tpu.memory_space<vmem>>, %arg9: memref<32x1xf32, #tpu.memory_space<vmem>>, %arg10: memref<16x32xf32, #tpu.memory_space<vmem>>, %arg11: memref<16x1xf32, #tpu.memory_space<vmem>>, %arg12: memref<1x1x1x512xf32, #tpu.memory_space<vmem>>, %arg13: memref<4x512xf32, #tpu.memory_space<vmem>>, %arg14: memref<32x1xf32, #tpu.memory_space<vmem>>, %arg15: memref<32x1xf32, #tpu.memory_space<vmem>>, %arg16: memref<32x1xf32, #tpu.memory_space<vmem>>, %arg17: memref<32x1xf32, #tpu.memory_space<vmem>>, %arg18: memref<32x32xf32, #tpu.memory_space<vmem>>, %arg19: memref<32x1xf32, #tpu.memory_space<vmem>>, %arg20: memref<32x1xf32, #tpu.memory_space<vmem>>, %arg21: memref<32x1xf32, #tpu.memory_space<vmem>>, %arg22: memref<16x32xf32, #tpu.memory_space<vmem>>, %arg23: memref<16x1xf32, #tpu.memory_space<vmem>>, %arg24: memref<3x1x1x512xf32, #tpu.memory_space<vmem>>, %arg25: memref<12x512xf32, #tpu.memory_space<vmem>>, %arg26: memref<4x1x512xf32, #tpu.memory_space<vmem>>) attributes {dimension_semantics = [#tpu.dimension_semantics<parallel>], iteration_bounds = array<i64: 2>, scalar_prefetch = 0 : i64, scratch_operands = 0 : i64, tpu.core_type = #tpu.core_type<tc>, window_params = [{transform_indices = @transform_0, window_bounds = array<i64: 1, 512>}, {pipeline_mode = #tpu.pipeline_mode<synchronous>, transform_indices = @transform_1, window_bounds = array<i64: 32, 1>}, {pipeline_mode = #tpu.pipeline_mode<synchronous>, transform_indices = @transform_2, window_bounds = array<i64: 32, 1>}, {pipeline_mode = #tpu.pipeline_mode<synchronous>, transform_indices = @transform_3, window_bounds = array<i64: 32, 1>}, {pipeline_mode = #tpu.pipeline_mode<synchronous>, transform_indices = @transform_4, window_bounds = array<i64: 32, 1>}, {pipeline_mode = #tpu.pipeline_mode<synchronous>, transform_indices = @transform_5, window_bounds = array<i64: 32, 32>}, {pipeline_mode = #tpu.pipeline_mode<synchronous>, transform_indices = @transform_6, window_bounds = array<i64: 32, 1>}, {pipeline_mode = #tpu.pipeline_mode<synchronous>, transform_indices = @transform_7, window_bounds = array<i64: 32, 1>}, {pipeline_mode = #tpu.pipeline_mode<synchronous>, transform_indices = @transform_8, window_bounds = array<i64: 32, 1>}, {pipeline_mode = #tpu.pipeline_mode<synchronous>, transform_indices = @transform_9, window_bounds = array<i64: 16, 32>}, {pipeline_mode = #tpu.pipeline_mode<synchronous>, transform_indices = @transform_10, window_bounds = array<i64: 16, 1>}, {transform_indices = @transform_11, window_bounds = array<i64: 1, 1, 1, 512>}, {transform_indices = @transform_12, window_bounds = array<i64: 4, 512>}, {pipeline_mode = #tpu.pipeline_mode<synchronous>, transform_indices = @transform_13, window_bounds = array<i64: 32, 1>}, {pipeline_mode = #tpu.pipeline_mode<synchronous>, transform_indices = @transform_14, window_bounds = array<i64: 32, 1>}, {pipeline_mode = #tpu.pipeline_mode<synchronous>, transform_indices = @transform_15, window_bounds = array<i64: 32, 1>}, {pipeline_mode = #tpu.pipeline_mode<synchronous>, transform_indices = @transform_16, window_bounds = array<i64: 32, 1>}, {pipeline_mode = #tpu.pipeline_mode<synchronous>, transform_indices = @transform_17, window_bounds = array<i64: 32, 32>}, {pipeline_mode = #tpu.pipeline_mode<synchronous>, transform_indices = @transform_18, window_bounds = array<i64: 32, 1>}, {pipeline_mode = #tpu.pipeline_mode<synchronous>, transform_indices = @transform_19, window_bounds = array<i64: 32, 1>}, {pipeline_mode = #tpu.pipeline_mode<synchronous>, transform_indices = @transform_20, window_bounds = array<i64: 32, 1>}, {pipeline_mode = #tpu.pipeline_mode<synchronous>, transform_indices = @transform_21, window_bounds = array<i64: 16, 32>}, {pipeline_mode = #tpu.pipeline_mode<synchronous>, transform_indices = @transform_22, window_bounds = array<i64: 16, 1>}, {transform_indices = @transform_23, window_bounds = array<i64: 3, 1, 1, 512>}, {transform_indices = @transform_24, window_bounds = array<i64: 12, 512>}, {transform_indices = @transform_25, window_bounds = array<i64: 4, 1, 512>}]} {
    %c0 = arith.constant 0 : index
    %c0_0 = arith.constant 0 : index
    %0 = vector.load %arg1[%c0, %c0_0] : memref<1x512xf32, #tpu.memory_space<vmem>>, vector<1x512xf32>
    %cst = arith.constant 0.000000e+00 : f32
    %1 = vector.broadcast %cst : f32 to vector<1x512xf32>
    %cst_1 = arith.constant 0.000000e+00 : f32
    %2 = vector.broadcast %cst_1 : f32 to vector<1x512xf32>
    %cst_2 = arith.constant 0.000000e+00 : f32
    %3 = vector.broadcast %cst_2 : f32 to vector<1x512xf32>
    %cst_3 = arith.constant 0.000000e+00 : f32
    %4 = vector.broadcast %cst_3 : f32 to vector<1x512xf32>
    %c0_4 = arith.constant 0 : index
    %c0_5 = arith.constant 0 : index
    %5 = vector.load %arg2[%c0_4, %c0_5] : memref<32x1xf32, #tpu.memory_space<vmem>>, vector<32x1xf32>
    %6 = vector.broadcast %5 : vector<32x1xf32> to vector<32x512xf32>
    %7 = vector.broadcast %0 : vector<1x512xf32> to vector<32x512xf32>
    %8 = arith.mulf %6, %7 : vector<32x512xf32>
    %c0_6 = arith.constant 0 : index
    %c0_7 = arith.constant 0 : index
    %9 = vector.load %arg3[%c0_6, %c0_7] : memref<32x1xf32, #tpu.memory_space<vmem>>, vector<32x1xf32>
    %10 = vector.broadcast %9 : vector<32x1xf32> to vector<32x512xf32>
    %11 = arith.addf %8, %10 : vector<32x512xf32>
    %c0_8 = arith.constant 0 : index
    %c0_9 = arith.constant 0 : index
    %12 = vector.load %arg4[%c0_8, %c0_9] : memref<32x1xf32, #tpu.memory_space<vmem>>, vector<32x1xf32>
    %c0_10 = arith.constant 0 : index
    %c0_11 = arith.constant 0 : index
    %13 = vector.load %arg5[%c0_10, %c0_11] : memref<32x1xf32, #tpu.memory_space<vmem>>, vector<32x1xf32>
    %cst_12 = arith.constant dense<0.000000e+00> : vector<512xf32>
    %14 = vector.multi_reduction <add>, %11, %cst_12 [0] : vector<32x512xf32> to vector<512xf32>
    %15 = vector.shape_cast %14 : vector<512xf32> to vector<1x512xf32>
    %cst_13 = arith.constant 3.200000e+01 : f32
    %16 = vector.broadcast %cst_13 : f32 to vector<1x512xf32>
    %17 = arith.divf %15, %16 : vector<1x512xf32>
    %18 = vector.broadcast %17 : vector<1x512xf32> to vector<32x512xf32>
    %19 = arith.subf %11, %18 : vector<32x512xf32>
    %20 = arith.mulf %19, %19 : vector<32x512xf32>
    %cst_14 = arith.constant dense<0.000000e+00> : vector<512xf32>
    %21 = vector.multi_reduction <add>, %20, %cst_14 [0] : vector<32x512xf32> to vector<512xf32>
    %22 = vector.shape_cast %21 : vector<512xf32> to vector<1x512xf32>
    %cst_15 = arith.constant 3.200000e+01 : f32
    %23 = vector.broadcast %cst_15 : f32 to vector<1x512xf32>
    %24 = arith.divf %22, %23 : vector<1x512xf32>
    %25 = vector.broadcast %17 : vector<1x512xf32> to vector<32x512xf32>
    %26 = arith.subf %11, %25 : vector<32x512xf32>
    %cst_16 = arith.constant 9.99999974E-6 : f32
    %27 = vector.broadcast %cst_16 : f32 to vector<1x512xf32>
    %28 = arith.addf %24, %27 : vector<1x512xf32>
    %29 = math.rsqrt %28 : vector<1x512xf32>
    %30 = vector.broadcast %29 : vector<1x512xf32> to vector<32x512xf32>
    %31 = arith.mulf %26, %30 : vector<32x512xf32>
    %32 = vector.broadcast %12 : vector<32x1xf32> to vector<32x512xf32>
    %33 = arith.mulf %31, %32 : vector<32x512xf32>
    %34 = vector.broadcast %13 : vector<32x1xf32> to vector<32x512xf32>
    %35 = arith.addf %33, %34 : vector<32x512xf32>
    %cst_17 = arith.constant 0.000000e+00 : f32
    %36 = vector.broadcast %cst_17 : f32 to vector<32x512xf32>
    %37 = arith.maximumf %35, %36 : vector<32x512xf32>
    %c0_18 = arith.constant 0 : index
    %c0_19 = arith.constant 0 : index
    %38 = vector.load %arg6[%c0_18, %c0_19] : memref<32x32xf32, #tpu.memory_space<vmem>>, vector<32x32xf32>
    %cst_20 = arith.constant dense<0.000000e+00> : vector<32x512xf32>
    %39 = tpu.matmul %38, %37, %cst_20 {dimension_numbers = #tpu.dot_dimension_numbers<[1], [0], [0], [1], [0, 0, 1, 1], [], []>} : vector<32x32xf32>, vector<32x512xf32>, vector<32x512xf32> -> vector<32x512xf32>
    %c0_21 = arith.constant 0 : index
    %c0_22 = arith.constant 0 : index
    %40 = vector.load %arg7[%c0_21, %c0_22] : memref<32x1xf32, #tpu.memory_space<vmem>>, vector<32x1xf32>
    %41 = vector.broadcast %40 : vector<32x1xf32> to vector<32x512xf32>
    %42 = arith.addf %39, %41 : vector<32x512xf32>
    %c0_23 = arith.constant 0 : index
    %c0_24 = arith.constant 0 : index
    %43 = vector.load %arg8[%c0_23, %c0_24] : memref<32x1xf32, #tpu.memory_space<vmem>>, vector<32x1xf32>
    %c0_25 = arith.constant 0 : index
    %c0_26 = arith.constant 0 : index
    %44 = vector.load %arg9[%c0_25, %c0_26] : memref<32x1xf32, #tpu.memory_space<vmem>>, vector<32x1xf32>
    %cst_27 = arith.constant dense<0.000000e+00> : vector<512xf32>
    %45 = vector.multi_reduction <add>, %42, %cst_27 [0] : vector<32x512xf32> to vector<512xf32>
    %46 = vector.shape_cast %45 : vector<512xf32> to vector<1x512xf32>
    %cst_28 = arith.constant 3.200000e+01 : f32
    %47 = vector.broadcast %cst_28 : f32 to vector<1x512xf32>
    %48 = arith.divf %46, %47 : vector<1x512xf32>
    %49 = vector.broadcast %48 : vector<1x512xf32> to vector<32x512xf32>
    %50 = arith.subf %42, %49 : vector<32x512xf32>
    %51 = arith.mulf %50, %50 : vector<32x512xf32>
    %cst_29 = arith.constant dense<0.000000e+00> : vector<512xf32>
    %52 = vector.multi_reduction <add>, %51, %cst_29 [0] : vector<32x512xf32> to vector<512xf32>
    %53 = vector.shape_cast %52 : vector<512xf32> to vector<1x512xf32>
    %cst_30 = arith.constant 3.200000e+01 : f32
    %54 = vector.broadcast %cst_30 : f32 to vector<1x512xf32>
    %55 = arith.divf %53, %54 : vector<1x512xf32>
    %56 = vector.broadcast %48 : vector<1x512xf32> to vector<32x512xf32>
    %57 = arith.subf %42, %56 : vector<32x512xf32>
    %cst_31 = arith.constant 9.99999974E-6 : f32
    %58 = vector.broadcast %cst_31 : f32 to vector<1x512xf32>
    %59 = arith.addf %55, %58 : vector<1x512xf32>
    %60 = math.rsqrt %59 : vector<1x512xf32>
    %61 = vector.broadcast %60 : vector<1x512xf32> to vector<32x512xf32>
    %62 = arith.mulf %57, %61 : vector<32x512xf32>
    %63 = vector.broadcast %43 : vector<32x1xf32> to vector<32x512xf32>
    %64 = arith.mulf %62, %63 : vector<32x512xf32>
    %65 = vector.broadcast %44 : vector<32x1xf32> to vector<32x512xf32>
    %66 = arith.addf %64, %65 : vector<32x512xf32>
    %cst_32 = arith.constant 0.000000e+00 : f32
    %67 = vector.broadcast %cst_32 : f32 to vector<32x512xf32>
    %68 = arith.maximumf %66, %67 : vector<32x512xf32>
    %c0_33 = arith.constant 0 : index
    %c0_34 = arith.constant 0 : index
    %69 = vector.load %arg10[%c0_33, %c0_34] : memref<16x32xf32, #tpu.memory_space<vmem>>, vector<16x32xf32>
    %cst_35 = arith.constant dense<0.000000e+00> : vector<16x512xf32>
    %70 = tpu.matmul %69, %68, %cst_35 {dimension_numbers = #tpu.dot_dimension_numbers<[1], [0], [0], [1], [0, 0, 1, 1], [], []>} : vector<16x32xf32>, vector<32x512xf32>, vector<16x512xf32> -> vector<16x512xf32>
    %c0_36 = arith.constant 0 : index
    %c0_37 = arith.constant 0 : index
    %71 = vector.load %arg11[%c0_36, %c0_37] : memref<16x1xf32, #tpu.memory_space<vmem>>, vector<16x1xf32>
    %72 = vector.broadcast %71 : vector<16x1xf32> to vector<16x512xf32>
    %73 = arith.addf %70, %72 : vector<16x512xf32>
    %c0_38 = arith.constant 0 : index
    %c0_39 = arith.constant 0 : index
    %c0_40 = arith.constant 0 : index
    %c0_41 = arith.constant 0 : index
    %74 = vector.load %arg12[%c0_38, %c0_39, %c0_40, %c0_41] : memref<1x1x1x512xf32, #tpu.memory_space<vmem>>, vector<1x1x1x512xf32>
    %c0_42 = arith.constant 0 : index
    %c0_43 = arith.constant 0 : index
    %75 = vector.load %arg13[%c0_42, %c0_43] : memref<4x512xf32, #tpu.memory_space<vmem>>, vector<4x512xf32>
    %76 = vector.extract_strided_slice %75 {offsets = [0, 0], sizes = [1, 512], strides = [1, 1]} : vector<4x512xf32> to vector<1x512xf32>
    %77 = vector.shape_cast %76 : vector<1x512xf32> to vector<512xf32>
    %78 = vector.shape_cast %77 : vector<512xf32> to vector<1x512xf32>
    %79 = vector.shape_cast %74 : vector<1x1x1x512xf32> to vector<1x512xf32>
    %80 = arith.mulf %78, %79 : vector<1x512xf32>
    %81 = vector.extract_strided_slice %73 {offsets = [0, 0], sizes = [1, 512], strides = [1, 1]} : vector<16x512xf32> to vector<1x512xf32>
    %82 = vector.shape_cast %81 : vector<1x512xf32> to vector<512xf32>
    %83 = vector.shape_cast %82 : vector<512xf32> to vector<1x512xf32>
    %84 = arith.mulf %83, %80 : vector<1x512xf32>
    %85 = arith.addf %1, %84 : vector<1x512xf32>
    %86 = vector.extract_strided_slice %73 {offsets = [4, 0], sizes = [1, 512], strides = [1, 1]} : vector<16x512xf32> to vector<1x512xf32>
    %87 = vector.shape_cast %86 : vector<1x512xf32> to vector<512xf32>
    %88 = vector.shape_cast %87 : vector<512xf32> to vector<1x512xf32>
    %89 = arith.mulf %88, %80 : vector<1x512xf32>
    %90 = arith.addf %2, %89 : vector<1x512xf32>
    %91 = vector.extract_strided_slice %73 {offsets = [8, 0], sizes = [1, 512], strides = [1, 1]} : vector<16x512xf32> to vector<1x512xf32>
    %92 = vector.shape_cast %91 : vector<1x512xf32> to vector<512xf32>
    %93 = vector.shape_cast %92 : vector<512xf32> to vector<1x512xf32>
    %94 = arith.mulf %93, %80 : vector<1x512xf32>
    %95 = arith.addf %3, %94 : vector<1x512xf32>
    %96 = vector.extract_strided_slice %73 {offsets = [12, 0], sizes = [1, 512], strides = [1, 1]} : vector<16x512xf32> to vector<1x512xf32>
    %97 = vector.shape_cast %96 : vector<1x512xf32> to vector<512xf32>
    %98 = vector.shape_cast %97 : vector<512xf32> to vector<1x512xf32>
    %99 = arith.mulf %98, %80 : vector<1x512xf32>
    %100 = arith.addf %4, %99 : vector<1x512xf32>
    %101 = vector.extract_strided_slice %75 {offsets = [1, 0], sizes = [1, 512], strides = [1, 1]} : vector<4x512xf32> to vector<1x512xf32>
    %102 = vector.shape_cast %101 : vector<1x512xf32> to vector<512xf32>
    %103 = vector.shape_cast %102 : vector<512xf32> to vector<1x512xf32>
    %104 = vector.shape_cast %74 : vector<1x1x1x512xf32> to vector<1x512xf32>
    %105 = arith.mulf %103, %104 : vector<1x512xf32>
    %106 = vector.extract_strided_slice %73 {offsets = [1, 0], sizes = [1, 512], strides = [1, 1]} : vector<16x512xf32> to vector<1x512xf32>
    %107 = vector.shape_cast %106 : vector<1x512xf32> to vector<512xf32>
    %108 = vector.shape_cast %107 : vector<512xf32> to vector<1x512xf32>
    %109 = arith.mulf %108, %105 : vector<1x512xf32>
    %110 = arith.addf %85, %109 : vector<1x512xf32>
    %111 = vector.extract_strided_slice %73 {offsets = [5, 0], sizes = [1, 512], strides = [1, 1]} : vector<16x512xf32> to vector<1x512xf32>
    %112 = vector.shape_cast %111 : vector<1x512xf32> to vector<512xf32>
    %113 = vector.shape_cast %112 : vector<512xf32> to vector<1x512xf32>
    %114 = arith.mulf %113, %105 : vector<1x512xf32>
    %115 = arith.addf %90, %114 : vector<1x512xf32>
    %116 = vector.extract_strided_slice %73 {offsets = [9, 0], sizes = [1, 512], strides = [1, 1]} : vector<16x512xf32> to vector<1x512xf32>
    %117 = vector.shape_cast %116 : vector<1x512xf32> to vector<512xf32>
    %118 = vector.shape_cast %117 : vector<512xf32> to vector<1x512xf32>
    %119 = arith.mulf %118, %105 : vector<1x512xf32>
    %120 = arith.addf %95, %119 : vector<1x512xf32>
    %121 = vector.extract_strided_slice %73 {offsets = [13, 0], sizes = [1, 512], strides = [1, 1]} : vector<16x512xf32> to vector<1x512xf32>
    %122 = vector.shape_cast %121 : vector<1x512xf32> to vector<512xf32>
    %123 = vector.shape_cast %122 : vector<512xf32> to vector<1x512xf32>
    %124 = arith.mulf %123, %105 : vector<1x512xf32>
    %125 = arith.addf %100, %124 : vector<1x512xf32>
    %126 = vector.extract_strided_slice %75 {offsets = [2, 0], sizes = [1, 512], strides = [1, 1]} : vector<4x512xf32> to vector<1x512xf32>
    %127 = vector.shape_cast %126 : vector<1x512xf32> to vector<512xf32>
    %128 = vector.shape_cast %127 : vector<512xf32> to vector<1x512xf32>
    %129 = vector.shape_cast %74 : vector<1x1x1x512xf32> to vector<1x512xf32>
    %130 = arith.mulf %128, %129 : vector<1x512xf32>
    %131 = vector.extract_strided_slice %73 {offsets = [2, 0], sizes = [1, 512], strides = [1, 1]} : vector<16x512xf32> to vector<1x512xf32>
    %132 = vector.shape_cast %131 : vector<1x512xf32> to vector<512xf32>
    %133 = vector.shape_cast %132 : vector<512xf32> to vector<1x512xf32>
    %134 = arith.mulf %133, %130 : vector<1x512xf32>
    %135 = arith.addf %110, %134 : vector<1x512xf32>
    %136 = vector.extract_strided_slice %73 {offsets = [6, 0], sizes = [1, 512], strides = [1, 1]} : vector<16x512xf32> to vector<1x512xf32>
    %137 = vector.shape_cast %136 : vector<1x512xf32> to vector<512xf32>
    %138 = vector.shape_cast %137 : vector<512xf32> to vector<1x512xf32>
    %139 = arith.mulf %138, %130 : vector<1x512xf32>
    %140 = arith.addf %115, %139 : vector<1x512xf32>
    %141 = vector.extract_strided_slice %73 {offsets = [10, 0], sizes = [1, 512], strides = [1, 1]} : vector<16x512xf32> to vector<1x512xf32>
    %142 = vector.shape_cast %141 : vector<1x512xf32> to vector<512xf32>
    %143 = vector.shape_cast %142 : vector<512xf32> to vector<1x512xf32>
    %144 = arith.mulf %143, %130 : vector<1x512xf32>
    %145 = arith.addf %120, %144 : vector<1x512xf32>
    %146 = vector.extract_strided_slice %73 {offsets = [14, 0], sizes = [1, 512], strides = [1, 1]} : vector<16x512xf32> to vector<1x512xf32>
    %147 = vector.shape_cast %146 : vector<1x512xf32> to vector<512xf32>
    %148 = vector.shape_cast %147 : vector<512xf32> to vector<1x512xf32>
    %149 = arith.mulf %148, %130 : vector<1x512xf32>
    %150 = arith.addf %125, %149 : vector<1x512xf32>
    %151 = vector.extract_strided_slice %75 {offsets = [3, 0], sizes = [1, 512], strides = [1, 1]} : vector<4x512xf32> to vector<1x512xf32>
    %152 = vector.shape_cast %151 : vector<1x512xf32> to vector<512xf32>
    %153 = vector.shape_cast %152 : vector<512xf32> to vector<1x512xf32>
    %154 = vector.shape_cast %74 : vector<1x1x1x512xf32> to vector<1x512xf32>
    %155 = arith.mulf %153, %154 : vector<1x512xf32>
    %156 = vector.extract_strided_slice %73 {offsets = [3, 0], sizes = [1, 512], strides = [1, 1]} : vector<16x512xf32> to vector<1x512xf32>
    %157 = vector.shape_cast %156 : vector<1x512xf32> to vector<512xf32>
    %158 = vector.shape_cast %157 : vector<512xf32> to vector<1x512xf32>
    %159 = arith.mulf %158, %155 : vector<1x512xf32>
    %160 = arith.addf %135, %159 : vector<1x512xf32>
    %161 = vector.extract_strided_slice %73 {offsets = [7, 0], sizes = [1, 512], strides = [1, 1]} : vector<16x512xf32> to vector<1x512xf32>
    %162 = vector.shape_cast %161 : vector<1x512xf32> to vector<512xf32>
    %163 = vector.shape_cast %162 : vector<512xf32> to vector<1x512xf32>
    %164 = arith.mulf %163, %155 : vector<1x512xf32>
    %165 = arith.addf %140, %164 : vector<1x512xf32>
    %166 = vector.extract_strided_slice %73 {offsets = [11, 0], sizes = [1, 512], strides = [1, 1]} : vector<16x512xf32> to vector<1x512xf32>
    %167 = vector.shape_cast %166 : vector<1x512xf32> to vector<512xf32>
    %168 = vector.shape_cast %167 : vector<512xf32> to vector<1x512xf32>
    %169 = arith.mulf %168, %155 : vector<1x512xf32>
    %170 = arith.addf %145, %169 : vector<1x512xf32>
    %171 = vector.extract_strided_slice %73 {offsets = [15, 0], sizes = [1, 512], strides = [1, 1]} : vector<16x512xf32> to vector<1x512xf32>
    %172 = vector.shape_cast %171 : vector<1x512xf32> to vector<512xf32>
    %173 = vector.shape_cast %172 : vector<512xf32> to vector<1x512xf32>
    %174 = arith.mulf %173, %155 : vector<1x512xf32>
    %175 = arith.addf %150, %174 : vector<1x512xf32>
    %c0_44 = arith.constant 0 : index
    %c0_45 = arith.constant 0 : index
    %176 = vector.load %arg14[%c0_44, %c0_45] : memref<32x1xf32, #tpu.memory_space<vmem>>, vector<32x1xf32>
    %177 = vector.broadcast %176 : vector<32x1xf32> to vector<32x512xf32>
    %178 = vector.broadcast %0 : vector<1x512xf32> to vector<32x512xf32>
    %179 = arith.mulf %177, %178 : vector<32x512xf32>
    %c0_46 = arith.constant 0 : index
    %c0_47 = arith.constant 0 : index
    %180 = vector.load %arg15[%c0_46, %c0_47] : memref<32x1xf32, #tpu.memory_space<vmem>>, vector<32x1xf32>
    %181 = vector.broadcast %180 : vector<32x1xf32> to vector<32x512xf32>
    %182 = arith.addf %179, %181 : vector<32x512xf32>
    %c0_48 = arith.constant 0 : index
    %c0_49 = arith.constant 0 : index
    %183 = vector.load %arg16[%c0_48, %c0_49] : memref<32x1xf32, #tpu.memory_space<vmem>>, vector<32x1xf32>
    %c0_50 = arith.constant 0 : index
    %c0_51 = arith.constant 0 : index
    %184 = vector.load %arg17[%c0_50, %c0_51] : memref<32x1xf32, #tpu.memory_space<vmem>>, vector<32x1xf32>
    %cst_52 = arith.constant dense<0.000000e+00> : vector<512xf32>
    %185 = vector.multi_reduction <add>, %182, %cst_52 [0] : vector<32x512xf32> to vector<512xf32>
    %186 = vector.shape_cast %185 : vector<512xf32> to vector<1x512xf32>
    %cst_53 = arith.constant 3.200000e+01 : f32
    %187 = vector.broadcast %cst_53 : f32 to vector<1x512xf32>
    %188 = arith.divf %186, %187 : vector<1x512xf32>
    %189 = vector.broadcast %188 : vector<1x512xf32> to vector<32x512xf32>
    %190 = arith.subf %182, %189 : vector<32x512xf32>
    %191 = arith.mulf %190, %190 : vector<32x512xf32>
    %cst_54 = arith.constant dense<0.000000e+00> : vector<512xf32>
    %192 = vector.multi_reduction <add>, %191, %cst_54 [0] : vector<32x512xf32> to vector<512xf32>
    %193 = vector.shape_cast %192 : vector<512xf32> to vector<1x512xf32>
    %cst_55 = arith.constant 3.200000e+01 : f32
    %194 = vector.broadcast %cst_55 : f32 to vector<1x512xf32>
    %195 = arith.divf %193, %194 : vector<1x512xf32>
    %196 = vector.broadcast %188 : vector<1x512xf32> to vector<32x512xf32>
    %197 = arith.subf %182, %196 : vector<32x512xf32>
    %cst_56 = arith.constant 9.99999974E-6 : f32
    %198 = vector.broadcast %cst_56 : f32 to vector<1x512xf32>
    %199 = arith.addf %195, %198 : vector<1x512xf32>
    %200 = math.rsqrt %199 : vector<1x512xf32>
    %201 = vector.broadcast %200 : vector<1x512xf32> to vector<32x512xf32>
    %202 = arith.mulf %197, %201 : vector<32x512xf32>
    %203 = vector.broadcast %183 : vector<32x1xf32> to vector<32x512xf32>
    %204 = arith.mulf %202, %203 : vector<32x512xf32>
    %205 = vector.broadcast %184 : vector<32x1xf32> to vector<32x512xf32>
    %206 = arith.addf %204, %205 : vector<32x512xf32>
    %cst_57 = arith.constant 0.000000e+00 : f32
    %207 = vector.broadcast %cst_57 : f32 to vector<32x512xf32>
    %208 = arith.maximumf %206, %207 : vector<32x512xf32>
    %c0_58 = arith.constant 0 : index
    %c0_59 = arith.constant 0 : index
    %209 = vector.load %arg18[%c0_58, %c0_59] : memref<32x32xf32, #tpu.memory_space<vmem>>, vector<32x32xf32>
    %cst_60 = arith.constant dense<0.000000e+00> : vector<32x512xf32>
    %210 = tpu.matmul %209, %208, %cst_60 {dimension_numbers = #tpu.dot_dimension_numbers<[1], [0], [0], [1], [0, 0, 1, 1], [], []>} : vector<32x32xf32>, vector<32x512xf32>, vector<32x512xf32> -> vector<32x512xf32>
    %c0_61 = arith.constant 0 : index
    %c0_62 = arith.constant 0 : index
    %211 = vector.load %arg19[%c0_61, %c0_62] : memref<32x1xf32, #tpu.memory_space<vmem>>, vector<32x1xf32>
    %212 = vector.broadcast %211 : vector<32x1xf32> to vector<32x512xf32>
    %213 = arith.addf %210, %212 : vector<32x512xf32>
    %c0_63 = arith.constant 0 : index
    %c0_64 = arith.constant 0 : index
    %214 = vector.load %arg20[%c0_63, %c0_64] : memref<32x1xf32, #tpu.memory_space<vmem>>, vector<32x1xf32>
    %c0_65 = arith.constant 0 : index
    %c0_66 = arith.constant 0 : index
    %215 = vector.load %arg21[%c0_65, %c0_66] : memref<32x1xf32, #tpu.memory_space<vmem>>, vector<32x1xf32>
    %cst_67 = arith.constant dense<0.000000e+00> : vector<512xf32>
    %216 = vector.multi_reduction <add>, %213, %cst_67 [0] : vector<32x512xf32> to vector<512xf32>
    %217 = vector.shape_cast %216 : vector<512xf32> to vector<1x512xf32>
    %cst_68 = arith.constant 3.200000e+01 : f32
    %218 = vector.broadcast %cst_68 : f32 to vector<1x512xf32>
    %219 = arith.divf %217, %218 : vector<1x512xf32>
    %220 = vector.broadcast %219 : vector<1x512xf32> to vector<32x512xf32>
    %221 = arith.subf %213, %220 : vector<32x512xf32>
    %222 = arith.mulf %221, %221 : vector<32x512xf32>
    %cst_69 = arith.constant dense<0.000000e+00> : vector<512xf32>
    %223 = vector.multi_reduction <add>, %222, %cst_69 [0] : vector<32x512xf32> to vector<512xf32>
    %224 = vector.shape_cast %223 : vector<512xf32> to vector<1x512xf32>
    %cst_70 = arith.constant 3.200000e+01 : f32
    %225 = vector.broadcast %cst_70 : f32 to vector<1x512xf32>
    %226 = arith.divf %224, %225 : vector<1x512xf32>
    %227 = vector.broadcast %219 : vector<1x512xf32> to vector<32x512xf32>
    %228 = arith.subf %213, %227 : vector<32x512xf32>
    %cst_71 = arith.constant 9.99999974E-6 : f32
    %229 = vector.broadcast %cst_71 : f32 to vector<1x512xf32>
    %230 = arith.addf %226, %229 : vector<1x512xf32>
    %231 = math.rsqrt %230 : vector<1x512xf32>
    %232 = vector.broadcast %231 : vector<1x512xf32> to vector<32x512xf32>
    %233 = arith.mulf %228, %232 : vector<32x512xf32>
    %234 = vector.broadcast %214 : vector<32x1xf32> to vector<32x512xf32>
    %235 = arith.mulf %233, %234 : vector<32x512xf32>
    %236 = vector.broadcast %215 : vector<32x1xf32> to vector<32x512xf32>
    %237 = arith.addf %235, %236 : vector<32x512xf32>
    %cst_72 = arith.constant 0.000000e+00 : f32
    %238 = vector.broadcast %cst_72 : f32 to vector<32x512xf32>
    %239 = arith.maximumf %237, %238 : vector<32x512xf32>
    %c0_73 = arith.constant 0 : index
    %c0_74 = arith.constant 0 : index
    %240 = vector.load %arg22[%c0_73, %c0_74] : memref<16x32xf32, #tpu.memory_space<vmem>>, vector<16x32xf32>
    %cst_75 = arith.constant dense<0.000000e+00> : vector<16x512xf32>
    %241 = tpu.matmul %240, %239, %cst_75 {dimension_numbers = #tpu.dot_dimension_numbers<[1], [0], [0], [1], [0, 0, 1, 1], [], []>} : vector<16x32xf32>, vector<32x512xf32>, vector<16x512xf32> -> vector<16x512xf32>
    %c0_76 = arith.constant 0 : index
    %c0_77 = arith.constant 0 : index
    %242 = vector.load %arg23[%c0_76, %c0_77] : memref<16x1xf32, #tpu.memory_space<vmem>>, vector<16x1xf32>
    %243 = vector.broadcast %242 : vector<16x1xf32> to vector<16x512xf32>
    %244 = arith.addf %241, %243 : vector<16x512xf32>
    %c0_78 = arith.constant 0 : index
    %c0_79 = arith.constant 0 : index
    %c0_80 = arith.constant 0 : index
    %c0_81 = arith.constant 0 : index
    %245 = vector.load %arg24[%c0_78, %c0_79, %c0_80, %c0_81] : memref<3x1x1x512xf32, #tpu.memory_space<vmem>>, vector<3x1x1x512xf32>
    %c0_82 = arith.constant 0 : index
    %c0_83 = arith.constant 0 : index
    %246 = vector.load %arg25[%c0_82, %c0_83] : memref<12x512xf32, #tpu.memory_space<vmem>>, vector<12x512xf32>
    %247 = vector.extract_strided_slice %246 {offsets = [0, 0], sizes = [1, 512], strides = [1, 1]} : vector<12x512xf32> to vector<1x512xf32>
    %248 = vector.shape_cast %247 : vector<1x512xf32> to vector<512xf32>
    %249 = vector.shape_cast %248 : vector<512xf32> to vector<1x512xf32>
    %250 = vector.extract_strided_slice %245 {offsets = [0, 0, 0, 0], sizes = [1, 1, 1, 512], strides = [1, 1, 1, 1]} : vector<3x1x1x512xf32> to vector<1x1x1x512xf32>
    %251 = vector.shape_cast %250 : vector<1x1x1x512xf32> to vector<1x512xf32>
    %252 = arith.mulf %249, %251 : vector<1x512xf32>
    %253 = vector.extract_strided_slice %246 {offsets = [1, 0], sizes = [1, 512], strides = [1, 1]} : vector<12x512xf32> to vector<1x512xf32>
    %254 = vector.shape_cast %253 : vector<1x512xf32> to vector<512xf32>
    %255 = vector.shape_cast %254 : vector<512xf32> to vector<1x512xf32>
    %256 = vector.extract_strided_slice %245 {offsets = [1, 0, 0, 0], sizes = [1, 1, 1, 512], strides = [1, 1, 1, 1]} : vector<3x1x1x512xf32> to vector<1x1x1x512xf32>
    %257 = vector.shape_cast %256 : vector<1x1x1x512xf32> to vector<1x512xf32>
    %258 = arith.mulf %255, %257 : vector<1x512xf32>
    %259 = arith.addf %252, %258 : vector<1x512xf32>
    %260 = vector.extract_strided_slice %246 {offsets = [2, 0], sizes = [1, 512], strides = [1, 1]} : vector<12x512xf32> to vector<1x512xf32>
    %261 = vector.shape_cast %260 : vector<1x512xf32> to vector<512xf32>
    %262 = vector.shape_cast %261 : vector<512xf32> to vector<1x512xf32>
    %263 = vector.extract_strided_slice %245 {offsets = [2, 0, 0, 0], sizes = [1, 1, 1, 512], strides = [1, 1, 1, 1]} : vector<3x1x1x512xf32> to vector<1x1x1x512xf32>
    %264 = vector.shape_cast %263 : vector<1x1x1x512xf32> to vector<1x512xf32>
    %265 = arith.mulf %262, %264 : vector<1x512xf32>
    %266 = arith.addf %259, %265 : vector<1x512xf32>
    %267 = vector.extract_strided_slice %244 {offsets = [0, 0], sizes = [1, 512], strides = [1, 1]} : vector<16x512xf32> to vector<1x512xf32>
    %268 = vector.shape_cast %267 : vector<1x512xf32> to vector<512xf32>
    %269 = vector.shape_cast %268 : vector<512xf32> to vector<1x512xf32>
    %270 = arith.mulf %269, %266 : vector<1x512xf32>
    %271 = arith.addf %160, %270 : vector<1x512xf32>
    %272 = vector.extract_strided_slice %244 {offsets = [4, 0], sizes = [1, 512], strides = [1, 1]} : vector<16x512xf32> to vector<1x512xf32>
    %273 = vector.shape_cast %272 : vector<1x512xf32> to vector<512xf32>
    %274 = vector.shape_cast %273 : vector<512xf32> to vector<1x512xf32>
    %275 = arith.mulf %274, %266 : vector<1x512xf32>
    %276 = arith.addf %165, %275 : vector<1x512xf32>
    %277 = vector.extract_strided_slice %244 {offsets = [8, 0], sizes = [1, 512], strides = [1, 1]} : vector<16x512xf32> to vector<1x512xf32>
    %278 = vector.shape_cast %277 : vector<1x512xf32> to vector<512xf32>
    %279 = vector.shape_cast %278 : vector<512xf32> to vector<1x512xf32>
    %280 = arith.mulf %279, %266 : vector<1x512xf32>
    %281 = arith.addf %170, %280 : vector<1x512xf32>
    %282 = vector.extract_strided_slice %244 {offsets = [12, 0], sizes = [1, 512], strides = [1, 1]} : vector<16x512xf32> to vector<1x512xf32>
    %283 = vector.shape_cast %282 : vector<1x512xf32> to vector<512xf32>
    %284 = vector.shape_cast %283 : vector<512xf32> to vector<1x512xf32>
    %285 = arith.mulf %284, %266 : vector<1x512xf32>
    %286 = arith.addf %175, %285 : vector<1x512xf32>
    %287 = vector.extract_strided_slice %246 {offsets = [3, 0], sizes = [1, 512], strides = [1, 1]} : vector<12x512xf32> to vector<1x512xf32>
    %288 = vector.shape_cast %287 : vector<1x512xf32> to vector<512xf32>
    %289 = vector.shape_cast %288 : vector<512xf32> to vector<1x512xf32>
    %290 = vector.extract_strided_slice %245 {offsets = [0, 0, 0, 0], sizes = [1, 1, 1, 512], strides = [1, 1, 1, 1]} : vector<3x1x1x512xf32> to vector<1x1x1x512xf32>
    %291 = vector.shape_cast %290 : vector<1x1x1x512xf32> to vector<1x512xf32>
    %292 = arith.mulf %289, %291 : vector<1x512xf32>
    %293 = vector.extract_strided_slice %246 {offsets = [4, 0], sizes = [1, 512], strides = [1, 1]} : vector<12x512xf32> to vector<1x512xf32>
    %294 = vector.shape_cast %293 : vector<1x512xf32> to vector<512xf32>
    %295 = vector.shape_cast %294 : vector<512xf32> to vector<1x512xf32>
    %296 = vector.extract_strided_slice %245 {offsets = [1, 0, 0, 0], sizes = [1, 1, 1, 512], strides = [1, 1, 1, 1]} : vector<3x1x1x512xf32> to vector<1x1x1x512xf32>
    %297 = vector.shape_cast %296 : vector<1x1x1x512xf32> to vector<1x512xf32>
    %298 = arith.mulf %295, %297 : vector<1x512xf32>
    %299 = arith.addf %292, %298 : vector<1x512xf32>
    %300 = vector.extract_strided_slice %246 {offsets = [5, 0], sizes = [1, 512], strides = [1, 1]} : vector<12x512xf32> to vector<1x512xf32>
    %301 = vector.shape_cast %300 : vector<1x512xf32> to vector<512xf32>
    %302 = vector.shape_cast %301 : vector<512xf32> to vector<1x512xf32>
    %303 = vector.extract_strided_slice %245 {offsets = [2, 0, 0, 0], sizes = [1, 1, 1, 512], strides = [1, 1, 1, 1]} : vector<3x1x1x512xf32> to vector<1x1x1x512xf32>
    %304 = vector.shape_cast %303 : vector<1x1x1x512xf32> to vector<1x512xf32>
    %305 = arith.mulf %302, %304 : vector<1x512xf32>
    %306 = arith.addf %299, %305 : vector<1x512xf32>
    %307 = vector.extract_strided_slice %244 {offsets = [1, 0], sizes = [1, 512], strides = [1, 1]} : vector<16x512xf32> to vector<1x512xf32>
    %308 = vector.shape_cast %307 : vector<1x512xf32> to vector<512xf32>
    %309 = vector.shape_cast %308 : vector<512xf32> to vector<1x512xf32>
    %310 = arith.mulf %309, %306 : vector<1x512xf32>
    %311 = arith.addf %271, %310 : vector<1x512xf32>
    %312 = vector.extract_strided_slice %244 {offsets = [5, 0], sizes = [1, 512], strides = [1, 1]} : vector<16x512xf32> to vector<1x512xf32>
    %313 = vector.shape_cast %312 : vector<1x512xf32> to vector<512xf32>
    %314 = vector.shape_cast %313 : vector<512xf32> to vector<1x512xf32>
    %315 = arith.mulf %314, %306 : vector<1x512xf32>
    %316 = arith.addf %276, %315 : vector<1x512xf32>
    %317 = vector.extract_strided_slice %244 {offsets = [9, 0], sizes = [1, 512], strides = [1, 1]} : vector<16x512xf32> to vector<1x512xf32>
    %318 = vector.shape_cast %317 : vector<1x512xf32> to vector<512xf32>
    %319 = vector.shape_cast %318 : vector<512xf32> to vector<1x512xf32>
    %320 = arith.mulf %319, %306 : vector<1x512xf32>
    %321 = arith.addf %281, %320 : vector<1x512xf32>
    %322 = vector.extract_strided_slice %244 {offsets = [13, 0], sizes = [1, 512], strides = [1, 1]} : vector<16x512xf32> to vector<1x512xf32>
    %323 = vector.shape_cast %322 : vector<1x512xf32> to vector<512xf32>
    %324 = vector.shape_cast %323 : vector<512xf32> to vector<1x512xf32>
    %325 = arith.mulf %324, %306 : vector<1x512xf32>
    %326 = arith.addf %286, %325 : vector<1x512xf32>
    %327 = vector.extract_strided_slice %246 {offsets = [6, 0], sizes = [1, 512], strides = [1, 1]} : vector<12x512xf32> to vector<1x512xf32>
    %328 = vector.shape_cast %327 : vector<1x512xf32> to vector<512xf32>
    %329 = vector.shape_cast %328 : vector<512xf32> to vector<1x512xf32>
    %330 = vector.extract_strided_slice %245 {offsets = [0, 0, 0, 0], sizes = [1, 1, 1, 512], strides = [1, 1, 1, 1]} : vector<3x1x1x512xf32> to vector<1x1x1x512xf32>
    %331 = vector.shape_cast %330 : vector<1x1x1x512xf32> to vector<1x512xf32>
    %332 = arith.mulf %329, %331 : vector<1x512xf32>
    %333 = vector.extract_strided_slice %246 {offsets = [7, 0], sizes = [1, 512], strides = [1, 1]} : vector<12x512xf32> to vector<1x512xf32>
    %334 = vector.shape_cast %333 : vector<1x512xf32> to vector<512xf32>
    %335 = vector.shape_cast %334 : vector<512xf32> to vector<1x512xf32>
    %336 = vector.extract_strided_slice %245 {offsets = [1, 0, 0, 0], sizes = [1, 1, 1, 512], strides = [1, 1, 1, 1]} : vector<3x1x1x512xf32> to vector<1x1x1x512xf32>
    %337 = vector.shape_cast %336 : vector<1x1x1x512xf32> to vector<1x512xf32>
    %338 = arith.mulf %335, %337 : vector<1x512xf32>
    %339 = arith.addf %332, %338 : vector<1x512xf32>
    %340 = vector.extract_strided_slice %246 {offsets = [8, 0], sizes = [1, 512], strides = [1, 1]} : vector<12x512xf32> to vector<1x512xf32>
    %341 = vector.shape_cast %340 : vector<1x512xf32> to vector<512xf32>
    %342 = vector.shape_cast %341 : vector<512xf32> to vector<1x512xf32>
    %343 = vector.extract_strided_slice %245 {offsets = [2, 0, 0, 0], sizes = [1, 1, 1, 512], strides = [1, 1, 1, 1]} : vector<3x1x1x512xf32> to vector<1x1x1x512xf32>
    %344 = vector.shape_cast %343 : vector<1x1x1x512xf32> to vector<1x512xf32>
    %345 = arith.mulf %342, %344 : vector<1x512xf32>
    %346 = arith.addf %339, %345 : vector<1x512xf32>
    %347 = vector.extract_strided_slice %244 {offsets = [2, 0], sizes = [1, 512], strides = [1, 1]} : vector<16x512xf32> to vector<1x512xf32>
    %348 = vector.shape_cast %347 : vector<1x512xf32> to vector<512xf32>
    %349 = vector.shape_cast %348 : vector<512xf32> to vector<1x512xf32>
    %350 = arith.mulf %349, %346 : vector<1x512xf32>
    %351 = arith.addf %311, %350 : vector<1x512xf32>
    %352 = vector.extract_strided_slice %244 {offsets = [6, 0], sizes = [1, 512], strides = [1, 1]} : vector<16x512xf32> to vector<1x512xf32>
    %353 = vector.shape_cast %352 : vector<1x512xf32> to vector<512xf32>
    %354 = vector.shape_cast %353 : vector<512xf32> to vector<1x512xf32>
    %355 = arith.mulf %354, %346 : vector<1x512xf32>
    %356 = arith.addf %316, %355 : vector<1x512xf32>
    %357 = vector.extract_strided_slice %244 {offsets = [10, 0], sizes = [1, 512], strides = [1, 1]} : vector<16x512xf32> to vector<1x512xf32>
    %358 = vector.shape_cast %357 : vector<1x512xf32> to vector<512xf32>
    %359 = vector.shape_cast %358 : vector<512xf32> to vector<1x512xf32>
    %360 = arith.mulf %359, %346 : vector<1x512xf32>
    %361 = arith.addf %321, %360 : vector<1x512xf32>
    %362 = vector.extract_strided_slice %244 {offsets = [14, 0], sizes = [1, 512], strides = [1, 1]} : vector<16x512xf32> to vector<1x512xf32>
    %363 = vector.shape_cast %362 : vector<1x512xf32> to vector<512xf32>
    %364 = vector.shape_cast %363 : vector<512xf32> to vector<1x512xf32>
    %365 = arith.mulf %364, %346 : vector<1x512xf32>
    %366 = arith.addf %326, %365 : vector<1x512xf32>
    %367 = vector.extract_strided_slice %246 {offsets = [9, 0], sizes = [1, 512], strides = [1, 1]} : vector<12x512xf32> to vector<1x512xf32>
    %368 = vector.shape_cast %367 : vector<1x512xf32> to vector<512xf32>
    %369 = vector.shape_cast %368 : vector<512xf32> to vector<1x512xf32>
    %370 = vector.extract_strided_slice %245 {offsets = [0, 0, 0, 0], sizes = [1, 1, 1, 512], strides = [1, 1, 1, 1]} : vector<3x1x1x512xf32> to vector<1x1x1x512xf32>
    %371 = vector.shape_cast %370 : vector<1x1x1x512xf32> to vector<1x512xf32>
    %372 = arith.mulf %369, %371 : vector<1x512xf32>
    %373 = vector.extract_strided_slice %246 {offsets = [10, 0], sizes = [1, 512], strides = [1, 1]} : vector<12x512xf32> to vector<1x512xf32>
    %374 = vector.shape_cast %373 : vector<1x512xf32> to vector<512xf32>
    %375 = vector.shape_cast %374 : vector<512xf32> to vector<1x512xf32>
    %376 = vector.extract_strided_slice %245 {offsets = [1, 0, 0, 0], sizes = [1, 1, 1, 512], strides = [1, 1, 1, 1]} : vector<3x1x1x512xf32> to vector<1x1x1x512xf32>
    %377 = vector.shape_cast %376 : vector<1x1x1x512xf32> to vector<1x512xf32>
    %378 = arith.mulf %375, %377 : vector<1x512xf32>
    %379 = arith.addf %372, %378 : vector<1x512xf32>
    %380 = vector.extract_strided_slice %246 {offsets = [11, 0], sizes = [1, 512], strides = [1, 1]} : vector<12x512xf32> to vector<1x512xf32>
    %381 = vector.shape_cast %380 : vector<1x512xf32> to vector<512xf32>
    %382 = vector.shape_cast %381 : vector<512xf32> to vector<1x512xf32>
    %383 = vector.extract_strided_slice %245 {offsets = [2, 0, 0, 0], sizes = [1, 1, 1, 512], strides = [1, 1, 1, 1]} : vector<3x1x1x512xf32> to vector<1x1x1x512xf32>
    %384 = vector.shape_cast %383 : vector<1x1x1x512xf32> to vector<1x512xf32>
    %385 = arith.mulf %382, %384 : vector<1x512xf32>
    %386 = arith.addf %379, %385 : vector<1x512xf32>
    %387 = vector.extract_strided_slice %244 {offsets = [3, 0], sizes = [1, 512], strides = [1, 1]} : vector<16x512xf32> to vector<1x512xf32>
    %388 = vector.shape_cast %387 : vector<1x512xf32> to vector<512xf32>
    %389 = vector.shape_cast %388 : vector<512xf32> to vector<1x512xf32>
    %390 = arith.mulf %389, %386 : vector<1x512xf32>
    %391 = arith.addf %351, %390 : vector<1x512xf32>
    %392 = vector.extract_strided_slice %244 {offsets = [7, 0], sizes = [1, 512], strides = [1, 1]} : vector<16x512xf32> to vector<1x512xf32>
    %393 = vector.shape_cast %392 : vector<1x512xf32> to vector<512xf32>
    %394 = vector.shape_cast %393 : vector<512xf32> to vector<1x512xf32>
    %395 = arith.mulf %394, %386 : vector<1x512xf32>
    %396 = arith.addf %356, %395 : vector<1x512xf32>
    %397 = vector.extract_strided_slice %244 {offsets = [11, 0], sizes = [1, 512], strides = [1, 1]} : vector<16x512xf32> to vector<1x512xf32>
    %398 = vector.shape_cast %397 : vector<1x512xf32> to vector<512xf32>
    %399 = vector.shape_cast %398 : vector<512xf32> to vector<1x512xf32>
    %400 = arith.mulf %399, %386 : vector<1x512xf32>
    %401 = arith.addf %361, %400 : vector<1x512xf32>
    %402 = vector.extract_strided_slice %244 {offsets = [15, 0], sizes = [1, 512], strides = [1, 1]} : vector<16x512xf32> to vector<1x512xf32>
    %403 = vector.shape_cast %402 : vector<1x512xf32> to vector<512xf32>
    %404 = vector.shape_cast %403 : vector<512xf32> to vector<1x512xf32>
    %405 = arith.mulf %404, %386 : vector<1x512xf32>
    %406 = arith.addf %366, %405 : vector<1x512xf32>
    %c0_84 = arith.constant 0 : index
    %c0_85 = arith.constant 0 : index
    %c0_86 = arith.constant 0 : index
    %407 = vector.load %arg26[%c0_84, %c0_85, %c0_86] : memref<4x1x512xf32, #tpu.memory_space<vmem>>, vector<1x1x512xf32>
    %408 = vector.shape_cast %407 : vector<1x1x512xf32> to vector<1x512xf32>
    %409 = vector.shape_cast %391 : vector<1x512xf32> to vector<1x1x512xf32>
    tpu.vector_store %arg26[%c0_84, %c0_85, %c0_86], %409 {strides = array<i32>} : memref<4x1x512xf32, #tpu.memory_space<vmem>>, vector<1x1x512xf32>,
    %c1 = arith.constant 1 : index
    %c0_87 = arith.constant 0 : index
    %c0_88 = arith.constant 0 : index
    %410 = vector.load %arg26[%c1, %c0_87, %c0_88] : memref<4x1x512xf32, #tpu.memory_space<vmem>>, vector<1x1x512xf32>
    %411 = vector.shape_cast %410 : vector<1x1x512xf32> to vector<1x512xf32>
    %412 = vector.shape_cast %396 : vector<1x512xf32> to vector<1x1x512xf32>
    tpu.vector_store %arg26[%c1, %c0_87, %c0_88], %412 {strides = array<i32>} : memref<4x1x512xf32, #tpu.memory_space<vmem>>, vector<1x1x512xf32>,
    %c2 = arith.constant 2 : index
    %c0_89 = arith.constant 0 : index
    %c0_90 = arith.constant 0 : index
    %413 = vector.load %arg26[%c2, %c0_89, %c0_90] : memref<4x1x512xf32, #tpu.memory_space<vmem>>, vector<1x1x512xf32>
    %414 = vector.shape_cast %413 : vector<1x1x512xf32> to vector<1x512xf32>
    %415 = vector.shape_cast %401 : vector<1x512xf32> to vector<1x1x512xf32>
    tpu.vector_store %arg26[%c2, %c0_89, %c0_90], %415 {strides = array<i32>} : memref<4x1x512xf32, #tpu.memory_space<vmem>>, vector<1x1x512xf32>,
    %c3 = arith.constant 3 : index
    %c0_91 = arith.constant 0 : index
    %c0_92 = arith.constant 0 : index
    %416 = vector.load %arg26[%c3, %c0_91, %c0_92] : memref<4x1x512xf32, #tpu.memory_space<vmem>>, vector<1x1x512xf32>
    %417 = vector.shape_cast %416 : vector<1x1x512xf32> to vector<1x512xf32>
    %418 = vector.shape_cast %406 : vector<1x512xf32> to vector<1x1x512xf32>
    tpu.vector_store %arg26[%c3, %c0_91, %c0_92], %418 {strides = array<i32>} : memref<4x1x512xf32, #tpu.memory_space<vmem>>, vector<1x1x512xf32>,
    return
  }
  func.func @transform_0(%arg0: i32) -> (i32, i32) {
    %c0_i32 = arith.constant 0 : i32
    %c0_i32_0 = arith.constant 0 : i32
    return %c0_i32, %arg0 : i32, i32
  }
  func.func @transform_1(%arg0: i32) -> (i32, i32) {
    %c0_i32 = arith.constant 0 : i32
    %c0_i32_0 = arith.constant 0 : i32
    %c0_i32_1 = arith.constant 0 : i32
    return %c0_i32, %c0_i32_0 : i32, i32
  }
  func.func @transform_2(%arg0: i32) -> (i32, i32) {
    %c0_i32 = arith.constant 0 : i32
    %c0_i32_0 = arith.constant 0 : i32
    %c0_i32_1 = arith.constant 0 : i32
    return %c0_i32, %c0_i32_0 : i32, i32
  }
  func.func @transform_3(%arg0: i32) -> (i32, i32) {
    %c0_i32 = arith.constant 0 : i32
    %c0_i32_0 = arith.constant 0 : i32
    %c0_i32_1 = arith.constant 0 : i32
    return %c0_i32, %c0_i32_0 : i32, i32
  }
  func.func @transform_4(%arg0: i32) -> (i32, i32) {
    %c0_i32 = arith.constant 0 : i32
    %c0_i32_0 = arith.constant 0 : i32
    %c0_i32_1 = arith.constant 0 : i32
    return %c0_i32, %c0_i32_0 : i32, i32
  }
  func.func @transform_5(%arg0: i32) -> (i32, i32) {
    %c0_i32 = arith.constant 0 : i32
    %c0_i32_0 = arith.constant 0 : i32
    %c0_i32_1 = arith.constant 0 : i32
    return %c0_i32, %c0_i32_0 : i32, i32
  }
  func.func @transform_6(%arg0: i32) -> (i32, i32) {
    %c0_i32 = arith.constant 0 : i32
    %c0_i32_0 = arith.constant 0 : i32
    %c0_i32_1 = arith.constant 0 : i32
    return %c0_i32, %c0_i32_0 : i32, i32
  }
  func.func @transform_7(%arg0: i32) -> (i32, i32) {
    %c0_i32 = arith.constant 0 : i32
    %c0_i32_0 = arith.constant 0 : i32
    %c0_i32_1 = arith.constant 0 : i32
    return %c0_i32, %c0_i32_0 : i32, i32
  }
  func.func @transform_8(%arg0: i32) -> (i32, i32) {
    %c0_i32 = arith.constant 0 : i32
    %c0_i32_0 = arith.constant 0 : i32
    %c0_i32_1 = arith.constant 0 : i32
    return %c0_i32, %c0_i32_0 : i32, i32
  }
  func.func @transform_9(%arg0: i32) -> (i32, i32) {
    %c0_i32 = arith.constant 0 : i32
    %c0_i32_0 = arith.constant 0 : i32
    %c0_i32_1 = arith.constant 0 : i32
    return %c0_i32, %c0_i32_0 : i32, i32
  }
  func.func @transform_10(%arg0: i32) -> (i32, i32) {
    %c0_i32 = arith.constant 0 : i32
    %c0_i32_0 = arith.constant 0 : i32
    %c0_i32_1 = arith.constant 0 : i32
    return %c0_i32, %c0_i32_0 : i32, i32
  }
  func.func @transform_11(%arg0: i32) -> (i32, i32, i32, i32) {
    %c0_i32 = arith.constant 0 : i32
    %c0_i32_0 = arith.constant 0 : i32
    %c0_i32_1 = arith.constant 0 : i32
    %c0_i32_2 = arith.constant 0 : i32
    return %c0_i32, %c0_i32_0, %c0_i32_1, %arg0 : i32, i32, i32, i32
  }
  func.func @transform_12(%arg0: i32) -> (i32, i32) {
    %c0_i32 = arith.constant 0 : i32
    %c0_i32_0 = arith.constant 0 : i32
    return %c0_i32, %arg0 : i32, i32
  }
  func.func @transform_13(%arg0: i32) -> (i32, i32) {
    %c0_i32 = arith.constant 0 : i32
    %c0_i32_0 = arith.constant 0 : i32
    %c0_i32_1 = arith.constant 0 : i32
    return %c0_i32, %c0_i32_0 : i32, i32
  }
  func.func @transform_14(%arg0: i32) -> (i32, i32) {
    %c0_i32 = arith.constant 0 : i32
    %c0_i32_0 = arith.constant 0 : i32
    %c0_i32_1 = arith.constant 0 : i32
    return %c0_i32, %c0_i32_0 : i32, i32
  }
  func.func @transform_15(%arg0: i32) -> (i32, i32) {
    %c0_i32 = arith.constant 0 : i32
    %c0_i32_0 = arith.constant 0 : i32
    %c0_i32_1 = arith.constant 0 : i32
    return %c0_i32, %c0_i32_0 : i32, i32
  }
  func.func @transform_16(%arg0: i32) -> (i32, i32) {
    %c0_i32 = arith.constant 0 : i32
    %c0_i32_0 = arith.constant 0 : i32
    %c0_i32_1 = arith.constant 0 : i32
    return %c0_i32, %c0_i32_0 : i32, i32
  }
  func.func @transform_17(%arg0: i32) -> (i32, i32) {
    %c0_i32 = arith.constant 0 : i32
    %c0_i32_0 = arith.constant 0 : i32
    %c0_i32_1 = arith.constant 0 : i32
    return %c0_i32, %c0_i32_0 : i32, i32
  }
  func.func @transform_18(%arg0: i32) -> (i32, i32) {
    %c0_i32 = arith.constant 0 : i32
    %c0_i32_0 = arith.constant 0 : i32
    %c0_i32_1 = arith.constant 0 : i32
    return %c0_i32, %c0_i32_0 : i32, i32
  }
  func.func @transform_19(%arg0: i32) -> (i32, i32) {
    %c0_i32 = arith.constant 0 : i32
    %c0_i32_0 = arith.constant 0 : i32
    %c0_i32_1 = arith.constant 0 : i32
    return %c0_i32, %c0_i32_0 : i32, i32
  }
  func.func @transform_20(%arg0: i32) -> (i32, i32) {
    %c0_i32 = arith.constant 0 : i32
    %c0_i32_0 = arith.constant 0 : i32
    %c0_i32_1 = arith.constant 0 : i32
    return %c0_i32, %c0_i32_0 : i32, i32
  }
  func.func @transform_21(%arg0: i32) -> (i32, i32) {
    %c0_i32 = arith.constant 0 : i32
    %c0_i32_0 = arith.constant 0 : i32
    %c0_i32_1 = arith.constant 0 : i32
    return %c0_i32, %c0_i32_0 : i32, i32
  }
  func.func @transform_22(%arg0: i32) -> (i32, i32) {
    %c0_i32 = arith.constant 0 : i32
    %c0_i32_0 = arith.constant 0 : i32
    %c0_i32_1 = arith.constant 0 : i32
    return %c0_i32, %c0_i32_0 : i32, i32
  }
  func.func @transform_23(%arg0: i32) -> (i32, i32, i32, i32) {
    %c0_i32 = arith.constant 0 : i32
    %c0_i32_0 = arith.constant 0 : i32
    %c0_i32_1 = arith.constant 0 : i32
    %c0_i32_2 = arith.constant 0 : i32
    return %c0_i32, %c0_i32_0, %c0_i32_1, %arg0 : i32, i32, i32, i32
  }
  func.func @transform_24(%arg0: i32) -> (i32, i32) {
    %c0_i32 = arith.constant 0 : i32
    %c0_i32_0 = arith.constant 0 : i32
    return %c0_i32, %arg0 : i32, i32
  }
  func.func @transform_25(%arg0: i32) -> (i32, i32, i32) {
    %c0_i32 = arith.constant 0 : i32
    %c0_i32_0 = arith.constant 0 : i32
    %c0_i32_1 = arith.constant 0 : i32
    return %c0_i32, %c0_i32_0, %arg0 : i32, i32, i32
  }
}

</mosaic_0001>

<bundles_post_ra>
// kernel: tpu_custom_call.1
= control target key start
LH: loop header
LB: loop body
LE: loop exit
PB: predicated region body
PF: predicated region fallthrough
CT: control target
= control target key end

     0   :  { %s5665_s0 = inlined_call_operand.vmem [shape: f32[1,1024], index: 0, kind: input, shape index: {}]   ;;  %s5666_s1 = inlined_call_operand.vmem [shape: f32[32,1], index: 1, kind: input, shape index: {}]   ;;  %s5667_s2 = inlined_call_operand.vmem [shape: f32[32,1], index: 2, kind: input, shape index: {}]   ;;  %s5668_s3 = inlined_call_operand.vmem [shape: f32[32,1], index: 3, kind: input, shape index: {}]   ;;  %s5669_s4 = inlined_call_operand.vmem [shape: f32[32,1], index: 4, kind: input, shape index: {}]   ;;  %s5670_s5 = inlined_call_operand.vmem [shape: f32[32,32], index: 5, kind: input, shape index: {}]   ;;  %s5671_s6 = inlined_call_operand.vmem [shape: f32[32,1], index: 6, kind: input, shape index: {}]   ;;  %s5672_s7 = inlined_call_operand.vmem [shape: f32[32,1], index: 7, kind: input, shape index: {}]   ;;  %s5673_s8 = inlined_call_operand.vmem [shape: f32[32,1], index: 8, kind: input, shape index: {}]   ;;  %s5674_s9 = inlined_call_operand.vmem [shape: f32[16,32], index: 9, kind: input, shape index: {}]   ;;  %s5675_s10 = inlined_call_operand.vmem [shape: f32[16,1], index: 10, kind: input, shape index: {}]   ;;  %s5676_s11 = inlined_call_operand.vmem [shape: f32[1,1,1,1024], index: 11, kind: input, shape index: {}]   ;;  %s5677_s12 = inlined_call_operand.vmem [shape: f32[4,1024], index: 12, kind: input, shape index: {}]   ;;  %s5678_s13 = inlined_call_operand.vmem [shape: f32[32,1], index: 13, kind: input, shape index: {}]   ;;  %s5679_s14 = inlined_call_operand.vmem [shape: f32[32,1], index: 14, kind: input, shape index: {}]   ;;  %s5680_s15 = inlined_call_operand.vmem [shape: f32[32,1], index: 15, kind: input, shape index: {}]   ;;  %s5681_s16 = inlined_call_operand.vmem [shape: f32[32,1], index: 16, kind: input, shape index: {}]   ;;  %s5682_s17 = inlined_call_operand.vmem [shape: f32[32,32], index: 17, kind: input, shape index: {}]   ;;  %s5683_s18 = inlined_call_operand.vmem [shape: f32[32,1], index: 18, kind: input, shape index: {}]   ;;  %s5684_s19 = inlined_call_operand.vmem [shape: f32[32,1], index: 19, kind: input, shape index: {}]   ;;  %s5685_s20 = inlined_call_operand.vmem [shape: f32[32,1], index: 20, kind: input, shape index: {}]   ;;  %s5686_s21 = inlined_call_operand.vmem [shape: f32[16,32], index: 21, kind: input, shape index: {}]   ;;  %s5687_s22 = inlined_call_operand.vmem [shape: f32[16,1], index: 22, kind: input, shape index: {}]   ;;  %s5688_s23 = inlined_call_operand.vmem [shape: f32[3,1,1,1024], index: 23, kind: input, shape index: {}]   ;;  %s5689_s24 = inlined_call_operand.vmem [shape: f32[12,1024], index: 24, kind: input, shape index: {}]   ;;  %s5690_s25 = inlined_call_operand.hbm [shape: f32[4,1,1024], index: 25, kind: output, shape index: {}]  }
   0x1   :  { %5731 = sst [smem:[#allocation20_spill]] %s5665_s0 }
   0x2   :  { %5732 = sst [smem:[#allocation21_spill]] %s5666_s1 }
   0x3   :  { %5733 = sst [smem:[#allocation22_spill]] %s5667_s2 }
   0x4   :  { %5734 = sst [smem:[#allocation23_spill]] %s5668_s3 }
   0x5   :  { %5735 = sst [smem:[#allocation24_spill]] %s5669_s4 }
   0x6   :  { %5736 = sst [smem:[#allocation25_spill]] %s5670_s5 }
   0x7   :  { %5737 = sst [smem:[#allocation26_spill]] %s5671_s6 }
   0x8   :  { %5738 = sst [smem:[#allocation27_spill]] %s5672_s7 }
   0x9   :  { %5739 = sst [smem:[#allocation28_spill]] %s5673_s8 }
   0xa   :  { %5740 = sst [smem:[#allocation29_spill]] %s5674_s9 }
   0xb   :  { %5741 = sst [smem:[#allocation30_spill]] %s5675_s10 }
   0xc   :  { %5742 = sst [smem:[#allocation31_spill]] %s5676_s11 }
   0xd   :  { %5743 = sst [smem:[#allocation32_spill]] %s5677_s12 }
   0xe   :  { %5744 = sst [smem:[#allocation33_spill]] %s5688_s23 }
   0xf   :  { %5745 = sst [smem:[#allocation34_spill]] %s5689_s24 }
  0x10   :  { %5746 = sst [smem:[#allocation35_spill]] %s5690_s25 }
  0x11   :  { %30 = vsyncpa [#allocation5], 0 }
  0x12   :  { %32 = vsyncpa [#allocation5 + $0x1], 0  ;;  %s4218_s29 = smov 0   ;;  %s4220_s2 = smov 0  }
  0x13   :  { %s4222_s6 = smov 0   ;;  %s4224_s30 = smov 0  }
  0x14 LB: > { %5747 = sst [smem:[#allocation7_spill]] %s4065_s29  ;;  %s4239_s7 = sadd.s32 4294967295, %s4077_s30   ;;  %s4077_s30 = sphi %s4224_s30, %s5820_s30   ;;  %s4073_s6 = sphi %s4222_s6, %s5824_s6   ;;  %s4069_s2 = sphi %s4220_s2, %s5823_s2   ;;  %s4065_s29 = sphi %s4218_s29, %s5822_s29  }
  0x15   : > { %s3820_s3 = sadd.s32 4294967294, %s4077_s30   ;;  %s4243_s26 = sadd.s32 1, %s4077_s30  }
  0x16   : > { %5748 = sst [smem:[#allocation8_spill]] %s4243_s26  ;;  %s543_s1 = sadd.s32 1, %s4073_s6 }
  0x17   : > { %s540_s8 = ssub.s32 %s4077_s30, %s4243_s26  ;;  %p550_p0 = scmp.ne.s32.totalorder %s4073_s6, %s4069_s2 }
  0x18   : > { %p541_p1 = scmp.eq.s32.totalorder %s540_s8, 0  ;;  %p551_p2 = scmp.eq.s32.totalorder %s4077_s30, 0 }
  0x19   : > { %p606_p3 = scmp.eq.s32.totalorder %s4239_s7, 1  ;;  %p611_p4 = scmp.ne.s32.totalorder %s4069_s2, %s4065_s29 }
  0x1a   : > { %s4255_s27 = scalar_select %p541_p1, %s4073_s6, %s543_s1  }
  0x1b   : > { %p4257_p5 = por %p551_p2, %p550_p0  ;;  %p4261_p6 = por %p606_p3, %p550_p0 }
  0x1c   : > { %5749 = sst [smem:[#allocation9_spill]] %s4255_s27  ;;  %p612_p7 = scmp.eq.s32.totalorder %s3820_s3, 1 }
  0x1d   : > { %s5751_s28 = scalar_select %p4261_p6, 1, 0 }
  0x1e   : > { %p4265_p8 = por %p612_p7, %p611_p4  ;;  %p3822_p9 = scmp.ge.s32.totalorder %s4077_s30, 2 }
  0x1f   : > { %5752 = sst [smem:[#allocation10_spill]] %s5751_s28 }
  0x20   : > { %s5753_s9 = scalar_select %p4265_p8, 1, 0 }
  0x21   : > { %688 = sbr.rel (%p3822_p9) target bundleno = 66 (0x42), region = 96 }
  0x22   : > { %5754 = sst [smem:[#allocation11_spill]] %s5753_s9 }
  0x28   : > { %716 = sbr.rel (!%p4257_p5) target bundleno = 52 (0x34), region = 112  ;;  %s718_s5 = sand.u32 (%p4257_p5), 1, %s4073_s6  }
  0x29   : > { %s3823_s0 = sshll.u32 (%p4257_p5), %s4077_s30, 2  ;;  %s3932_s1 = smul.u32 (%p4257_p5), 12, %s718_s5 }
  0x2a   : > { %s5755_s23 = sld [smem:[#allocation33_spill]] (%p4257_p5) }
  0x2b   : > { %s720_s26 = scalar_lea.vmem (%p4257_p5), [#allocation2], %s3932_s1 }
  0x30   : > { %s722_s3 = scalar_lea.vmem %s5755_s23, %s3823_s0 }
  0x31   : > { %v738_v0 = vld [vmem:[%s722_s3] sm:$0xf]  ;;  %v740_v1 = vld [vmem:[%s722_s3 + $0x8] sm:$0xf]  ;;  %v742_v2 = vld [vmem:[%s722_s3 + $0x10] sm:$0xf] }
  0x32   : > { %739 = vst [vmem:[%s720_s26] sm:$0xf] %v738_v0  ;;  %741 = vst [vmem:[%s720_s26 + $0x4] sm:$0xf] %v740_v1 }
  0x33   : > { %743 = vst [vmem:[%s720_s26 + $0x8] sm:$0xf] %v742_v2 }
  0x34 PF: > { %772 = sbr.rel (!%p4257_p5) target bundleno = 66 (0x42), region = 153  ;;  %s774_s9 = sand.u32 (%p4257_p5), 1, %s4073_s6  }
  0x35   : > { %s3866_s29 = sshll.u32 (%p4257_p5), %s4077_s30, 5  ;;  %s3824_s5 = sshll.u32 (%p4257_p5), %s774_s9, 6 }
  0x36   : > { %s5756_s24 = sld [smem:[#allocation34_spill]] (%p4257_p5)  ;;  %s776_s0 = scalar_lea.vmem (%p4257_p5), [#allocation3], %s3824_s5 }
  0x3c   : > { %s779_s27 = scalar_lea.vmem %s5756_s24, %s3866_s29 }
  0x3d   : > { %v792_v3 = vld [vmem:[%s779_s27] sm:$0xff]  ;;  %v794_v4 = vld [vmem:[%s779_s27 + $0x8] sm:$0xff]  ;;  %v796_v5 = vld [vmem:[%s779_s27 + $0x10] sm:$0xff] }
  0x3e   : > { %793 = vst [vmem:[%s776_s0] sm:$0xff] %v792_v3  ;;  %795 = vst [vmem:[%s776_s0 + $0x8] sm:$0xff] %v794_v4  ;;  %v798_v6 = vld [vmem:[%s779_s27 + $0x18] sm:$0xff]  ;;  %v800_v7 = vld [vmem:[%s779_s27 + $0x40] sm:$0xff] }
  0x3f   : > { %797 = vst [vmem:[%s776_s0 + $0x10] sm:$0xff] %v796_v5  ;;  %v802_v8 = vld [vmem:[%s779_s27 + $0x48] sm:$0xff]  ;;  %799 = vst [vmem:[%s776_s0 + $0x18] sm:$0xff] %v798_v6  ;;  %v804_v9 = vld [vmem:[%s779_s27 + $0x50] sm:$0xff] }
  0x40   : > { %801 = vst [vmem:[%s776_s0 + $0x20] sm:$0xff] %v800_v7  ;;  %803 = vst [vmem:[%s776_s0 + $0x28] sm:$0xff] %v802_v8  ;;  %v806_v10 = vld [vmem:[%s779_s27 + $0x58] sm:$0xff] }
  0x41   : > { %805 = vst [vmem:[%s776_s0 + $0x30] sm:$0xff] %v804_v9  ;;  %807 = vst [vmem:[%s776_s0 + $0x38] sm:$0xff] %v806_v10 }
  0x42 PF: > { %p3827_p10 = scmp.ge.s32.totalorder %s4077_s30, 1  ;;  %p812_p11 = scmp.lt.s32.totalorder %s4077_s30, 3 }
  0x44   : > { %p813_p12 = pnand %p3827_p10, %p812_p11 }
  0x46   : > { %816 = sbr.rel (%p813_p12) target bundleno = 1216 (0x4c0), region = 176 }
  0x4d   : > { %s5757_s26 = sld [smem:[#allocation21_spill]]  ;;  %v4079_v13 = vmov 0   ;;  %s5758_s8 = sld [smem:[#allocation22_spill]]  ;;  %v2130_v32 = vld [vmem:[%s5678_s13 + $0x8] sm:$0xff]  ;;  %v2129_v33 = vld [vmem:[%s5678_s13] sm:$0xff]  ;;  %v2131_v35 = vld [vmem:[%s5678_s13 + $0x10] sm:$0xff]  ;;  %v5710_v8 = vlaneseq }
  0x4e   : > { %3982 = vset.pattern.permute.xlu1 %v4079_v13  ;;  %3981 = vset.pattern.permute.xlu0 %v4079_v13  ;;  %s5759_s27 = sld [smem:[#allocation23_spill]]  ;;  %s5760_s4 = sld [smem:[#allocation24_spill]]  ;;  %v2169_v34 = vld [vmem:[%s5679_s14] sm:$0xff]  ;;  %v2132_v36 = vld [vmem:[%s5678_s13 + $0x18] sm:$0xff]  ;;  %v2170_v37 = vld [vmem:[%s5679_s14 + $0x8] sm:$0xff]  ;;  %v5711_v9 = vmov 0.0  }
  0x4f   : > { %s5761_s9 = sld [smem:[#allocation26_spill]]  ;;  %v2172_v38 = vld [vmem:[%s5679_s14 + $0x18] sm:$0xff]  ;;  %v2171_v39 = vld [vmem:[%s5679_s14 + $0x10] sm:$0xff]  ;;  %s5762_s23 = sld [smem:[#allocation27_spill]]  ;;  %v2210_v48 = vld [vmem:[%s5680_s15 + $0x8] sm:$0xff]  ;;  %1369 = vmatprep.mubr.f32.mxu0 %v5711_v9  ;;  %1458 = vmatprep.mubr.f32.mxu1 %v5711_v9  ;;  %v4474_v10 = vshrl.u32 %v5710_v8, 7 }
  0x50   : > { %s5763_s24 = sld [smem:[#allocation28_spill]]  ;;  %v2209_v49 = vld [vmem:[%s5680_s15] sm:$0xff]  ;;  %v2214_v50 = vld [vmem:[%s5681_s16 + $0x8] sm:$0xff]  ;;  %v2212_v52 = vld [vmem:[%s5680_s15 + $0x18] sm:$0xff]  ;;  %s5764_s10 = sld [smem:[#allocation30_spill]]  ;;  %vm1292_vm0 = vcmask 261120  }
  0x51   : > { %v2213_v51 = vld [vmem:[%s5681_s16] sm:$0xff]  ;;  %v2211_v53 = vld [vmem:[%s5680_s15 + $0x10] sm:$0xff]  ;;  %v2216_v54 = vld [vmem:[%s5681_s16 + $0x18] sm:$0xff]  ;;  %s3830_s25 = sshll.u32 %s4239_s7, 2  ;;  %5765 = vst [vmem:[#allocation12_spill] sm:$0xff] %v4474_v10  ;;  %s5766_s28 = sld [smem:[#allocation20_spill]] }
  0x52   : > { %v2215_v55 = vld [vmem:[%s5681_s16 + $0x10] sm:$0xff]  ;;  %v2446_v56 = vld [vmem:[%s5683_s18 + $0x8] sm:$0xff]  ;;  %v2445_v57 = vld [vmem:[%s5683_s18] sm:$0xff]  ;;  %p911_p13 = scmp.lt.s32.totalorder %s3830_s25, 7  ;;  %v4481_v13 = vsub.s32 0, %v4474_v10  ;;  %s5771_s5 = sld [smem:[#allocation25_spill]] }
  0x53   : > { %v932_v11 = vld [vmem:[%s5757_s26 + $0x10] sm:$0xff]  ;;  %v930_v12 = vld [vmem:[%s5757_s26] sm:$0xff]  ;;  %v931_v15 = vld [vmem:[%s5757_s26 + $0x8] sm:$0xff]  ;;  %s5780_s11 = sld [smem:[#allocation31_spill]]  ;;  %s5782_s12 = sld [smem:[#allocation32_spill]] }
  0x54   : > { %946 = vperm.xlu1 %3982, %v932_v11   ;;  %936 = vperm.xlu0 %3981, %v930_v12   ;;  %v991_v14 = vld [vmem:[%s5758_s8] sm:$0xff]  ;;  %v933_v16 = vld [vmem:[%s5757_s26 + $0x18] sm:$0xff]  ;;  %v992_v17 = vld [vmem:[%s5758_s8 + $0x8] sm:$0xff]  ;;  %s5826_s25 = smov (!%p911_p13, %s3830_s25), 7  ;;  %5767 = vst [vmem:[#allocation13_spill] sm:$0xff] %v4481_v13  ;;  %s3867_s1 = sshll.u32 %s4239_s7, 6 }
  0x55   : > { %v994_v18 = vld [vmem:[%s5758_s8 + $0x18] sm:$0xff]  ;;  %v993_v19 = vld [vmem:[%s5758_s8 + $0x10] sm:$0xff]  ;;  %v1032_v20 = vld [vmem:[%s5759_s27 + $0x8] sm:$0xff] }
  0x56   : > { %v1031_v21 = vld [vmem:[%s5759_s27] sm:$0xff]  ;;  %v1036_v22 = vld [vmem:[%s5760_s4 + $0x8] sm:$0xff]  ;;  %v1034_v24 = vld [vmem:[%s5759_s27 + $0x18] sm:$0xff] }
  0x57   : > { %v1035_v23 = vld [vmem:[%s5760_s4] sm:$0xff]  ;;  %v1033_v25 = vld [vmem:[%s5759_s27 + $0x10] sm:$0xff]  ;;  %v1038_v26 = vld [vmem:[%s5760_s4 + $0x18] sm:$0xff]  ;;  %s913_s8 = scalar_lea.vmem %s5766_s28, %s5826_s25  ;;  %s3833_s28 = sshll.u32 %s5826_s25, 2 }
  0x58   : > { %997 = vperm.xlu1 %3982, %v991_v14   ;;  %941 = vperm.xlu0 %3981, %v931_v15   ;;  %v1037_v27 = vld [vmem:[%s5760_s4 + $0x10] sm:$0xff]  ;;  %v1269_v28 = vld [vmem:[%s5761_s9 + $0x8] sm:$0xff]  ;;  %v1268_v29 = vld [vmem:[%s5761_s9] sm:$0xff]  ;;  %v4484_v14 = vsub.s32 1, %v4474_v10  ;;  %v4487_v15 = vsub.s32 2, %v4474_v10  ;;  %s5778_s4 = sld [smem:[#allocation29_spill]] }
  0x59   : > { %v1271_v30 = vld [vmem:[%s5761_s9 + $0x18] sm:$0xff]  ;;  %v1270_v31 = vld [vmem:[%s5761_s9 + $0x10] sm:$0xff]  ;;  %v1484_v40 = vld [vmem:[%s5762_s23 + $0x8] sm:$0xff]  ;;  %s918_s9 = scalar_lea.vmem %s5780_s11, %s5826_s25  ;;  %s924_s3 = scalar_lea.vmem %s5782_s12, %s3833_s28 }
  0x5a   : > { %v1483_v41 = vld [vmem:[%s5762_s23] sm:$0xff]  ;;  %v1488_v42 = vld [vmem:[%s5763_s24 + $0x8] sm:$0xff]  ;;  %v1486_v44 = vld [vmem:[%s5762_s23 + $0x18] sm:$0xff]  ;;  %5768 = vst [vmem:[#allocation14_spill] sm:$0xff] %v4484_v14  ;;  %s5264_s25 = sand.u32 1, %s4069_s2  }
  0x5b   : > { %v1487_v43 = vld [vmem:[%s5763_s24] sm:$0xff]  ;;  %v1485_v45 = vld [vmem:[%s5762_s23 + $0x10] sm:$0xff]  ;;  %v1490_v46 = vld [vmem:[%s5763_s24 + $0x18] sm:$0xff]  ;;  %5769 = vst [vmem:[#allocation15_spill] sm:$0xff] %v4487_v15  ;;  %s3933_s0 = smul.u32 12, %s5264_s25  ;;  %s3828_s29 = sshll.u32 %s5264_s25, 6 }
  0x5c   : > { %951 = vperm.xlu1 %3982, %v933_v16   ;;  %1002 = vperm.xlu0 %3981, %v992_v17   ;;  %v1489_v47 = vld [vmem:[%s5763_s24 + $0x10] sm:$0xff]  ;;  %v2448_v58 = vld [vmem:[%s5683_s18 + $0x18] sm:$0xff]  ;;  %v2660_v60 = vld [vmem:[%s5684_s19 + $0x8] sm:$0xff]  ;;  %v4490_v16 = vsub.s32 3, %v4474_v10  ;;  %s5298_s28 = scalar_lea.vmem [#allocation3], %s3828_s29 }
  0x5d   : > { %v2447_v59 = vld [vmem:[%s5683_s18 + $0x10] sm:$0xff]  ;;  %v2659_v61 = vld [vmem:[%s5684_s19] sm:$0xff]  ;;  %v2664_v62 = vld [vmem:[%s5685_s20 + $0x8] sm:$0xff] }
  0x5e   : > { %v2663_v63 = vld [vmem:[%s5685_s20] sm:$0xff]  ;;  %v2662_v0 = vld [vmem:[%s5684_s19 + $0x18] sm:$0xff]  ;;  %v2661_v1 = vld [vmem:[%s5684_s19 + $0x10] sm:$0xff]  ;;  %5770 = vst [vmem:[#allocation16_spill] sm:$0xff] %v4490_v16 }
  0x5f   : > { %v2666_v2 = vld [vmem:[%s5685_s20 + $0x18] sm:$0xff]  ;;  %v2665_v3 = vld [vmem:[%s5685_s20 + $0x10] sm:$0xff]  ;;  %v1718_v4 = vld [vmem:[%s5764_s10 + $0x8] sm:$0xff] }
  0x60   : > { %1012 = vperm.xlu1 %3982, %v994_v18   ;;  %1007 = vperm.xlu0 %3981, %v993_v19   ;;  %v1717_v5 = vld [vmem:[%s5764_s10] sm:$0xff]  ;;  %v2894_v6 = vld [vmem:[%s5687_s22 + $0x8] sm:$0xff] }
  0x61   : > { %v2893_v7 = vld [vmem:[%s5687_s22] sm:$0xff] }
  0x62   : > { %v929_v17 = vld [vmem:[%s913_s8] sm:$0xf]  ;;  %s3829_s8 = sshll.u32 %s5264_s25, 4 }
  0x64   : > { %1183 = vperm.xlu1 %3982, %v1032_v20   ;;  %1178 = vperm.xlu0 %3981, %v1031_v21   ;;  %v4493_v20 = vrot.slane %v929_v17, %v4481_v13  ;;  %v4496_v21 = vrot.slane %v929_v17, %v4484_v14 }
  0x68   : > { %1219 = vperm.xlu1 %3982, %v1036_v22   ;;  %1214 = vperm.xlu0 %3981, %v1035_v23   ;;  %v4499_v22 = vrot.slane %v929_v17, %v4487_v15  ;;  %v4502_v23 = vrot.slane %v929_v17, %v4490_v16 }
  0x6c   : > { %1193 = vperm.xlu1 %3982, %v1034_v24   ;;  %1188 = vperm.xlu0 %3981, %v1033_v25  }
  0x70   : > { %1229 = vperm.xlu1 %3982, %v1038_v26   ;;  %1224 = vperm.xlu0 %3981, %v1037_v27  }
  0x74   : > { %1279 = vperm.xlu1 %3982, %v1269_v28   ;;  %1274 = vperm.xlu0 %3981, %v1268_v29  }
  0x78   : > { %1289 = vperm.xlu1 %3982, %v1271_v30   ;;  %1284 = vperm.xlu0 %3981, %v1270_v31  }
  0x7c   : > { %2140 = vperm.xlu1 %3982, %v2130_v32   ;;  %2135 = vperm.xlu0 %3981, %v2129_v33  }
  0x80   : > { %2175 = vperm.xlu1 %3982, %v2169_v34   ;;  %2145 = vperm.xlu0 %3981, %v2131_v35  }
  0x84   : > { %2150 = vperm.xlu1 %3982, %v2132_v36   ;;  %2180 = vperm.xlu0 %3981, %v2170_v37  }
  0x88   : > { %2190 = vperm.xlu1 %3982, %v2172_v38   ;;  %2185 = vperm.xlu0 %3981, %v2171_v39  }
  0x8c   : > { %1634 = vperm.xlu1 %3982, %v1484_v40   ;;  %1629 = vperm.xlu0 %3981, %v1483_v41  }
  0x90   : > { %1670 = vperm.xlu1 %3982, %v1488_v42   ;;  %1665 = vperm.xlu0 %3981, %v1487_v43  }
  0x94   : > { %1644 = vperm.xlu1 %3982, %v1486_v44   ;;  %1639 = vperm.xlu0 %3981, %v1485_v45  }
  0x98   : > { %1680 = vperm.xlu1 %3982, %v1490_v46   ;;  %1675 = vperm.xlu0 %3981, %v1489_v47  }
  0x9c   : > { %2360 = vperm.xlu1 %3982, %v2210_v48   ;;  %2355 = vperm.xlu0 %3981, %v2209_v49  }
  0xa0   : > { %2396 = vperm.xlu1 %3982, %v2214_v50   ;;  %2391 = vperm.xlu0 %3981, %v2213_v51  }
  0xa4   : > { %2370 = vperm.xlu1 %3982, %v2212_v52   ;;  %2365 = vperm.xlu0 %3981, %v2211_v53  }
  0xa8   : > { %2406 = vperm.xlu1 %3982, %v2216_v54   ;;  %2401 = vperm.xlu0 %3981, %v2215_v55  }
  0xac   : > { %2456 = vperm.xlu1 %3982, %v2446_v56   ;;  %2451 = vperm.xlu0 %3981, %v2445_v57  }
  0xb0   : > { %2466 = vperm.xlu1 %3982, %v2448_v58   ;;  %2461 = vperm.xlu0 %3981, %v2447_v59  }
  0xb4   : > { %2810 = vperm.xlu1 %3982, %v2660_v60   ;;  %2805 = vperm.xlu0 %3981, %v2659_v61  }
  0xb8   : > { %2846 = vperm.xlu1 %3982, %v2664_v62   ;;  %2841 = vperm.xlu0 %3981, %v2663_v63  }
  0xbc   : > { %2820 = vperm.xlu1 %3982, %v2662_v0   ;;  %2815 = vperm.xlu0 %3981, %v2661_v1  }
  0xc0   : > { %2856 = vperm.xlu1 %3982, %v2666_v2   ;;  %2851 = vperm.xlu0 %3981, %v2665_v3  }
  0xc4   : > { %1726 = vperm.xlu1 %3982, %v1718_v4   ;;  %1721 = vperm.xlu0 %3981, %v1717_v5  }
  0xc8   : > { %2902 = vperm.xlu1 %3982, %v2894_v6   ;;  %2897 = vperm.xlu0 %3981, %v2893_v7  }
  0xd3   : > { %v947_v11 = vpop.permute.xlu1 %946  ;;  %v937_v12 = vpop.permute.xlu0 %936 }
  0xd4   : > { %v983_v24 = vmul.f32 %v4493_v20, %v947_v11  ;;  %v984_v25 = vmul.f32 %v4496_v21, %v947_v11  ;;  %v985_v26 = vmul.f32 %v4499_v22, %v947_v11  ;;  %v986_v27 = vmul.f32 %v4502_v23, %v947_v11 }
  0xd5   : > { %v975_v34 = vmul.f32 %v4493_v20, %v937_v12  ;;  %v976_v35 = vmul.f32 %v4496_v21, %v937_v12  ;;  %v977_v36 = vmul.f32 %v4499_v22, %v937_v12  ;;  %v978_v37 = vmul.f32 %v4502_v23, %v937_v12 }
  0xd7   : > { %v998_v18 = vpop.permute.xlu1 %997  ;;  %v942_v19 = vpop.permute.xlu0 %941 }
  0xd8   : > { %v979_v28 = vmul.f32 %v4493_v20, %v942_v19  ;;  %v980_v29 = vmul.f32 %v4496_v21, %v942_v19  ;;  %v981_v30 = vmul.f32 %v4499_v22, %v942_v19  ;;  %v982_v31 = vmul.f32 %v4502_v23, %v942_v19 }
  0xd9   : > { %v1015_v42 = vadd.f32 %v998_v18, %v975_v34  ;;  %v1016_v43 = vadd.f32 %v998_v18, %v976_v35  ;;  %v1017_v44 = vadd.f32 %v998_v18, %v977_v36  ;;  %v1018_v45 = vadd.f32 %v998_v18, %v978_v37 }
  0xdb   : > { %v952_v32 = vpop.permute.xlu1 %951  ;;  %v1003_v33 = vpop.permute.xlu0 %1002 }
  0xdc   : > { %v4516_v38 = vadd.f32 %v1003_v33, %v979_v28  ;;  %v4518_v39 = vadd.f32 %v1003_v33, %v980_v29  ;;  %v4520_v40 = vadd.f32 %v1003_v33, %v981_v30  ;;  %v1022_v41 = vadd.f32 %v1003_v33, %v982_v31 }
  0xdd   : > { %v987_v46 = vmul.f32 %v4493_v20, %v952_v32  ;;  %v988_v47 = vmul.f32 %v4496_v21, %v952_v32  ;;  %v989_v48 = vmul.f32 %v4499_v22, %v952_v32  ;;  %v990_v49 = vmul.f32 %v4502_v23, %v952_v32 }
  0xde   : > { %v1039_v52 = vadd.f32 %v4516_v38, %v1015_v42  ;;  %v1048_v53 = vadd.f32 %v4518_v39, %v1016_v43  ;;  %v1057_v54 = vadd.f32 %v4520_v40, %v1017_v44  ;;  %v1066_v55 = vadd.f32 %v1022_v41, %v1018_v45 }
  0xdf   : > { %v1013_v50 = vpop.permute.xlu1 %1012  ;;  %v1008_v51 = vpop.permute.xlu0 %1007 }
  0xe0   : > { %v1023_v56 = vadd.f32 %v1008_v51, %v983_v24  ;;  %v1024_v57 = vadd.f32 %v1008_v51, %v984_v25  ;;  %v1025_v58 = vadd.f32 %v1008_v51, %v985_v26  ;;  %v1026_v59 = vadd.f32 %v1008_v51, %v986_v27 }
  0xe1   : > { %v1027_v60 = vadd.f32 %v1013_v50, %v987_v46  ;;  %v4529_v61 = vadd.f32 %v1013_v50, %v988_v47  ;;  %v1029_v62 = vadd.f32 %v1013_v50, %v989_v48  ;;  %v4531_v63 = vadd.f32 %v1013_v50, %v990_v49 }
  0xe2   : > { %v1040_v0 = vadd.f32 %v1039_v52, %v1023_v56  ;;  %v1049_v1 = vadd.f32 %v1048_v53, %v1024_v57  ;;  %v1058_v2 = vadd.f32 %v1057_v54, %v1025_v58  ;;  %v1067_v3 = vadd.f32 %v1066_v55, %v1026_v59 }
  0xe4   : > { %v1041_v4 = vadd.f32 %v1040_v0, %v1027_v60  ;;  %v1050_v5 = vadd.f32 %v1049_v1, %v4529_v61  ;;  %v1059_v6 = vadd.f32 %v1058_v2, %v1029_v62  ;;  %v1068_v7 = vadd.f32 %v1067_v3, %v4531_v63 }
  0xe6   : > { %v1042_v11 = vrot.slane %v1041_v4, 4  ;;  %v1051_v12 = vrot.slane %v1050_v5, 4  ;;  %v1060_v17 = vrot.slane %v1059_v6, 4  ;;  %v1069_v18 = vrot.slane %v1068_v7, 4 }
  0xe8   : > { %v1043_v19 = vadd.f32 %v1042_v11, %v1041_v4  ;;  %v1052_v24 = vadd.f32 %v1051_v12, %v1050_v5  ;;  %v1061_v25 = vadd.f32 %v1060_v17, %v1059_v6  ;;  %v1070_v26 = vadd.f32 %v1069_v18, %v1068_v7 }
  0xea   : > { %v1044_v27 = vrot.slane %v1043_v19, 2  ;;  %v1053_v28 = vrot.slane %v1052_v24, 2  ;;  %v1062_v29 = vrot.slane %v1061_v25, 2  ;;  %v1071_v30 = vrot.slane %v1070_v26, 2 }
  0xec   : > { %v1045_v31 = vadd.f32 %v1044_v27, %v1043_v19  ;;  %v1054_v32 = vadd.f32 %v1053_v28, %v1052_v24  ;;  %v1063_v33 = vadd.f32 %v1062_v29, %v1061_v25  ;;  %v1072_v34 = vadd.f32 %v1071_v30, %v1070_v26 }
  0xee   : > { %v1046_v35 = vrot.slane %v1045_v31, 1  ;;  %v1055_v36 = vrot.slane %v1054_v32, 1  ;;  %v1064_v37 = vrot.slane %v1063_v33, 1  ;;  %v1073_v46 = vrot.slane %v1072_v34, 1 }
  0xf0   : > { %v1047_v47 = vadd.f32 %v1046_v35, %v1045_v31  ;;  %v1056_v48 = vadd.f32 %v1055_v36, %v1054_v32  ;;  %v1065_v49 = vadd.f32 %v1064_v37, %v1063_v33  ;;  %v1074_v50 = vadd.f32 %v1073_v46, %v1072_v34 }
  0xf2   : > { %v1076_v51 = vmul.f32 0.03125, %v1047_v47  ;;  %v1077_v52 = vmul.f32 0.03125, %v1056_v48  ;;  %v1078_v53 = vmul.f32 0.03125, %v1065_v49  ;;  %v1079_v54 = vmul.f32 0.03125, %v1074_v50 }
  0xf4   : > { %v4535_v55 = vsub.f32 %v1016_v43, %v1077_v52  ;;  %v4537_v0 = vsub.f32 %v1018_v45, %v1079_v54  ;;  %v4540_v1 = vsub.f32 %v4518_v39, %v1077_v52  ;;  %v4542_v2 = vsub.f32 %v1022_v41, %v1079_v54 }
  0xf5   : > { %v4544_v3 = vsub.f32 %v1015_v42, %v1076_v51  ;;  %v4546_v4 = vsub.f32 %v1017_v44, %v1078_v53  ;;  %v4548_v5 = vsub.f32 %v1024_v57, %v1077_v52  ;;  %v4550_v6 = vsub.f32 %v1026_v59, %v1079_v54 }
  0xf6   : > { %v1097_v7 = vmul.f32 %v4535_v55, %v4535_v55  ;;  %v1099_v43 = vmul.f32 %v4537_v0, %v4537_v0  ;;  %v1101_v39 = vmul.f32 %v4540_v1, %v4540_v1  ;;  %v1103_v41 = vmul.f32 %v4542_v2, %v4542_v2 }
  0xf7   : > { %v4560_v42 = vsub.f32 %v1023_v56, %v1076_v51  ;;  %v4562_v44 = vsub.f32 %v1025_v58, %v1078_v53  ;;  %v4565_v59 = vsub.f32 %v4516_v38, %v1076_v51  ;;  %v4568_v11 = vsub.f32 %v4520_v40, %v1078_v53 }
  0xf8   : > { %v1121_v45 = vadd.f32 %v1101_v39, %v1097_v7  ;;  %v1139_v57 = vadd.f32 %v1103_v41, %v1099_v43  ;;  %v1105_v12 = vmul.f32 %v4548_v5, %v4548_v5  ;;  %v1107_v17 = vmul.f32 %v4550_v6, %v4550_v6 }
  0xf9   : > { %v1096_v56 = vmul.f32 %v4544_v3, %v4544_v3  ;;  %v1098_v58 = vmul.f32 %v4546_v4, %v4546_v4  ;;  %v4578_v18 = vsub.f32 %v1027_v60, %v1076_v51  ;;  %v4580_v19 = vsub.f32 %v1029_v62, %v1078_v53 }
  0xfa   : > { %v1100_v38 = vmul.f32 %v4565_v59, %v4565_v59  ;;  %v1102_v40 = vmul.f32 %v4568_v11, %v4568_v11  ;;  %v1122_v24 = vadd.f32 %v1121_v45, %v1105_v12  ;;  %v1140_v25 = vadd.f32 %v1139_v57, %v1107_v17 }
  0xfb   : > { %v1093_v26 = vsub.f32 %v4529_v61, %v1077_v52  ;;  %v4588_v27 = vsub.f32 %v4531_v63, %v1079_v54  ;;  %v1104_v28 = vmul.f32 %v4560_v42, %v4560_v42  ;;  %v1106_v60 = vmul.f32 %v4562_v44, %v4562_v44 }
  0xfc   : > { %v1112_v62 = vadd.f32 %v1100_v38, %v1096_v56  ;;  %v1130_v29 = vadd.f32 %v1102_v40, %v1098_v58  ;;  %v1108_v32 = vmul.f32 %v4578_v18, %v4578_v18  ;;  %v1110_v61 = vmul.f32 %v4580_v19, %v4580_v19 }
  0xfd   : > { %v1109_v30 = vmul.f32 %v1093_v26, %v1093_v26  ;;  %v1111_v31 = vmul.f32 %v4588_v27, %v4588_v27 }
  0xfe   : > { %v1113_v63 = vadd.f32 %v1112_v62, %v1104_v28  ;;  %v1131_v33 = vadd.f32 %v1130_v29, %v1106_v60 }
  0xff   : > { %v1123_v34 = vadd.f32 %v1122_v24, %v1109_v30  ;;  %v1141_v35 = vadd.f32 %v1140_v25, %v1111_v31 }
 0x100   : > { %v1114_v36 = vadd.f32 %v1113_v63, %v1108_v32  ;;  %v1132_v37 = vadd.f32 %v1131_v33, %v1110_v61  ;;  %v1184_v33 = vpop.permute.xlu1 %1183 }
 0x101   : > { %v1124_v46 = vrot.slane %v1123_v34, 4  ;;  %v1142_v47 = vrot.slane %v1141_v35, 4 }
 0x102   : > { %v1115_v48 = vrot.slane %v1114_v36, 4  ;;  %v1133_v49 = vrot.slane %v1132_v37, 4 }
 0x103   : > { %v1125_v50 = vadd.f32 %v1124_v46, %v1123_v34  ;;  %v1143_v54 = vadd.f32 %v1142_v47, %v1141_v35  ;;  %v1179_v34 = vpop.permute.xlu0 %1178 }
 0x104   : > { %v1116_v51 = vadd.f32 %v1115_v48, %v1114_v36  ;;  %v1134_v52 = vadd.f32 %v1133_v49, %v1132_v37  ;;  %v4600_v36 = vpop.permute.xlu1 %1219 }
 0x105   : > { %v1126_v53 = vrot.slane %v1125_v50, 2  ;;  %v1144_v41 = vrot.slane %v1143_v54, 2 }
 0x106   : > { %v1117_v7 = vrot.slane %v1116_v51, 2  ;;  %v1135_v43 = vrot.slane %v1134_v52, 2 }
 0x107   : > { %v1127_v39 = vadd.f32 %v1126_v53, %v1125_v50  ;;  %v1145_v17 = vadd.f32 %v1144_v41, %v1143_v54  ;;  %v1215_v37 = vpop.permute.xlu0 %1214 }
 0x108   : > { %v1118_v45 = vadd.f32 %v1117_v7, %v1116_v51  ;;  %v1136_v57 = vadd.f32 %v1135_v43, %v1134_v52  ;;  %v1194_v43 = vpop.permute.xlu1 %1193 }
 0x109   : > { %v1128_v12 = vrot.slane %v1127_v39, 1  ;;  %v1146_v40 = vrot.slane %v1145_v17, 1 }
 0x10a   : > { %v1119_v56 = vrot.slane %v1118_v45, 1  ;;  %v1137_v58 = vrot.slane %v1136_v57, 1 }
 0x10b   : > { %v1129_v38 = vadd.f32 %v1128_v12, %v1127_v39  ;;  %v1147_v28 = vadd.f32 %v1146_v40, %v1145_v17  ;;  %v1189_v41 = vpop.permute.xlu0 %1188 }
 0x10c   : > { %v1120_v24 = vadd.f32 %v1119_v56, %v1118_v45  ;;  %v1138_v25 = vadd.f32 %v1137_v58, %v1136_v57 }
 0x10d   : > { %v1149_v60 = vmul.f32 0.03125, %v1129_v38  ;;  %v1151_v30 = vmul.f32 0.03125, %v1147_v28 }
 0x10e   : > { %v1148_v62 = vmul.f32 0.03125, %v1120_v24  ;;  %v1150_v29 = vmul.f32 0.03125, %v1138_v25 }
 0x10f   : > { %v1153_v31 = vadd.f32 1e-05, %v1149_v60  ;;  %v1155_v63 = vadd.f32 1e-05, %v1151_v30  ;;  %v1225_v25 = vpop.permute.xlu0 %1224 }
 0x110   : > { %v1152_v32 = vadd.f32 1e-05, %v1148_v62  ;;  %v1154_v61 = vadd.f32 1e-05, %v1150_v29 }
 0x111   : > { %3983 = vrsqrt.f32 %v1153_v31  ;;  %v1230_v31 = vpop.permute.xlu1 %1229 }
 0x112   : > { %3985 = vrsqrt.f32 %v1152_v32 }
 0x113   : > { %3987 = vrsqrt.f32 %v1154_v61 }
 0x114   : > { %3989 = vrsqrt.f32 %v1155_v63 }
 0x11b   : > { %v3984_v35 = vpop.eup %3983 }
 0x11c   : > { %v3986_v46 = vpop.eup %3985  ;;  %v1173_v48 = vmul.f32 %v3984_v35, %v1093_v26  ;;  %v1161_v50 = vmul.f32 %v3984_v35, %v4535_v55  ;;  %v1165_v51 = vmul.f32 %v3984_v35, %v4540_v1  ;;  %v1169_v54 = vmul.f32 %v3984_v35, %v4548_v5 }
 0x11d   : > { %v3988_v47 = vpop.eup %3987  ;;  %v1164_v52 = vmul.f32 %v3986_v46, %v4565_v59  ;;  %v1160_v53 = vmul.f32 %v3986_v46, %v4544_v3  ;;  %v1172_v39 = vmul.f32 %v3986_v46, %v4578_v18  ;;  %v1168_v45 = vmul.f32 %v3986_v46, %v4560_v42 }
 0x11e   : > { %v3990_v49 = vpop.eup %3989  ;;  %v1166_v7 = vmul.f32 %v3988_v47, %v4568_v11  ;;  %v1162_v26 = vmul.f32 %v3988_v47, %v4546_v4  ;;  %v1174_v55 = vmul.f32 %v3988_v47, %v4580_v19  ;;  %v1209_v57 = vmul.f32 %v1194_v43, %v1173_v48 }
 0x11f   : > { %v1171_v1 = vmul.f32 %v3990_v49, %v4550_v6  ;;  %v1197_v59 = vmul.f32 %v1179_v34, %v1161_v50  ;;  %v1201_v12 = vmul.f32 %v1184_v33, %v1165_v51  ;;  %v1163_v3 = vmul.f32 %v3990_v49, %v4537_v0 }
 0x120   : > { %v1167_v5 = vmul.f32 %v3990_v49, %v4542_v2  ;;  %v1200_v11 = vmul.f32 %v1184_v33, %v1164_v52  ;;  %v1196_v17 = vmul.f32 %v1179_v34, %v1160_v53  ;;  %v1175_v18 = vmul.f32 %v3990_v49, %v4588_v27 }
 0x121   : > { %v1205_v56 = vmul.f32 %v1189_v41, %v1169_v54  ;;  %v1233_v58 = vadd.f32 %v1215_v37, %v1197_v59  ;;  %v1237_v42 = vadd.f32 %v4600_v36, %v1201_v12  ;;  %v1199_v4 = vmul.f32 %v1179_v34, %v1163_v3 }
 0x122   : > { %v1203_v38 = vmul.f32 %v1184_v33, %v1167_v5  ;;  %v1198_v19 = vmul.f32 %v1179_v34, %v1162_v26  ;;  %v1208_v40 = vmul.f32 %v1194_v43, %v1172_v39  ;;  %v1170_v6 = vmul.f32 %v3988_v47, %v4562_v44 }
 0x123   : > { %v1207_v24 = vmul.f32 %v1189_v41, %v1171_v1  ;;  %v1249_v28 = vmax.f32 %v1233_v58, 0.0  ;;  %v1253_v0 = vmax.f32 %v1237_v42, 0.0  ;;  %v1235_v60 = vadd.f32 %v1215_v37, %v1199_v4  ;;  %v1264_v58 = vld [vmem:[%s5771_s5] sm:$0xff]  ;;  %v1265_v42 = vld [vmem:[%s5771_s5 + $0x8] sm:$0xff]  ;;  %v1266_v4 = vld [vmem:[%s5771_s5 + $0x10] sm:$0xff] }
 0x124   : > { %v1239_v2 = vadd.f32 %v4600_v36, %v1203_v38  ;;  %v1202_v62 = vmul.f32 %v1184_v33, %v1166_v7  ;;  %v1211_v29 = vmul.f32 %v1194_v43, %v1175_v18  ;;  %v1204_v27 = vmul.f32 %v1189_v41, %v1168_v45  ;;  %v1267_v38 = vld [vmem:[%s5771_s5 + $0x18] sm:$0xff] }
 0x125   : > { %v1241_v30 = vadd.f32 %v1225_v25, %v1205_v56  ;;  %v3868_v32 = vpack.c.bf16 %v1253_v0, %v1249_v28  ;;  %v1251_v61 = vmax.f32 %v1235_v60, 0.0  ;;  %v1232_v35 = vadd.f32 %v1215_v37, %v1196_v17 }
 0x126   : > { %v1255_v63 = vmax.f32 %v1239_v2, 0.0  ;;  %v1210_v34 = vmul.f32 %v1194_v43, %v1174_v55  ;;  %v1206_v46 = vmul.f32 %v1189_v41, %v1170_v6  ;;  %v1245_v48 = vadd.f32 %v1230_v31, %v1209_v57 }
 0x127   : > { %v1243_v44 = vadd.f32 %v1225_v25, %v1207_v24  ;;  %3869 = vmatprep.subr.bf16.mxu0 %v3868_v32  ;;  %v1236_v49 = vadd.f32 %v4600_v36, %v1200_v11  ;;  %v1248_v50 = vmax.f32 %v1232_v35, 0.0  ;;  %v1234_v51 = vadd.f32 %v1215_v37, %v1198_v19  ;;  %v4649_v19 = vpop.permute.xlu0 %1274 }
 0x128   : > { %v3876_v47 = vpack.c.bf16 %v1255_v63, %v1251_v61  ;;  %v1247_v52 = vadd.f32 %v1230_v31, %v1211_v29  ;;  %v1240_v33 = vadd.f32 %v1225_v25, %v1204_v27  ;;  %v1238_v54 = vadd.f32 %v4600_v36, %v1202_v62 }
 0x129   : > { %v1252_v53 = vmax.f32 %v1236_v49, 0.0  ;;  %v1250_v7 = vmax.f32 %v1234_v51, 0.0  ;;  %v1257_v39 = vmax.f32 %v1241_v30, 0.0  ;;  %v1244_v45 = vadd.f32 %v1230_v31, %v1208_v40  ;;  %v4651_v40 = vpop.permute.xlu1 %1279 }
 0x12a   : > { %3877 = vmatprep.subr.bf16.mxu1 %v3876_v47  ;;  %v1246_v26 = vadd.f32 %v1230_v31, %v1210_v34  ;;  %v1242_v43 = vadd.f32 %v1225_v25, %v1206_v46  ;;  %v1254_v55 = vmax.f32 %v1238_v54, 0.0  ;;  %v1261_v57 = vmax.f32 %v1245_v48, 0.0 }
 0x12b   : > { %v3870_v41 = vpack.c.bf16 %v1252_v53, %v1248_v50  ;;  %v1259_v1 = vmax.f32 %v1243_v44, 0.0  ;;  %v1263_v3 = vmax.f32 %v1247_v52, 0.0  ;;  %v1256_v37 = vmax.f32 %v1240_v33, 0.0  ;;  %v4653_v6 = vpop.permute.xlu0 %1284 }
 0x12c   : > { %v3878_v59 = vpack.c.bf16 %v1254_v55, %v1250_v7  ;;  %v3872_v12 = vpack.c.bf16 %v1261_v57, %v1257_v39  ;;  %v1260_v11 = vmax.f32 %v1244_v45, 0.0  ;;  %v1258_v17 = vmax.f32 %v1242_v43, 0.0 }
 0x12d   : > { %3871 = vmatpush1.bf16.msra.mxu0 %v3870_v41  ;;  %v3880_v5 = vpack.c.bf16 %v1263_v3, %v1259_v1  ;;  %v1262_v36 = vmax.f32 %v1246_v26, 0.0  ;;  %v4655_v24 = vpop.permute.xlu1 %1289 }
 0x12e   : > { %3879 = vmatpush1.bf16.msra.mxu1 %v3878_v59  ;;  %3873 = vmatprep.subr.bf16.mxu0 %v3872_v12  ;;  %v3874_v18 = vpack.c.bf16 %v1260_v11, %v1256_v37 }
 0x12f   : > { %3881 = vmatprep.subr.bf16.mxu1 %v3880_v5  ;;  %v3882_v56 = vpack.c.bf16 %v1262_v36, %v1258_v17  ;;  %v2136_v25 = vpop.permute.xlu0 %2135 }
 0x130   : > { %v2153_v27 = vmul.f32 %v2136_v25, %v4493_v20  ;;  %v2154_v30 = vmul.f32 %v2136_v25, %v4496_v21  ;;  %v2155_v44 = vmul.f32 %v2136_v25, %v4499_v22  ;;  %v2156_v47 = vmul.f32 %v2136_v25, %v4502_v23 }
 0x131   : > { %3875 = vmatpush1.bf16.msra.mxu0 %v3874_v18  ;;  %v2141_v28 = vpop.permute.xlu1 %2140 }
 0x132   : > { %3883 = vmatpush1.bf16.msra.mxu1 %v3882_v56  ;;  %v2157_v62 = vmul.f32 %v2141_v28, %v4493_v20  ;;  %v2158_v29 = vmul.f32 %v2141_v28, %v4496_v21  ;;  %v2159_v46 = vmul.f32 %v2141_v28, %v4499_v22  ;;  %v2160_v48 = vmul.f32 %v2141_v28, %v4502_v23 }
 0x133   : > { %v2146_v0 = vpop.permute.xlu0 %2145 }
 0x134   : > { %3834 = vmatmul.mubr.msk.f32.vlgmr.msra.gmra.mrb[0].mxu0 %vm1292_vm0, %v1264_v58  ;;  %v2161_v61 = vmul.f32 %v2146_v0, %v4493_v20  ;;  %v2162_v63 = vmul.f32 %v2146_v0, %v4496_v21  ;;  %v2163_v33 = vmul.f32 %v2146_v0, %v4499_v22  ;;  %v2164_v53 = vmul.f32 %v2146_v0, %v4502_v23 }
 0x135   : > { %3838 = vmatmul.mubr.msk.f32.vlgmr.msra.gmra.mrb[0].mxu1 %vm1292_vm0, %v1264_v58  ;;  %1375 = vmatprep.mubr.f32.mxu0 %v5711_v9  ;;  %v2176_v60 = vpop.permute.xlu1 %2175 }
 0x136   : > { %1464 = vmatprep.mubr.f32.mxu1 %v5711_v9  ;;  %v2193_v49 = vadd.f32 %v2176_v60, %v2153_v27  ;;  %v2194_v50 = vadd.f32 %v2176_v60, %v2154_v30  ;;  %v2195_v26 = vadd.f32 %v2176_v60, %v2155_v44  ;;  %v2196_v43 = vadd.f32 %v2176_v60, %v2156_v47 }
 0x137   : > { %v2181_v2 = vpop.permute.xlu0 %2180 }
 0x138   : > { %3835 = vmatmul.mubr.msk.f32.gmra.mrb[2].mxu0 %vm1292_vm0, %v1265_v42  ;;  %v4663_v35 = vadd.f32 %v2181_v2, %v2157_v62  ;;  %v4665_v34 = vadd.f32 %v2181_v2, %v2158_v29  ;;  %v2199_v54 = vadd.f32 %v2181_v2, %v2159_v46  ;;  %v2200_v7 = vadd.f32 %v2181_v2, %v2160_v48 }
 0x139   : > { %3839 = vmatmul.mubr.msk.f32.gmra.mrb[2].mxu1 %vm1292_vm0, %v1265_v42  ;;  %1381 = vmatprep.mubr.f32.mxu0 %v5711_v9  ;;  %v2151_v31 = vpop.permute.xlu1 %2150 }
 0x13a   : > { %1470 = vmatprep.mubr.f32.mxu1 %v5711_v9  ;;  %v2217_v39 = vadd.f32 %v4663_v35, %v2193_v49  ;;  %v2226_v45 = vadd.f32 %v4665_v34, %v2194_v50  ;;  %v2165_v1 = vmul.f32 %v2151_v31, %v4493_v20  ;;  %v2166_v59 = vmul.f32 %v2151_v31, %v4496_v21 }
 0x13b   : > { %v2186_v32 = vpop.permute.xlu0 %2185  ;;  %v2235_v37 = vadd.f32 %v2199_v54, %v2195_v26  ;;  %v2244_v5 = vadd.f32 %v2200_v7, %v2196_v43  ;;  %v2167_v36 = vmul.f32 %v2151_v31, %v4499_v22  ;;  %v2168_v18 = vmul.f32 %v2151_v31, %v4502_v23 }
 0x13c   : > { %3836 = vmatmul.mubr.msk.f32.gmra.mrb[4].mxu0 %vm1292_vm0, %v1266_v4  ;;  %v4671_v51 = vadd.f32 %v2186_v32, %v2161_v61  ;;  %v4673_v52 = vadd.f32 %v2186_v32, %v2162_v63  ;;  %v4679_v55 = vadd.f32 %v2186_v32, %v2163_v33  ;;  %v4681_v57 = vadd.f32 %v2186_v32, %v2164_v53 }
 0x13d   : > { %3840 = vmatmul.mubr.msk.f32.gmra.mrb[4].mxu1 %vm1292_vm0, %v1266_v4  ;;  %1387 = vmatprep.mubr.f32.mxu0 %v5711_v9  ;;  %v2191_v41 = vpop.permute.xlu1 %2190 }
 0x13e   : > { %1476 = vmatprep.mubr.f32.mxu1 %v5711_v9  ;;  %v2218_v12 = vadd.f32 %v2217_v39, %v4671_v51  ;;  %v2227_v3 = vadd.f32 %v2226_v45, %v4673_v52  ;;  %v2205_v11 = vadd.f32 %v2191_v41, %v2165_v1  ;;  %v2206_v17 = vadd.f32 %v2191_v41, %v2166_v59 }
 0x13f   : > { %v2236_v56 = vadd.f32 %v2235_v37, %v4679_v55  ;;  %v2245_v58 = vadd.f32 %v2244_v5, %v4681_v57  ;;  %v2207_v4 = vadd.f32 %v2191_v41, %v2167_v36  ;;  %v2208_v21 = vadd.f32 %v2191_v41, %v2168_v18 }
 0x140   : > { %3837 = vmatmul.mubr.msk.f32.gmra.mrb[6].mxu0 %vm1292_vm0, %v1267_v38  ;;  %v2219_v42 = vadd.f32 %v2218_v12, %v2205_v11  ;;  %v2228_v20 = vadd.f32 %v2227_v3, %v2206_v17 }
 0x141   : > { %3841 = vmatmul.mubr.msk.f32.gmra.mrb[6].mxu1 %vm1292_vm0, %v1267_v38  ;;  %1799 = vmatprep.mubr.f32.mxu0 %v5711_v9  ;;  %v2237_v38 = vadd.f32 %v2236_v56, %v2207_v4  ;;  %v2246_v25 = vadd.f32 %v2245_v58, %v2208_v21 }
 0x142   : > { %1876 = vmatprep.mubr.f32.mxu1 %v5711_v9  ;;  %v2220_v28 = vrot.slane %v2219_v42, 4  ;;  %v2229_v0 = vrot.slane %v2228_v20, 4 }
 0x143   : > { %v2238_v60 = vrot.slane %v2237_v38, 4  ;;  %v2247_v2 = vrot.slane %v2246_v25, 4 }
 0x144   : > { %v2221_v62 = vadd.f32 %v2220_v28, %v2219_v42  ;;  %v2230_v29 = vadd.f32 %v2229_v0, %v2228_v20 }
 0x145   : > { %v2239_v27 = vadd.f32 %v2238_v60, %v2237_v38  ;;  %v2248_v22 = vadd.f32 %v2247_v2, %v2246_v25 }
 0x146   : > { %v2222_v30 = vrot.slane %v2221_v62, 2  ;;  %v2231_v23 = vrot.slane %v2230_v29, 2 }
 0x147   : > { %v2240_v31 = vrot.slane %v2239_v27, 2  ;;  %v2249_v32 = vrot.slane %v2248_v22, 2 }
 0x148   : > { %v2223_v61 = vadd.f32 %v2222_v30, %v2221_v62  ;;  %v2232_v63 = vadd.f32 %v2231_v23, %v2230_v29 }
 0x149   : > { %v2241_v46 = vadd.f32 %v2240_v31, %v2239_v27  ;;  %v2250_v48 = vadd.f32 %v2249_v32, %v2248_v22 }
 0x14a   : > { %v2224_v44 = vrot.slane %v2223_v61, 1  ;;  %v2233_v47 = vrot.slane %v2232_v63, 1 }
 0x14b   : > { %v2242_v33 = vrot.slane %v2241_v46, 1  ;;  %v2251_v53 = vrot.slane %v2250_v48, 1 }
 0x14c   : > { %v2225_v39 = vadd.f32 %v2224_v44, %v2223_v61  ;;  %v2234_v45 = vadd.f32 %v2233_v47, %v2232_v63 }
 0x14d   : > { %v2243_v41 = vadd.f32 %v2242_v33, %v2241_v46  ;;  %v2252_v1 = vadd.f32 %v2251_v53, %v2250_v48 }
 0x14e   : > { %v2253_v59 = vmul.f32 0.03125, %v2225_v39  ;;  %v2254_v12 = vmul.f32 0.03125, %v2234_v45 }
 0x14f   : > { %v2255_v3 = vmul.f32 0.03125, %v2243_v41  ;;  %v2256_v37 = vmul.f32 0.03125, %v2252_v1 }
 0x150   : > { %v4691_v5 = vsub.f32 %v2193_v49, %v2253_v59  ;;  %v4693_v36 = vsub.f32 %v2194_v50, %v2254_v12  ;;  %v4696_v18 = vsub.f32 %v4663_v35, %v2253_v59  ;;  %v4699_v56 = vsub.f32 %v4665_v34, %v2254_v12 }
 0x151   : > { %v4701_v58 = vsub.f32 %v2195_v26, %v2255_v3  ;;  %v4703_v42 = vsub.f32 %v2196_v43, %v2256_v37  ;;  %v4705_v20 = vsub.f32 %v2199_v54, %v2255_v3  ;;  %v4707_v38 = vsub.f32 %v2200_v7, %v2256_v37 }
 0x152   : > { %v2273_v49 = vmul.f32 %v4691_v5, %v4691_v5  ;;  %v2274_v50 = vmul.f32 %v4693_v36, %v4693_v36  ;;  %v2277_v35 = vmul.f32 %v4696_v18, %v4696_v18  ;;  %v2278_v34 = vmul.f32 %v4699_v56, %v4699_v56 }
 0x153   : > { %v4718_v26 = vsub.f32 %v4671_v51, %v2253_v59  ;;  %v4721_v54 = vsub.f32 %v4673_v52, %v2254_v12  ;;  %v2275_v7 = vmul.f32 %v4701_v58, %v4701_v58  ;;  %v2276_v43 = vmul.f32 %v4703_v42, %v4703_v42 }
 0x154   : > { %v2279_v25 = vmul.f32 %v4705_v20, %v4705_v20  ;;  %v2280_v28 = vmul.f32 %v4707_v38, %v4707_v38  ;;  %v2289_v0 = vadd.f32 %v2277_v35, %v2273_v49  ;;  %v2298_v60 = vadd.f32 %v2278_v34, %v2274_v50 }
 0x155   : > { %v4732_v51 = vsub.f32 %v4679_v55, %v2255_v3  ;;  %v4734_v2 = vsub.f32 %v2205_v11, %v2253_v59  ;;  %v4737_v52 = vsub.f32 %v4681_v57, %v2256_v37  ;;  %v4739_v62 = vsub.f32 %v2206_v17, %v2254_v12 }
 0x156   : > { %v2281_v29 = vmul.f32 %v4718_v26, %v4718_v26  ;;  %v2282_v27 = vmul.f32 %v4721_v54, %v4721_v54  ;;  %v2307_v23 = vadd.f32 %v2279_v25, %v2275_v7  ;;  %v2316_v31 = vadd.f32 %v2280_v28, %v2276_v43 }
 0x157   : > { %5772 = vst [vmem:[#allocation17_spill] sm:$0xff] %v4737_v52  ;;  %v4745_v32 = vsub.f32 %v2207_v4, %v2255_v3  ;;  %v4747_v55 = vsub.f32 %v2208_v21, %v2256_v37  ;;  %v2283_v57 = vmul.f32 %v4732_v51, %v4732_v51  ;;  %v2284_v11 = vmul.f32 %v4737_v52, %v4737_v52 }
 0x158   : > { %v2290_v22 = vadd.f32 %v2289_v0, %v2281_v29  ;;  %v2299_v30 = vadd.f32 %v2298_v60, %v2282_v27  ;;  %v2285_v17 = vmul.f32 %v4734_v2, %v4734_v2  ;;  %v2286_v61 = vmul.f32 %v4739_v62, %v4739_v62 }
 0x159   : > { %v2308_v48 = vadd.f32 %v2307_v23, %v2283_v57  ;;  %v2317_v44 = vadd.f32 %v2316_v31, %v2284_v11  ;;  %v2287_v4 = vmul.f32 %v4745_v32, %v4745_v32  ;;  %v2288_v21 = vmul.f32 %v4747_v55, %v4747_v55 }
 0x15a   : > { %v2291_v63 = vadd.f32 %v2290_v22, %v2285_v17  ;;  %v2300_v46 = vadd.f32 %v2299_v30, %v2286_v61 }
 0x15b   : > { %v2309_v53 = vadd.f32 %v2308_v48, %v2287_v4  ;;  %v2318_v39 = vadd.f32 %v2317_v44, %v2288_v21 }
 0x15c   : > { %v2292_v47 = vrot.slane %v2291_v63, 4  ;;  %v2301_v33 = vrot.slane %v2300_v46, 4 }
 0x15d   : > { %v2310_v37 = vrot.slane %v2309_v53, 4  ;;  %v2319_v49 = vrot.slane %v2318_v39, 4 }
 0x15e   : > { %v2293_v12 = vadd.f32 %v2292_v47, %v2291_v63  ;;  %v2302_v3 = vadd.f32 %v2301_v33, %v2300_v46 }
 0x15f   : > { %v2311_v31 = vadd.f32 %v2310_v37, %v2309_v53  ;;  %v2320_v63 = vadd.f32 %v2319_v49, %v2318_v39 }
 0x160   : > { %v2294_v61 = vrot.slane %v2293_v12, 2  ;;  %v2303_v4 = vrot.slane %v2302_v3, 2 }
 0x161   : > { %v2312_v39 = vrot.slane %v2311_v31, 2  ;;  %v2321_v37 = vrot.slane %v2320_v63, 2 }
 0x207   : > { %v1371_v45 = vpop.f32.mrb[0].mxu0 }
 0x208   : > { %v1460_v41 = vpop.f32.mrb[0].mxu1  ;;  %v1373_v1 = vpop.f32.mrb[1].mxu0  ;;  %v4762_v34 = vadd.f32 %v1371_v45, %v4649_v19 }
 0x209   : > { %v1462_v59 = vpop.f32.mrb[1].mxu1  ;;  %v4765_v7 = vadd.f32 %v1460_v41, %v4649_v19  ;;  %v4774_v60 = vadd.f32 %v1373_v1, %v4649_v19 }
 0x20a   : > { %v4777_v29 = vadd.f32 %v1462_v59, %v4649_v19  ;;  %v2295_v59 = vadd.f32 %v2294_v61, %v2293_v12  ;;  %v2322_v61 = vadd.f32 %v2321_v37, %v2320_v63  ;;  %v4819_v37 = vpop.permute.xlu1 %1634 }
 0x20b   : > { %v1377_v50 = vpop.f32.mrb[2].mxu0 }
 0x20c   : > { %v1466_v35 = vpop.f32.mrb[2].mxu1  ;;  %v4768_v43 = vadd.f32 %v1377_v50, %v4651_v40  ;;  %v1379_v28 = vpop.f32.mrb[3].mxu0 }
 0x20d   : > { %v4771_v25 = vadd.f32 %v1466_v35, %v4651_v40  ;;  %v1468_v0 = vpop.f32.mrb[3].mxu1  ;;  %v4780_v27 = vadd.f32 %v1379_v28, %v4651_v40  ;;  %v2304_v28 = vadd.f32 %v2303_v4, %v2302_v3 }
 0x20e   : > { %v4783_v22 = vadd.f32 %v1468_v0, %v4651_v40  ;;  %v1491_v30 = vadd.f32 %v4768_v43, %v4762_v34 }
 0x20f   : > { %v1509_v23 = vadd.f32 %v4771_v25, %v4765_v7  ;;  %v1500_v57 = vadd.f32 %v4780_v27, %v4774_v60  ;;  %v1383_v11 = vpop.f32.mrb[4].mxu0  ;;  %v2305_v3 = vrot.slane %v2304_v28, 1 }
 0x210   : > { %v1518_v19 = vadd.f32 %v4783_v22, %v4777_v29  ;;  %v1472_v17 = vpop.f32.mrb[4].mxu1  ;;  %v4794_v40 = vadd.f32 %v1383_v11, %v4653_v6  ;;  %v1385_v48 = vpop.f32.mrb[5].mxu0 }
 0x211   : > { %v4797_v46 = vadd.f32 %v1472_v17, %v4653_v6  ;;  %v1474_v44 = vpop.f32.mrb[5].mxu1  ;;  %v4800_v21 = vadd.f32 %v1385_v48, %v4653_v6  ;;  %v2296_v17 = vrot.slane %v2295_v59, 1 }
 0x212   : > { %v4803_v47 = vadd.f32 %v1474_v44, %v4653_v6  ;;  %v1492_v33 = vadd.f32 %v1491_v30, %v4794_v40 }
 0x213   : > { %v1510_v53 = vadd.f32 %v1509_v23, %v4797_v46  ;;  %v1501_v45 = vadd.f32 %v1500_v57, %v4800_v21  ;;  %v1389_v1 = vpop.f32.mrb[6].mxu0  ;;  %v2313_v57 = vadd.f32 %v2312_v39, %v2311_v31  ;;  %v2297_v16 = vadd.f32 %v2296_v17, %v2295_v59 }
 0x214   : > { %v1519_v41 = vadd.f32 %v1518_v19, %v4803_v47  ;;  %v1390_v49 = vadd.f32 %v1389_v1, %v4655_v24  ;;  %v1478_v50 = vpop.f32.mrb[6].mxu1  ;;  %v1391_v35 = vpop.f32.mrb[7].mxu0 }
 0x215   : > { %v1479_v6 = vadd.f32 %v1478_v50, %v4655_v24  ;;  %v4812_v0 = vadd.f32 %v1391_v35, %v4655_v24  ;;  %v1480_v30 = vpop.f32.mrb[7].mxu1  ;;  %v2314_v8 = vrot.slane %v2313_v57, 1 }
 0x216   : > { %v1493_v23 = vadd.f32 %v1492_v33, %v1390_v49  ;;  %v4815_v11 = vadd.f32 %v1480_v30, %v4655_v24  ;;  %v2323_v24 = vrot.slane %v2322_v61, 1 }
 0x217   : > { %v1511_v19 = vadd.f32 %v1510_v53, %v1479_v6  ;;  %v1502_v12 = vadd.f32 %v1501_v45, %v4812_v0  ;;  %v2306_v53 = vadd.f32 %v2305_v3, %v2304_v28 }
 0x218   : > { %v1494_v48 = vrot.slane %v1493_v23, 4  ;;  %v1520_v44 = vadd.f32 %v1519_v41, %v4815_v11  ;;  %v2315_v41 = vadd.f32 %v2314_v8, %v2313_v57  ;;  %v2324_v10 = vadd.f32 %v2323_v24, %v2322_v61  ;;  %v4823_v8 = vpop.permute.xlu1 %1670 }
 0x219   : > { %v1512_v4 = vrot.slane %v1511_v19, 4  ;;  %v1503_v1 = vrot.slane %v1502_v12, 4 }
 0x21a   : > { %v1495_v50 = vadd.f32 %v1494_v48, %v1493_v23  ;;  %v1521_v35 = vrot.slane %v1520_v44, 4  ;;  %v2325_v23 = vmul.f32 0.03125, %v2297_v16 }
 0x21b   : > { %v1513_v9 = vadd.f32 %v1512_v4, %v1511_v19  ;;  %v1504_v33 = vadd.f32 %v1503_v1, %v1502_v12  ;;  %v2326_v19 = vmul.f32 0.03125, %v2306_v53  ;;  %v2327_v1 = vmul.f32 0.03125, %v2315_v41 }
 0x21c   : > { %v1496_v30 = vrot.slane %v1495_v50, 2  ;;  %v1522_v31 = vadd.f32 %v1521_v35, %v1520_v44  ;;  %v4821_v44 = vpop.permute.xlu0 %1629  ;;  %v2329_v35 = vadd.f32 1e-05, %v2325_v23  ;;  %v4870_v41 = vpop.permute.xlu1 %1644 }
 0x21d   : > { %v1514_v39 = vrot.slane %v1513_v9, 2  ;;  %v1505_v45 = vrot.slane %v1504_v33, 2 }
 0x21e   : > { %v1497_v15 = vadd.f32 %v1496_v30, %v1495_v50  ;;  %v1523_v63 = vrot.slane %v1522_v31, 2  ;;  %v2328_v50 = vmul.f32 0.03125, %v2324_v10  ;;  %3991 = vrsqrt.f32 %v2329_v35 }
 0x21f   : > { %v1515_v13 = vadd.f32 %v1514_v39, %v1513_v9  ;;  %v1506_v14 = vadd.f32 %v1505_v45, %v1504_v33  ;;  %v2330_v9 = vadd.f32 1e-05, %v2326_v19 }
 0x220   : > { %v1498_v48 = vrot.slane %v1497_v15, 1  ;;  %v1524_v52 = vadd.f32 %v1523_v63, %v1522_v31 }
 0x221   : > { %v1516_v12 = vrot.slane %v1515_v13, 1  ;;  %v1507_v59 = vrot.slane %v1506_v14, 1  ;;  %3993 = vrsqrt.f32 %v2330_v9 }
 0x222   : > { %v1499_v17 = vadd.f32 %v1498_v48, %v1497_v15  ;;  %v1525_v4 = vrot.slane %v1524_v52, 1 }
 0x223   : > { %v1517_v28 = vadd.f32 %v1516_v12, %v1515_v13  ;;  %v1508_v3 = vadd.f32 %v1507_v59, %v1506_v14 }
 0x224   : > { %v1527_v30 = vmul.f32 0.03125, %v1499_v17  ;;  %v1526_v61 = vadd.f32 %v1525_v4, %v1524_v52 }
 0x225   : > { %v1529_v57 = vmul.f32 0.03125, %v1517_v28  ;;  %v1528_v16 = vmul.f32 0.03125, %v1508_v3 }
 0x226   : > { %v4826_v33 = vsub.f32 %v4762_v34, %v1527_v30  ;;  %v4829_v15 = vsub.f32 %v4768_v43, %v1527_v30  ;;  %v4832_v24 = vsub.f32 %v4794_v40, %v1527_v30  ;;  %v4834_v13 = vsub.f32 %v1390_v49, %v1527_v30  ;;  %v4851_v49 = vpop.permute.xlu0 %1665 }
 0x227   : > { %v4837_v10 = vsub.f32 %v4765_v7, %v1529_v57  ;;  %v4840_v14 = vsub.f32 %v4771_v25, %v1529_v57  ;;  %v4843_v31 = vsub.f32 %v4797_v46, %v1529_v57  ;;  %v4845_v52 = vsub.f32 %v1479_v6, %v1529_v57 }
 0x228   : > { %v2331_v34 = vadd.f32 1e-05, %v2327_v1  ;;  %v1547_v43 = vmul.f32 %v4826_v33, %v4826_v33  ;;  %v1551_v40 = vmul.f32 %v4829_v15, %v4829_v15  ;;  %v1555_v7 = vmul.f32 %v4832_v24, %v4832_v24 }
 0x229   : > { %v1559_v25 = vmul.f32 %v4834_v13, %v4834_v13  ;;  %v1549_v46 = vmul.f32 %v4837_v10, %v4837_v10  ;;  %v1553_v6 = vmul.f32 %v4840_v14, %v4840_v14  ;;  %v4862_v39 = vsub.f32 %v4774_v60, %v1528_v16 }
 0x22a   : > { %v1563_v53 = vadd.f32 %v1551_v40, %v1547_v43  ;;  %v4865_v45 = vsub.f32 %v4780_v27, %v1528_v16  ;;  %v4868_v63 = vsub.f32 %v4800_v21, %v1528_v16  ;;  %v1557_v23 = vmul.f32 %v4843_v31, %v4843_v31  ;;  %v4897_v57 = vpop.permute.xlu0 %1639 }
 0x22b   : > { %v1581_v48 = vadd.f32 %v1553_v6, %v1549_v46  ;;  %v4875_v19 = vsub.f32 %v4812_v0, %v1528_v16  ;;  %v1530_v12 = vmul.f32 0.03125, %v1526_v61  ;;  %v1561_v60 = vmul.f32 %v4845_v52, %v4845_v52  ;;  %v3992_v46 = vpop.eup %3991 }
 0x22c   : > { %v1564_v59 = vadd.f32 %v1563_v53, %v1555_v7  ;;  %v1548_v27 = vmul.f32 %v4862_v39, %v4862_v39  ;;  %v1552_v21 = vmul.f32 %v4865_v45, %v4865_v45  ;;  %v1556_v4 = vmul.f32 %v4868_v63, %v4868_v63  ;;  %v4905_v7 = vpop.permute.xlu1 %1680 }
 0x22d   : > { %v1582_v17 = vadd.f32 %v1581_v48, %v1557_v23  ;;  %v4886_v28 = vsub.f32 %v4777_v29, %v1530_v12  ;;  %v4889_v0 = vsub.f32 %v4783_v22, %v1530_v12  ;;  %v4892_v35 = vsub.f32 %v4803_v47, %v1530_v12 }
 0x22e   : > { %v1565_v3 = vadd.f32 %v1564_v59, %v1559_v25  ;;  %v1572_v1 = vadd.f32 %v1552_v21, %v1548_v27  ;;  %v4895_v30 = vsub.f32 %v4815_v11, %v1530_v12  ;;  %v2332_v16 = vadd.f32 1e-05, %v2328_v50 }
 0x22f   : > { %5773 = vst [vmem:[#allocation18_spill] sm:$0xff] %v4892_v35  ;;  %v1583_v61 = vadd.f32 %v1582_v17, %v1561_v60  ;;  %v1550_v43 = vmul.f32 %v4886_v28, %v4886_v28  ;;  %v1554_v29 = vmul.f32 %v4889_v0, %v4889_v0  ;;  %v1560_v40 = vmul.f32 %v4875_v19, %v4875_v19  ;;  %v4911_v60 = vpop.permute.xlu0 %1675 }
 0x230   : > { %v1566_v22 = vrot.slane %v1565_v3, 4  ;;  %v1573_v47 = vadd.f32 %v1572_v1, %v1556_v4  ;;  %3995 = vrsqrt.f32 %v2331_v34  ;;  %v1558_v50 = vmul.f32 %v4892_v35, %v4892_v35  ;;  %5774 = vst [vmem:[#allocation19_spill] sm:$0xff] %v4911_v60  ;;  %v2361_v4 = vpop.permute.xlu1 %2360 }
 0x231   : > { %v1584_v11 = vrot.slane %v1583_v61, 4  ;;  %v1590_v25 = vadd.f32 %v1554_v29, %v1550_v43  ;;  %3997 = vrsqrt.f32 %v2332_v16  ;;  %v1562_v9 = vmul.f32 %v4895_v30, %v4895_v30 }
 0x232   : > { %v1567_v6 = vadd.f32 %v1566_v22, %v1565_v3  ;;  %v1574_v53 = vadd.f32 %v1573_v47, %v1560_v40  ;;  %v2341_v40 = vmul.f32 %v3992_v46, %v4696_v18  ;;  %v2337_v60 = vmul.f32 %v3992_v46, %v4691_v5 }
 0x233   : > { %v1585_v23 = vadd.f32 %v1584_v11, %v1583_v61  ;;  %v1591_v48 = vadd.f32 %v1590_v25, %v1558_v50  ;;  %v3994_v61 = vpop.eup %3993  ;;  %v2356_v25 = vpop.permute.xlu0 %2355 }
 0x234   : > { %v1568_v12 = vrot.slane %v1567_v6, 2  ;;  %v1575_v59 = vrot.slane %v1574_v53, 4  ;;  %v2373_v5 = vmul.f32 %v2356_v25, %v2337_v60 }
 0x235   : > { %v1586_v27 = vrot.slane %v1585_v23, 2  ;;  %v1592_v34 = vadd.f32 %v1591_v48, %v1562_v9 }
 0x236   : > { %v1569_v21 = vadd.f32 %v1568_v12, %v1567_v6  ;;  %v1576_v17 = vadd.f32 %v1575_v59, %v1574_v53  ;;  %v2338_v12 = vmul.f32 %v3994_v61, %v4693_v36  ;;  %v2397_v59 = vpop.permute.xlu1 %2396 }
 0x237   : > { %v1587_v1 = vadd.f32 %v1586_v27, %v1585_v23  ;;  %v1593_v43 = vrot.slane %v1592_v34, 4  ;;  %v2342_v23 = vmul.f32 %v3994_v61, %v4699_v56  ;;  %v2392_v36 = vpop.permute.xlu0 %2391 }
 0x238   : > { %v1570_v29 = vrot.slane %v1569_v21, 1  ;;  %v1577_v3 = vrot.slane %v1576_v17, 2 }
 0x239   : > { %v1588_v22 = vrot.slane %v1587_v1, 1  ;;  %v1594_v16 = vadd.f32 %v1593_v43, %v1592_v34 }
 0x23a   : > { %v1571_v47 = vadd.f32 %v1570_v29, %v1569_v21  ;;  %v1578_v11 = vadd.f32 %v1577_v3, %v1576_v17  ;;  %v3996_v50 = vpop.eup %3995  ;;  %v2377_v21 = vmul.f32 %v2361_v4, %v2341_v40  ;;  %v2378_v40 = vmul.f32 %v2361_v4, %v2342_v23 }
 0x23b   : > { %v1589_v35 = vadd.f32 %v1588_v22, %v1587_v1  ;;  %v1595_v9 = vrot.slane %v1594_v16, 2  ;;  %v3998_v48 = vpop.eup %3997  ;;  %v2343_v18 = vmul.f32 %v3996_v50, %v4705_v20  ;;  %v2339_v29 = vmul.f32 %v3996_v50, %v4701_v58 }
 0x23c   : > { %v1599_v6 = vmul.f32 0.03125, %v1571_v47  ;;  %v1579_v53 = vrot.slane %v1578_v11, 1  ;;  %v2344_v22 = vmul.f32 %v3998_v48, %v4707_v38  ;;  %v2340_v47 = vmul.f32 %v3998_v48, %v4703_v42  ;;  %v2371_v38 = vpop.permute.xlu1 %2370 }
 0x23d   : > { %v1601_v27 = vmul.f32 0.03125, %v1589_v35  ;;  %v1596_v34 = vadd.f32 %v1595_v9, %v1594_v16  ;;  %v2349_v35 = vmul.f32 %v3992_v46, %v4734_v2  ;;  %v2345_v16 = vmul.f32 %v3992_v46, %v4718_v26 }
 0x23e   : > { %v1603_v17 = vadd.f32 1e-05, %v1599_v6  ;;  %v1580_v43 = vadd.f32 %v1579_v53, %v1578_v11  ;;  %v2374_v11 = vmul.f32 %v2356_v25, %v2338_v12  ;;  %v2350_v58 = vmul.f32 %v3994_v61, %v4739_v62 }
 0x23f   : > { %v1605_v1 = vadd.f32 1e-05, %v1601_v27  ;;  %v1597_v3 = vrot.slane %v1596_v34, 1  ;;  %v2379_v9 = vmul.f32 %v2361_v4, %v2343_v18  ;;  %v2375_v6 = vmul.f32 %v2356_v25, %v2339_v29  ;;  %v5775_v18 = vld [vmem:[#allocation17_spill] sm:$0xff] }
 0x240   : > { %3999 = vrsqrt.f32 %v1603_v17  ;;  %v1600_v56 = vmul.f32 0.03125, %v1580_v43  ;;  %v4924_v53 = vadd.f32 %v2397_v59, %v2377_v21  ;;  %v2380_v27 = vmul.f32 %v2361_v4, %v2344_v22 }
 0x241   : > { %4001 = vrsqrt.f32 %v1605_v1  ;;  %v1598_v20 = vadd.f32 %v1597_v3, %v1596_v34  ;;  %v2376_v17 = vmul.f32 %v2356_v25, %v2340_v47  ;;  %v4926_v43 = vadd.f32 %v2392_v36, %v2373_v5  ;;  %v2366_v5 = vpop.permute.xlu0 %2365  ;;  %v4953_v3 = vpop.permute.xlu1 %2406 }
 0x242   : > { %v1604_v60 = vadd.f32 1e-05, %v1600_v56  ;;  %v2351_v26 = vmul.f32 %v3996_v50, %v4745_v32  ;;  %v2352_v2 = vmul.f32 %v3998_v48, %v4747_v55  ;;  %v2346_v46 = vmul.f32 %v3994_v61, %v4721_v54 }
 0x243   : > { %v1602_v42 = vmul.f32 0.03125, %v1598_v20  ;;  %v4931_v62 = vadd.f32 %v2397_v59, %v2378_v40  ;;  %v2386_v12 = vmul.f32 %v2371_v38, %v2350_v58  ;;  %v2347_v34 = vmul.f32 %v3996_v50, %v4732_v51 }
 0x244   : > { %4003 = vrsqrt.f32 %v1604_v60  ;;  %v2348_v21 = vmul.f32 %v3998_v48, %v5775_v18  ;;  %v4935_v29 = vadd.f32 %v2397_v59, %v2379_v9  ;;  %v2429_v4 = vmax.f32 %v4924_v53, 0.0 }
 0x245   : > { %v1606_v23 = vadd.f32 1e-05, %v1602_v42  ;;  %v4938_v25 = vadd.f32 %v2392_v36, %v2374_v11  ;;  %v4940_v32 = vadd.f32 %v2397_v59, %v2380_v27  ;;  %v4942_v55 = vadd.f32 %v2392_v36, %v2375_v6  ;;  %v4973_v42 = vpop.permute.xlu0 %2401 }
 0x246   : > { %v4944_v54 = vadd.f32 %v2392_v36, %v2376_v17  ;;  %v2425_v61 = vmax.f32 %v4926_v43, 0.0  ;;  %v4947_v1 = vmul.f32 %v2371_v38, %v2349_v35  ;;  %v4949_v51 = vmul.f32 %v2371_v38, %v2351_v26 }
 0x247   : > { %4005 = vrsqrt.f32 %v1606_v23  ;;  %v2388_v50 = vmul.f32 %v2371_v38, %v2352_v2  ;;  %v4951_v48 = vmul.f32 %v2366_v5, %v2345_v16  ;;  %v2382_v47 = vmul.f32 %v2366_v5, %v2346_v46 }
 0x248   : > { %v4955_v56 = vmul.f32 %v2366_v5, %v2347_v34  ;;  %v4957_v59 = vmul.f32 %v2366_v5, %v2348_v21  ;;  %v4960_v36 = vadd.f32 %v4953_v3, %v2386_v12  ;;  %v5779_v43 = vmov 0.0  }
 0x249   : > { %v4971_v38 = vadd.f32 %v4953_v3, %v2388_v50 }
 0x24a   : > { %v4000_v22 = vpop.eup %3999 }
 0x24b   : > { %v4002_v20 = vpop.eup %4001  ;;  %v1623_v35 = vmul.f32 %v4000_v22, %v4834_v13  ;;  %v1611_v40 = vmul.f32 %v4000_v22, %v4826_v33  ;;  %v1615_v11 = vmul.f32 %v4000_v22, %v4829_v15  ;;  %v1619_v16 = vmul.f32 %v4000_v22, %v4832_v24 }
 0x24c   : > { %v1625_v58 = vmul.f32 %v4002_v20, %v4845_v52  ;;  %v1613_v60 = vmul.f32 %v4002_v20, %v4837_v10  ;;  %v1617_v9 = vmul.f32 %v4002_v20, %v4840_v14  ;;  %v1621_v6 = vmul.f32 %v4002_v20, %v4843_v31 }
 0x24d   : > { %v1659_v13 = vmul.f32 %v4870_v41, %v1623_v35  ;;  %v1647_v33 = vmul.f32 %v4821_v44, %v1611_v40  ;;  %v1651_v15 = vmul.f32 %v4819_v37, %v1615_v11  ;;  %v4979_v52 = vadd.f32 %v4973_v42, %v2382_v47 }
 0x24e   : > { %v4004_v24 = vpop.eup %4003  ;;  %v1661_v10 = vmul.f32 %v4870_v41, %v1625_v58  ;;  %v1649_v14 = vmul.f32 %v4821_v44, %v1613_v60  ;;  %v1655_v31 = vmul.f32 %v4897_v57, %v1619_v16  ;;  %v1653_v2 = vmul.f32 %v4819_v37, %v1617_v9 }
 0x24f   : > { %v1624_v27 = vmul.f32 %v4004_v24, %v4875_v19  ;;  %v1612_v17 = vmul.f32 %v4004_v24, %v4862_v39  ;;  %v1616_v26 = vmul.f32 %v4004_v24, %v4865_v45  ;;  %v1695_v46 = vadd.f32 %v4905_v7, %v1659_v13 }
 0x250   : > { %v1683_v23 = vadd.f32 %v4851_v49, %v1647_v33  ;;  %v1687_v12 = vadd.f32 %v4823_v8, %v1651_v15  ;;  %v1657_v34 = vmul.f32 %v4897_v57, %v1621_v6  ;;  %v1697_v21 = vadd.f32 %v4905_v7, %v1661_v10 }
 0x251   : > { %v4006_v18 = vpop.eup %4005  ;;  %v1648_v5 = vmul.f32 %v4821_v44, %v1612_v17  ;;  %v1652_v19 = vmul.f32 %v4819_v37, %v1616_v26  ;;  %v1685_v39 = vadd.f32 %v4851_v49, %v1649_v14  ;;  %v1660_v45 = vmul.f32 %v4870_v41, %v1624_v27  ;;  %v5776_v27 = vld [vmem:[#allocation18_spill] sm:$0xff] }
 0x252   : > { %v1626_v50 = vmul.f32 %v4006_v18, %v4895_v30  ;;  %v1614_v22 = vmul.f32 %v4006_v18, %v4886_v28  ;;  %v1618_v47 = vmul.f32 %v4006_v18, %v4889_v0  ;;  %v1699_v40 = vmax.f32 %v1683_v23, 0.0 }
 0x253   : > { %v1684_v20 = vadd.f32 %v4851_v49, %v1648_v5  ;;  %v1688_v35 = vadd.f32 %v4823_v8, %v1652_v19  ;;  %v1703_v11 = vmax.f32 %v1687_v12, 0.0  ;;  %v1689_v9 = vadd.f32 %v4823_v8, %v1653_v2 }
 0x254   : > { %v1662_v16 = vmul.f32 %v4870_v41, %v1626_v50  ;;  %v1650_v58 = vmul.f32 %v4821_v44, %v1614_v22  ;;  %v1654_v60 = vmul.f32 %v4819_v37, %v1618_v47  ;;  %v1701_v28 = vmax.f32 %v1685_v39, 0.0 }
 0x255   : > { %v1700_v6 = vmax.f32 %v1684_v20, 0.0  ;;  %v1704_v30 = vmax.f32 %v1688_v35, 0.0  ;;  %v3886_v13 = vpack.c.bf16 %v1703_v11, %v1699_v40  ;;  %v1705_v15 = vmax.f32 %v1689_v9, 0.0 }
 0x256   : > { %v1686_v0 = vadd.f32 %v4851_v49, %v1650_v58  ;;  %v1690_v33 = vadd.f32 %v4823_v8, %v1654_v60  ;;  %v1620_v10 = vmul.f32 %v4004_v24, %v4868_v63  ;;  %v1696_v41 = vadd.f32 %v4905_v7, %v1660_v45  ;;  %v5777_v49 = vld [vmem:[#allocation19_spill] sm:$0xff] }
 0x257   : > { %v3884_v14 = vpack.c.bf16 %v1704_v30, %v1700_v6  ;;  %v1622_v44 = vmul.f32 %v4006_v18, %v5776_v27  ;;  %v1698_v37 = vadd.f32 %v4905_v7, %v1662_v16  ;;  %v3894_v2 = vpack.c.bf16 %v1705_v15, %v1701_v28  ;;  %v2442_v28 = vld [vmem:[%s5682_s17 + $0x8] sm:$0xff] }
 0x258   : > { %v1702_v17 = vmax.f32 %v1686_v0, 0.0  ;;  %v1706_v26 = vmax.f32 %v1690_v33, 0.0  ;;  %v1656_v23 = vmul.f32 %v4897_v57, %v1620_v10  ;;  %v1711_v12 = vmax.f32 %v1695_v46, 0.0  ;;  %v2443_v0 = vld [vmem:[%s5682_s17 + $0x10] sm:$0xff]  ;;  %v2444_v33 = vld [vmem:[%s5682_s17 + $0x18] sm:$0xff] }
 0x259   : > { %v1713_v5 = vmax.f32 %v1697_v21, 0.0  ;;  %3885 = vmatprep.subr.bf16.mxu0 %v3884_v14  ;;  %v1658_v8 = vmul.f32 %v4897_v57, %v1622_v44  ;;  %v1691_v19 = vadd.f32 %v5777_v49, %v1655_v31  ;;  %v1712_v39 = vmax.f32 %v1696_v41, 0.0 }
 0x25a   : > { %v3892_v63 = vpack.c.bf16 %v1706_v26, %v1702_v17  ;;  %3887 = vmatpush1.bf16.msra.mxu0 %v3886_v13  ;;  %v1692_v24 = vadd.f32 %v5777_v49, %v1656_v23  ;;  %v1693_v18 = vadd.f32 %v5777_v49, %v1657_v34  ;;  %v1714_v45 = vmax.f32 %v1698_v37, 0.0  ;;  %v1716_v13 = vld [vmem:[%s5778_s4 + $0x8] sm:$0xff] }
 0x25b   : > { %v1694_v7 = vadd.f32 %v5777_v49, %v1658_v8  ;;  %v1707_v50 = vmax.f32 %v1691_v19, 0.0  ;;  %v2426_v22 = vmax.f32 %v4938_v25, 0.0  ;;  %v2420_v46 = vadd.f32 %v4973_v42, %v4957_v59 }
 0x25c   : > { %3893 = vmatprep.subr.bf16.mxu1 %v3892_v63  ;;  %v1708_v57 = vmax.f32 %v1692_v24, 0.0  ;;  %v1709_v21 = vmax.f32 %v1693_v18, 0.0  ;;  %v2430_v31 = vmax.f32 %v4931_v62, 0.0  ;;  %v2428_v35 = vmax.f32 %v4944_v54, 0.0  ;;  %v2452_v18 = vpop.permute.xlu0 %2451 }
 0x25d   : > { %3895 = vmatpush1.bf16.msra.mxu1 %v3894_v2  ;;  %v1710_v47 = vmax.f32 %v1694_v7, 0.0  ;;  %v3890_v20 = vpack.c.bf16 %v1711_v12, %v1707_v50  ;;  %v2432_v34 = vmax.f32 %v4940_v32, 0.0  ;;  %v2431_v40 = vmax.f32 %v4935_v29, 0.0 }
 0x25e   : > { %v2427_v11 = vmax.f32 %v4942_v55, 0.0  ;;  %v3888_v25 = vpack.c.bf16 %v1712_v39, %v1708_v57  ;;  %v3898_v16 = vpack.c.bf16 %v1713_v5, %v1709_v21  ;;  %v2421_v59 = vadd.f32 %v4953_v3, %v4947_v1  ;;  %v1715_v1 = vld [vmem:[%s5778_s4] sm:$0xff]  ;;  %s5816_s4 = sld [smem:[#allocation35_spill]] }
 0x25f   : > { %v2423_v58 = vadd.f32 %v4953_v3, %v4949_v51  ;;  %v2417_v62 = vadd.f32 %v4973_v42, %v4951_v48  ;;  %v3896_v60 = vpack.c.bf16 %v1714_v45, %v1710_v47  ;;  %v2419_v54 = vadd.f32 %v4973_v42, %v4955_v56  ;;  %v2457_v45 = vpop.permute.xlu1 %2456 }
 0x260   : > { %3889 = vmatprep.subr.bf16.mxu0 %v3888_v25  ;;  %v3900_v32 = vpack.c.bf16 %v2430_v31, %v2426_v22  ;;  %v2434_v29 = vmax.f32 %v4979_v52, 0.0  ;;  %v2438_v55 = vmax.f32 %v4960_v36, 0.0  ;;  %v3908_v9 = vpack.c.bf16 %v2432_v34, %v2428_v35  ;;  %v2462_v47 = vpop.permute.xlu0 %2461 }
 0x261   : > { %3897 = vmatprep.subr.bf16.mxu1 %v3896_v60  ;;  %3891 = vmatpush1.bf16.msra.mxu0 %v3890_v20  ;;  %v2436_v51 = vmax.f32 %v2420_v46, 0.0  ;;  %v2440_v48 = vmax.f32 %v4971_v38, 0.0  ;;  %v2437_v3 = vmax.f32 %v2421_v59, 0.0  ;;  %v2433_v56 = vmax.f32 %v2417_v62, 0.0 }
 0x262   : > { %3899 = vmatpush1.bf16.msra.mxu1 %v3898_v16  ;;  %3901 = vmatprep.subr.bf16.mxu0 %v3900_v32  ;;  %v3902_v36 = vpack.c.bf16 %v2429_v4, %v2425_v61  ;;  %v2439_v42 = vmax.f32 %v2423_v58, 0.0  ;;  %v2435_v52 = vmax.f32 %v2419_v54, 0.0  ;;  %v3910_v6 = vpack.c.bf16 %v2431_v40, %v2427_v11  ;;  %v2441_v61 = vld [vmem:[%s5682_s17] sm:$0xff] }
 0x263   : > { %3909 = vmatprep.subr.bf16.mxu1 %v3908_v9  ;;  %v3904_v30 = vpack.c.bf16 %v2438_v55, %v2434_v29  ;;  %v3912_v38 = vpack.c.bf16 %v2440_v48, %v2436_v51  ;;  %v3906_v53 = vpack.c.bf16 %v2437_v3, %v2433_v56  ;;  %v2467_v54 = vpop.permute.xlu1 %2466 }
 0x264   : > { %3842 = vmatmul.mubr.msk.f32.vlgmr.msra.gmra.mrb[8].mxu0 %vm1292_vm0, %v1715_v1  ;;  %v3914_v4 = vpack.c.bf16 %v2439_v42, %v2435_v52  ;;  %s5616_s7 = scalar_lea.hbm %s5816_s4, %s3867_s1  ;;  %s4084_s1 = smov [#allocation4]  }
 0x265   : > { %3844 = vmatmul.mubr.msk.f32.vlgmr.msra.gmra.mrb[8].mxu1 %vm1292_vm0, %v1715_v1  ;;  %3903 = vmatpush1.bf16.msra.mxu0 %v3902_v36 }
 0x266   : > { %3911 = vmatpush1.bf16.msra.mxu1 %v3910_v6  ;;  %3905 = vmatprep.subr.bf16.mxu0 %v3904_v30 }
 0x267   : > { %3913 = vmatprep.subr.bf16.mxu1 %v3912_v38  ;;  %1805 = vmatprep.mubr.f32.mxu0 %v5779_v43 }
 0x268   : > { %1882 = vmatprep.mubr.f32.mxu1 %v5779_v43  ;;  %3843 = vmatmul.mubr.msk.f32.gmra.mrb[10].mxu0 %vm1292_vm0, %v1716_v13 }
 0x269   : > { %3845 = vmatmul.mubr.msk.f32.gmra.mrb[10].mxu1 %vm1292_vm0, %v1716_v13  ;;  %3907 = vmatpush1.bf16.msra.mxu0 %v3906_v53 }
 0x26a   : > { %3915 = vmatpush1.bf16.msra.mxu1 %v3914_v4  ;;  %2545 = vmatprep.mubr.f32.mxu0 %v5779_v43 }
 0x26b   : > { %2634 = vmatprep.mubr.f32.mxu1 %v5779_v43 }
 0x26c   : > { %3846 = vmatmul.mubr.msk.f32.vlgmr.msra.gmra.mrb[12].mxu0 %vm1292_vm0, %v2441_v61 }
 0x26d   : > { %3850 = vmatmul.mubr.msk.f32.vlgmr.msra.gmra.mrb[12].mxu1 %vm1292_vm0, %v2441_v61  ;;  %2551 = vmatprep.mubr.f32.mxu0 %v5779_v43 }
 0x26e   : > { %2640 = vmatprep.mubr.f32.mxu1 %v5779_v43 }
 0x270   : > { %3847 = vmatmul.mubr.msk.f32.gmra.mrb[14].mxu0 %vm1292_vm0, %v2442_v28 }
 0x271   : > { %3851 = vmatmul.mubr.msk.f32.gmra.mrb[14].mxu1 %vm1292_vm0, %v2442_v28  ;;  %2557 = vmatprep.mubr.f32.mxu0 %v5779_v43 }
 0x272   : > { %2646 = vmatprep.mubr.f32.mxu1 %v5779_v43 }
 0x274   : > { %3848 = vmatmul.mubr.msk.f32.gmra.mrb[16].mxu0 %vm1292_vm0, %v2443_v0 }
 0x275   : > { %3852 = vmatmul.mubr.msk.f32.gmra.mrb[16].mxu1 %vm1292_vm0, %v2443_v0  ;;  %2563 = vmatprep.mubr.f32.mxu0 %v5779_v43 }
 0x276   : > { %2652 = vmatprep.mubr.f32.mxu1 %v5779_v43 }
 0x278   : > { %3849 = vmatmul.mubr.msk.f32.gmra.mrb[18].mxu0 %vm1292_vm0, %v2444_v33 }
 0x279   : > { %3853 = vmatmul.mubr.msk.f32.gmra.mrb[18].mxu1 %vm1292_vm0, %v2444_v33  ;;  %2975 = vmatprep.mubr.f32.mxu0 %v5779_v43 }
 0x27a   : > { %3052 = vmatprep.mubr.f32.mxu1 %v5779_v43 }
 0x337   : > { %v5083_v15 = vpop.f32.mrb[8].mxu0 }
 0x338   : > { %v5085_v10 = vpop.f32.mrb[8].mxu1  ;;  %v5087_v14 = vpop.f32.mrb[9].mxu0 }
 0x339   : > { %v5089_v41 = vpop.f32.mrb[9].mxu1 }
 0x33b   : > { %v5091_v27 = vpop.f32.mrb[10].mxu0 }
 0x33c   : > { %v5093_v44 = vpop.f32.mrb[10].mxu1  ;;  %v5095_v37 = vpop.f32.mrb[11].mxu0 }
 0x33d   : > { %v5097_v17 = vpop.f32.mrb[11].mxu1 }
 0x33f   : > { %v2547_v26 = vpop.f32.mrb[12].mxu0 }
 0x340   : > { %v2636_v2 = vpop.f32.mrb[12].mxu1  ;;  %v2549_v23 = vpop.f32.mrb[13].mxu0  ;;  %v2548_v21 = vadd.f32 %v2547_v26, %v2452_v18 }
 0x341   : > { %v2638_v12 = vpop.f32.mrb[13].mxu1  ;;  %v2637_v31 = vadd.f32 %v2636_v2, %v2452_v18  ;;  %v5099_v20 = vadd.f32 %v2549_v23, %v2452_v18 }
 0x342   : > { %v5103_v11 = vadd.f32 %v2638_v12, %v2452_v18 }
 0x343   : > { %v2553_v5 = vpop.f32.mrb[14].mxu0 }
 0x344   : > { %v2642_v8 = vpop.f32.mrb[14].mxu1  ;;  %v2555_v49 = vpop.f32.mrb[15].mxu0  ;;  %v2554_v35 = vadd.f32 %v2553_v5, %v2457_v45 }
 0x345   : > { %v2644_v19 = vpop.f32.mrb[15].mxu1  ;;  %v2643_v34 = vadd.f32 %v2642_v8, %v2457_v45  ;;  %v5101_v40 = vadd.f32 %v2555_v49, %v2457_v45 }
 0x346   : > { %v5105_v25 = vadd.f32 %v2644_v19, %v2457_v45  ;;  %v2667_v58 = vadd.f32 %v2554_v35, %v2548_v21 }
 0x347   : > { %v2559_v63 = vpop.f32.mrb[16].mxu0  ;;  %v2685_v62 = vadd.f32 %v2643_v34, %v2637_v31  ;;  %v2676_v60 = vadd.f32 %v5101_v40, %v5099_v20 }
 0x348   : > { %v2648_v24 = vpop.f32.mrb[16].mxu1  ;;  %v2561_v39 = vpop.f32.mrb[17].mxu0  ;;  %v2560_v16 = vadd.f32 %v2559_v63, %v2462_v47  ;;  %v2694_v32 = vadd.f32 %v5105_v25, %v5103_v11 }
 0x349   : > { %v2650_v7 = vpop.f32.mrb[17].mxu1  ;;  %v2649_v59 = vadd.f32 %v2648_v24, %v2462_v47  ;;  %v2562_v29 = vadd.f32 %v2561_v39, %v2462_v47 }
 0x34a   : > { %v5111_v55 = vadd.f32 %v2650_v7, %v2462_v47  ;;  %v2668_v9 = vadd.f32 %v2667_v58, %v2560_v16 }
 0x34b   : > { %v2565_v50 = vpop.f32.mrb[18].mxu0  ;;  %v2686_v1 = vadd.f32 %v2685_v62, %v2649_v59  ;;  %v2677_v48 = vadd.f32 %v2676_v60, %v2562_v29 }
 0x34c   : > { %v2654_v22 = vpop.f32.mrb[18].mxu1  ;;  %v2567_v46 = vpop.f32.mrb[19].mxu0  ;;  %v2566_v51 = vadd.f32 %v2565_v50, %v2467_v54  ;;  %v2695_v3 = vadd.f32 %v2694_v32, %v5111_v55 }
 0x34d   : > { %v2656_v57 = vpop.f32.mrb[19].mxu1  ;;  %v2655_v56 = vadd.f32 %v2654_v22, %v2467_v54  ;;  %v2568_v36 = vadd.f32 %v2567_v46, %v2467_v54 }
 0x34e   : > { %v2669_v42 = vadd.f32 %v2668_v9, %v2566_v51  ;;  %v5114_v52 = vadd.f32 %v2656_v57, %v2467_v54 }
 0x34f   : > { %v2687_v6 = vadd.f32 %v2686_v1, %v2655_v56  ;;  %v2678_v30 = vadd.f32 %v2677_v48, %v2568_v36 }
 0x350   : > { %v2670_v38 = vrot.slane %v2669_v42, 4  ;;  %v2696_v13 = vadd.f32 %v2695_v3, %v5114_v52 }
 0x351   : > { %v2688_v53 = vrot.slane %v2687_v6, 4  ;;  %v2679_v4 = vrot.slane %v2678_v30, 4 }
 0x352   : > { %v2671_v61 = vadd.f32 %v2670_v38, %v2669_v42  ;;  %v2697_v28 = vrot.slane %v2696_v13, 4 }
 0x353   : > { %v2689_v0 = vadd.f32 %v2688_v53, %v2687_v6  ;;  %v2680_v33 = vadd.f32 %v2679_v4, %v2678_v30 }
 0x354   : > { %v2672_v26 = vrot.slane %v2671_v61, 2  ;;  %v2698_v2 = vadd.f32 %v2697_v28, %v2696_v13 }
 0x355   : > { %v2690_v23 = vrot.slane %v2689_v0, 2  ;;  %v2681_v12 = vrot.slane %v2680_v33, 2 }
 0x356   : > { %v2673_v5 = vadd.f32 %v2672_v26, %v2671_v61  ;;  %v2699_v8 = vrot.slane %v2698_v2, 2 }
 0x357   : > { %v2691_v49 = vadd.f32 %v2690_v23, %v2689_v0  ;;  %v2682_v19 = vadd.f32 %v2681_v12, %v2680_v33 }
 0x358   : > { %v2674_v63 = vrot.slane %v2673_v5, 1  ;;  %v2700_v24 = vadd.f32 %v2699_v8, %v2698_v2 }
 0x359   : > { %v2692_v39 = vrot.slane %v2691_v49, 1  ;;  %v2683_v18 = vrot.slane %v2682_v19, 1 }
 0x35a   : > { %v2675_v7 = vadd.f32 %v2674_v63, %v2673_v5  ;;  %v2701_v45 = vrot.slane %v2700_v24, 1 }
 0x35b   : > { %v2693_v50 = vadd.f32 %v2692_v39, %v2691_v49  ;;  %v2684_v22 = vadd.f32 %v2683_v18, %v2682_v19 }
 0x35c   : > { %v2703_v46 = vmul.f32 0.03125, %v2675_v7  ;;  %v2702_v58 = vadd.f32 %v2701_v45, %v2700_v24 }
 0x35d   : > { %v2705_v57 = vmul.f32 0.03125, %v2693_v50  ;;  %v2704_v47 = vmul.f32 0.03125, %v2684_v22 }
 0x35e   : > { %v5117_v62 = vsub.f32 %v2548_v21, %v2703_v46  ;;  %v5119_v60 = vsub.f32 %v2554_v35, %v2703_v46  ;;  %v5121_v54 = vsub.f32 %v2560_v16, %v2703_v46  ;;  %v5123_v32 = vsub.f32 %v2566_v51, %v2703_v46 }
 0x35f   : > { %v5125_v9 = vsub.f32 %v2637_v31, %v2705_v57  ;;  %v5127_v1 = vsub.f32 %v2643_v34, %v2705_v57  ;;  %v5129_v48 = vsub.f32 %v2649_v59, %v2705_v57  ;;  %v5131_v3 = vsub.f32 %v2655_v56, %v2705_v57 }
 0x360   : > { %v2723_v42 = vmul.f32 %v5117_v62, %v5117_v62  ;;  %v2727_v21 = vmul.f32 %v5119_v60, %v5119_v60  ;;  %v2731_v35 = vmul.f32 %v5121_v54, %v5121_v54  ;;  %v2735_v16 = vmul.f32 %v5123_v32, %v5123_v32 }
 0x361   : > { %v2725_v31 = vmul.f32 %v5125_v9, %v5125_v9  ;;  %v2729_v34 = vmul.f32 %v5127_v1, %v5127_v1  ;;  %v5146_v51 = vsub.f32 %v5099_v20, %v2704_v47  ;;  %v5149_v56 = vsub.f32 %v5101_v40, %v2704_v47 }
 0x362   : > { %v2739_v59 = vadd.f32 %v2727_v21, %v2723_v42  ;;  %v5151_v6 = vsub.f32 %v2562_v29, %v2704_v47  ;;  %v2733_v30 = vmul.f32 %v5129_v48, %v5129_v48  ;;  %v5155_v13 = vsub.f32 %v2568_v36, %v2704_v47 }
 0x363   : > { %v2757_v38 = vadd.f32 %v2729_v34, %v2725_v31  ;;  %v2706_v53 = vmul.f32 0.03125, %v2702_v58  ;;  %v2737_v61 = vmul.f32 %v5131_v3, %v5131_v3  ;;  %v2724_v20 = vmul.f32 %v5146_v51, %v5146_v51 }
 0x364   : > { %v2740_v4 = vadd.f32 %v2739_v59, %v2731_v35  ;;  %v2728_v40 = vmul.f32 %v5149_v56, %v5149_v56  ;;  %v2732_v29 = vmul.f32 %v5151_v6, %v5151_v6 }
 0x365   : > { %v2758_v28 = vadd.f32 %v2757_v38, %v2733_v30  ;;  %v5166_v0 = vsub.f32 %v5103_v11, %v2706_v53  ;;  %v5169_v36 = vsub.f32 %v5105_v25, %v2706_v53  ;;  %v5172_v2 = vsub.f32 %v5111_v55, %v2706_v53 }
 0x366   : > { %v2741_v33 = vadd.f32 %v2740_v4, %v2735_v16  ;;  %v2748_v26 = vadd.f32 %v2728_v40, %v2724_v20  ;;  %v5175_v23 = vsub.f32 %v5114_v52, %v2706_v53  ;;  %v2736_v25 = vmul.f32 %v5155_v13, %v5155_v13 }
 0x367   : > { %v2759_v12 = vadd.f32 %v2758_v28, %v2737_v61  ;;  %v2726_v5 = vmul.f32 %v5166_v0, %v5166_v0  ;;  %v2730_v8 = vmul.f32 %v5169_v36, %v5169_v36  ;;  %v2734_v55 = vmul.f32 %v5172_v2, %v5172_v2  ;;  %v2811_v61 = vpop.permute.xlu1 %2810 }
 0x368   : > { %v2742_v11 = vrot.slane %v2741_v33, 4  ;;  %v2749_v49 = vadd.f32 %v2748_v26, %v2732_v29  ;;  %v2738_v18 = vmul.f32 %v5175_v23, %v5175_v23 }
 0x369   : > { %v2760_v19 = vrot.slane %v2759_v12, 4  ;;  %v2766_v63 = vadd.f32 %v2730_v8, %v2726_v5  ;;  %v2806_v5 = vpop.permute.xlu0 %2805 }
 0x36a   : > { %v2743_v24 = vadd.f32 %v2742_v11, %v2741_v33  ;;  %v2750_v52 = vadd.f32 %v2749_v49, %v2736_v25 }
 0x36b   : > { %v2761_v39 = vadd.f32 %v2760_v19, %v2759_v12  ;;  %v2767_v7 = vadd.f32 %v2766_v63, %v2734_v55  ;;  %v2847_v25 = vpop.permute.xlu1 %2846 }
 0x36c   : > { %v2744_v45 = vrot.slane %v2743_v24, 2  ;;  %v2751_v50 = vrot.slane %v2750_v52, 4 }
 0x36d   : > { %v2762_v22 = vrot.slane %v2761_v39, 2  ;;  %v2768_v46 = vadd.f32 %v2767_v7, %v2738_v18  ;;  %v2842_v55 = vpop.permute.xlu0 %2841 }
 0x36e   : > { %v2745_v57 = vadd.f32 %v2744_v45, %v2743_v24  ;;  %v2752_v47 = vadd.f32 %v2751_v50, %v2750_v52 }
 0x36f   : > { %v2763_v58 = vadd.f32 %v2762_v22, %v2761_v39  ;;  %v2769_v42 = vrot.slane %v2768_v46, 4  ;;  %v2821_v63 = vpop.permute.xlu1 %2820 }
 0x370   : > { %v2746_v21 = vrot.slane %v2745_v57, 1  ;;  %v2753_v35 = vrot.slane %v2752_v47, 2 }
 0x371   : > { %v2764_v16 = vrot.slane %v2763_v58, 1  ;;  %v2770_v31 = vadd.f32 %v2769_v42, %v2768_v46 }
 0x372   : > { %v2747_v34 = vadd.f32 %v2746_v21, %v2745_v57  ;;  %v2754_v59 = vadd.f32 %v2753_v35, %v2752_v47  ;;  %v2816_v47 = vpop.permute.xlu0 %2815 }
 0x373   : > { %v2765_v30 = vadd.f32 %v2764_v16, %v2763_v58  ;;  %v2771_v38 = vrot.slane %v2770_v31, 2 }
 0x374   : > { %v2775_v53 = vmul.f32 0.03125, %v2747_v34  ;;  %v2755_v4 = vrot.slane %v2754_v59, 1 }
 0x375   : > { %v2777_v20 = vmul.f32 0.03125, %v2765_v30  ;;  %v2772_v40 = vadd.f32 %v2771_v38, %v2770_v31  ;;  %v2857_v31 = vpop.permute.xlu1 %2856 }
 0x376   : > { %v2779_v28 = vadd.f32 1e-05, %v2775_v53  ;;  %v2756_v29 = vadd.f32 %v2755_v4, %v2754_v59 }
 0x377   : > { %v2781_v33 = vadd.f32 1e-05, %v2777_v20  ;;  %v2773_v26 = vrot.slane %v2772_v40, 1 }
 0x378   : > { %4007 = vrsqrt.f32 %v2779_v28  ;;  %v2776_v12 = vmul.f32 0.03125, %v2756_v29 }
 0x379   : > { %4009 = vrsqrt.f32 %v2781_v33  ;;  %v2774_v8 = vadd.f32 %v2773_v26, %v2772_v40 }
 0x37a   : > { %v2780_v11 = vadd.f32 1e-05, %v2776_v12 }
 0x37b   : > { %v2778_v49 = vmul.f32 0.03125, %v2774_v8 }
 0x37c   : > { %4011 = vrsqrt.f32 %v2780_v11 }
 0x37d   : > { %v2782_v19 = vadd.f32 1e-05, %v2778_v49 }
 0x37f   : > { %4013 = vrsqrt.f32 %v2782_v19 }
 0x382   : > { %v4008_v24 = vpop.eup %4007 }
 0x383   : > { %v4010_v52 = vpop.eup %4009  ;;  %v2799_v39 = vmul.f32 %v4008_v24, %v5123_v32  ;;  %v2787_v18 = vmul.f32 %v4008_v24, %v5117_v62  ;;  %v2791_v7 = vmul.f32 %v4008_v24, %v5119_v60  ;;  %v2795_v45 = vmul.f32 %v4008_v24, %v5121_v54 }
 0x384   : > { %v2801_v50 = vmul.f32 %v4010_v52, %v5131_v3  ;;  %v2789_v22 = vmul.f32 %v4010_v52, %v5125_v9  ;;  %v2793_v46 = vmul.f32 %v4010_v52, %v5127_v1  ;;  %v2797_v57 = vmul.f32 %v4010_v52, %v5129_v48 }
 0x385   : > { %v2835_v58 = vmul.f32 %v2821_v63, %v2799_v39  ;;  %v2823_v42 = vmul.f32 %v2806_v5, %v2787_v18  ;;  %v2827_v21 = vmul.f32 %v2811_v61, %v2791_v7  ;;  %v2831_v62 = vmul.f32 %v2816_v47, %v2795_v45 }
 0x386   : > { %v4012_v35 = vpop.eup %4011  ;;  %v2837_v32 = vmul.f32 %v2821_v63, %v2801_v50  ;;  %v2825_v16 = vmul.f32 %v2806_v5, %v2789_v22  ;;  %v2829_v9 = vmul.f32 %v2811_v61, %v2793_v46  ;;  %v2833_v48 = vmul.f32 %v2816_v47, %v2797_v57  ;;  %v2852_v46 = vpop.permute.xlu0 %2851 }
 0x387   : > { %v2800_v60 = vmul.f32 %v4012_v35, %v5155_v13  ;;  %v2788_v54 = vmul.f32 %v4012_v35, %v5146_v51  ;;  %v2792_v3 = vmul.f32 %v4012_v35, %v5149_v56  ;;  %v2871_v34 = vadd.f32 %v2857_v31, %v2835_v58 }
 0x388   : > { %v2859_v1 = vadd.f32 %v2842_v55, %v2823_v42  ;;  %v2863_v59 = vadd.f32 %v2847_v25, %v2827_v21  ;;  %v2873_v38 = vadd.f32 %v2857_v31, %v2837_v32  ;;  %v2861_v20 = vadd.f32 %v2842_v55, %v2825_v16 }
 0x389   : > { %v4014_v30 = vpop.eup %4013  ;;  %v2824_v53 = vmul.f32 %v2806_v5, %v2788_v54  ;;  %v2828_v4 = vmul.f32 %v2811_v61, %v2792_v3  ;;  %v2836_v40 = vmul.f32 %v2821_v63, %v2800_v60  ;;  %v2865_v49 = vadd.f32 %v2847_v25, %v2829_v9 }
 0x38a   : > { %v2802_v28 = vmul.f32 %v4014_v30, %v5175_v23  ;;  %v2790_v29 = vmul.f32 %v4014_v30, %v5166_v0  ;;  %v2794_v13 = vmul.f32 %v4014_v30, %v5169_v36  ;;  %v2875_v56 = vmax.f32 %v2859_v1, 0.0 }
 0x38b   : > { %v2860_v51 = vadd.f32 %v2842_v55, %v2824_v53  ;;  %v2864_v33 = vadd.f32 %v2847_v25, %v2828_v4  ;;  %v2879_v26 = vmax.f32 %v2863_v59, 0.0  ;;  %v2877_v39 = vmax.f32 %v2861_v20, 0.0 }
 0x38c   : > { %v2838_v12 = vmul.f32 %v2821_v63, %v2802_v28  ;;  %v2826_v8 = vmul.f32 %v2806_v5, %v2790_v29  ;;  %v2830_v11 = vmul.f32 %v2811_v61, %v2794_v13  ;;  %v2881_v45 = vmax.f32 %v2865_v49, 0.0  ;;  %v1889_v29 = vld [vmem:[%s918_s9] sm:$0xf]  ;;  %s5280_s9 = scalar_lea.vmem [#allocation2], %s3933_s0 }
 0x38d   : > { %v2876_v19 = vmax.f32 %v2860_v51, 0.0  ;;  %v2880_v24 = vmax.f32 %v2864_v33, 0.0  ;;  %v3918_v52 = vpack.c.bf16 %v2879_v26, %v2875_v56  ;;  %v2796_v23 = vmul.f32 %v4012_v35, %v5151_v6  ;;  %v1890_v51 = vld [vmem:[%s924_s3] sm:$0xff]  ;;  %v1891_v56 = vld [vmem:[%s924_s3 + $0x8] sm:$0xff]  ;;  %s909_s3 = scalar_lea.vmem [#allocation4], %s3829_s8 }
 0x38e   : > { %v2862_v18 = vadd.f32 %v2842_v55, %v2826_v8  ;;  %v2866_v7 = vadd.f32 %v2847_v25, %v2830_v11  ;;  %v2872_v50 = vadd.f32 %v2857_v31, %v2836_v40  ;;  %v2798_v36 = vmul.f32 %v4014_v30, %v5172_v2  ;;  %v5781_v40 = vld [vmem:[#allocation12_spill] sm:$0xff]  ;;  %v1722_v11 = vpop.permute.xlu0 %1721  ;;  %s3704_s0 = sshll.u32 %s909_s3, 4  ;;  %s5620_s0 = int_to_ptr.vmem [resolvable:$true] %s3704_s0 }
 0x38f   : > { %v3916_v0 = vpack.c.bf16 %v2880_v24, %v2876_v19  ;;  %v2874_v22 = vadd.f32 %v2857_v31, %v2838_v12  ;;  %v3926_v5 = vpack.c.bf16 %v2881_v45, %v2877_v39  ;;  %v2832_v61 = vmul.f32 %v2816_v47, %v2796_v23  ;;  %v5783_v19 = vld [vmem:[#allocation14_spill] sm:$0xff]  ;;  %s4015_s5 = scalar_lea.vmem %s5620_s0, 256 }
 0x390   : > { %v2878_v57 = vmax.f32 %v2862_v18, 0.0  ;;  %v2882_v63 = vmax.f32 %v2866_v7, 0.0  ;;  %v2887_v58 = vmax.f32 %v2871_v34, 0.0  ;;  %v2889_v42 = vmax.f32 %v2873_v38, 0.0  ;;  %p4016_p0 = scmp.ne.s32.totalorder %s5620_s0, %s4015_s5 }
 0x391   : > { %3917 = vmatprep.subr.bf16.mxu0 %v3916_v0  ;;  %v2834_v21 = vmul.f32 %v2816_v47, %v2798_v36  ;;  %v2867_v32 = vadd.f32 %v2852_v46, %v2831_v62  ;;  %v2868_v25 = vadd.f32 %v2852_v46, %v2832_v61  ;;  %v2888_v16 = vmax.f32 %v2872_v50, 0.0  ;;  %v2891_v47 = vld [vmem:[%s5686_s21] sm:$0xff]  ;;  %v2892_v62 = vld [vmem:[%s5686_s21 + $0x8] sm:$0xff]  ;;  %v5235_v0 = vpop.permute.xlu1 %1726  ;;  %v5786_v61 = vld [vmem:[#allocation16_spill] sm:$0xff] }
 0x392   : > { %v3924_v55 = vpack.c.bf16 %v2882_v63, %v2878_v57  ;;  %3919 = vmatpush1.bf16.msra.mxu0 %v3918_v52  ;;  %v2869_v6 = vadd.f32 %v2852_v46, %v2833_v48  ;;  %v2890_v60 = vmax.f32 %v2874_v22, 0.0  ;;  %v4081_v48 = vmov 286326784   ;;  %v5785_v63 = vld [vmem:[#allocation15_spill] sm:$0xff]  ;;  %p4017_p1 = pnand %p4016_p0, %p4261_p6 }
 0x393   : > { %v2870_v35 = vadd.f32 %v2852_v46, %v2834_v21  ;;  %v2883_v54 = vmax.f32 %v2867_v32, 0.0  ;;  %v2884_v2 = vmax.f32 %v2868_v25, 0.0  ;;  %v1894_v30 = vunpack.c.l.s4 %v4081_v48 }
 0x394   : > { %3925 = vmatprep.subr.bf16.mxu1 %v3924_v55  ;;  %v2885_v31 = vmax.f32 %v2869_v6, 0.0  ;;  %v4082_v38 = vmov 858989090   ;;  %v1955_v8 = vsub.s32 5, %v5781_v40  ;;  %v1802_v49 = vadd.f32 %v5083_v15, %v1722_v11  ;;  %p4018_p2 = pneg %p4017_p1 }
 0x395   : > { %3927 = vmatpush1.bf16.msra.mxu1 %v3926_v5  ;;  %v2886_v3 = vmax.f32 %v2870_v35, 0.0  ;;  %v3922_v9 = vpack.c.bf16 %v2887_v58, %v2883_v54  ;;  %v3920_v1 = vpack.c.bf16 %v2888_v16, %v2884_v2  ;;  %v1901_v53 = vunpack.c.l.s4 %v4082_v38 }
 0x396   : > { %v3930_v34 = vpack.c.bf16 %v2889_v42, %v2885_v31  ;;  %v1895_v4 = vunpack.c.0.s8 %v1894_v30  ;;  %v1879_v52 = vadd.f32 %v5085_v10, %v1722_v11  ;;  %v1804_v18 = vadd.f32 %v5087_v14, %v1722_v11  ;;  %v5784_v14 = vld [vmem:[#allocation13_spill] sm:$0xff] }
 0x397   : > { %v3928_v59 = vpack.c.bf16 %v2890_v60, %v2886_v3  ;;  %3921 = vmatprep.subr.bf16.mxu0 %v3920_v1  ;;  %v1902_v20 = vunpack.c.0.s8 %v1901_v53  ;;  %v1919_v45 = vsub.s32 4, %v5781_v40  ;;  %v2015_v23 = vsub.s32 6, %v5781_v40 }
 0x398   : > { %3923 = vmatpush1.bf16.msra.mxu0 %v3922_v9  ;;  %v1898_v28 = vsub.s32 %v1895_v4, %v5781_v40  ;;  %v2075_v36 = vsub.s32 7, %v5781_v40  ;;  %v1881_v15 = vadd.f32 %v5089_v41, %v1722_v11  ;;  %v1808_v46 = vadd.f32 %v5091_v27, %v5235_v0 }
 0x399   : > { %3929 = vmatprep.subr.bf16.mxu1 %v3928_v59  ;;  %v1885_v2 = vadd.f32 %v5093_v44, %v5235_v0 }
 0x39a   : > { %3931 = vmatpush1.bf16.msra.mxu1 %v3930_v34  ;;  %v1899_v13 = vrot.slane %v1889_v29, %v1898_v28 }
 0x39b   : > { %3854 = vmatmul.mubr.msk.f32.vlgmr.msra.gmra.mrb[20].mxu0 %vm1292_vm0, %v2891_v47 }
 0x39c   : > { %2981 = vmatprep.mubr.f32.mxu0 %v5779_v43  ;;  %v1909_v26 = vmul.f32 %v1899_v13, %v1890_v51 }
 0x39d   : > { %3856 = vmatmul.mubr.msk.f32.vlgmr.msra.gmra.mrb[20].mxu1 %vm1292_vm0, %v2891_v47 }
 0x39e   : > { %3058 = vmatprep.mubr.f32.mxu1 %v5779_v43  ;;  %v1905_v43 = vsub.s32 %v1902_v20, %v5781_v40  ;;  %v1952_v24 = vrot.slane %v1909_v26, %v5783_v19  ;;  %v5231_v7 = vrot.slane %v1909_v26, %v1955_v8  ;;  %v1916_v57 = vrot.slane %v1909_v26, %v5784_v14 }
 0x39f   : > { %3855 = vmatmul.mubr.msk.f32.gmra.mrb[22].mxu0 %vm1292_vm0, %v2892_v62  ;;  %v2012_v5 = vrot.slane %v1909_v26, %v5785_v63  ;;  %v2072_v58 = vrot.slane %v1909_v26, %v5786_v61  ;;  %v5250_v55 = vrot.slane %v1909_v26, %v1919_v45  ;;  %v5252_v16 = vrot.slane %v1909_v26, %v2015_v23 }
 0x3a0   : > { %v1906_v33 = vrot.slane %v1889_v29, %v1905_v43  ;;  %v1969_v50 = vmul.f32 %v1952_v24, %v1802_v49  ;;  %v1970_v42 = vmul.f32 %v5231_v7, %v1804_v18  ;;  %v5254_v27 = vrot.slane %v1909_v26, %v2075_v36 }
 0x3a1   : > { %3857 = vmatmul.mubr.msk.f32.gmra.mrb[22].mxu1 %vm1292_vm0, %v2892_v62  ;;  %v1989_v54 = vmul.f32 %v1952_v24, %v1808_v46  ;;  %v1933_v31 = vmul.f32 %v1916_v57, %v1802_v49  ;;  %v2029_v3 = vmul.f32 %v2012_v5, %v1802_v49  ;;  %v2089_v34 = vmul.f32 %v2072_v58, %v1802_v49 }
 0x3a2   : > { %v1910_v12 = vmul.f32 %v1906_v33, %v1891_v56  ;;  %v1977_v25 = vrot.slane %v1969_v50, 1  ;;  %v1978_v9 = vrot.slane %v1970_v42, 1  ;;  %v1934_v30 = vmul.f32 %v5250_v55, %v1804_v18 }
 0x3a3   : > { %v2030_v38 = vmul.f32 %v5252_v16, %v1804_v18  ;;  %v1997_v20 = vrot.slane %v1989_v54, 1  ;;  %v2037_v29 = vrot.slane %v2029_v3, 2  ;;  %v2097_v33 = vrot.slane %v2089_v34, 3  ;;  %v3066_v3 = vld [vmem:[%s5280_s9 + $0x4] sm:$0xf] }
 0x3a4   : > { %v1960_v39 = vrot.slane %v1910_v12, %v5783_v19  ;;  %v5239_v22 = vrot.slane %v1910_v12, %v1955_v8  ;;  %v1924_v21 = vrot.slane %v1910_v12, %v5784_v14  ;;  %v2020_v32 = vrot.slane %v1910_v12, %v5785_v63 }
 0x3a5   : > { %v2080_v41 = vrot.slane %v1910_v12, %v5786_v61  ;;  %v5257_v60 = vrot.slane %v1910_v12, %v1919_v45  ;;  %v5261_v1 = vrot.slane %v1910_v12, %v2015_v23  ;;  %v5266_v62 = vrot.slane %v1910_v12, %v2075_v36 }
 0x3a6   : > { %v1971_v10 = vmul.f32 %v1960_v39, %v1879_v52  ;;  %v1972_v6 = vmul.f32 %v5239_v22, %v1881_v15  ;;  %v1935_v59 = vmul.f32 %v1924_v21, %v1879_v52  ;;  %v2031_v47 = vmul.f32 %v2020_v32, %v1879_v52 }
 0x3a7   : > { %v1985_v48 = vadd.f32 %v1977_v25, %v1933_v31  ;;  %v2091_v4 = vmul.f32 %v2080_v41, %v1879_v52  ;;  %v1991_v28 = vmul.f32 %v1960_v39, %v1885_v2  ;;  %v1986_v43 = vadd.f32 %v1978_v9, %v1934_v30 }
 0x3a8   : > { %v1979_v35 = vrot.slane %v1971_v10, 1  ;;  %v1980_v53 = vrot.slane %v1972_v6, 1  ;;  %v1936_v13 = vmul.f32 %v5257_v60, %v1881_v15  ;;  %v2032_v51 = vmul.f32 %v5261_v1, %v1881_v15 }
 0x3a9   : > { %v2039_v56 = vrot.slane %v2031_v47, 2  ;;  %v1941_v26 = vmul.f32 %v1916_v57, %v1808_v46  ;;  %v2049_v12 = vmul.f32 %v2012_v5, %v1808_v46  ;;  %v2045_v8 = vadd.f32 %v2037_v29, %v1985_v48 }
 0x3aa   : > { %v1987_v44 = vadd.f32 %v1979_v35, %v1935_v59  ;;  %v2038_v11 = vrot.slane %v2030_v38, 2  ;;  %v2090_v49 = vmul.f32 %v5254_v27, %v1804_v18  ;;  %v1988_v24 = vadd.f32 %v1980_v53, %v1936_v13  ;;  %v3065_v38 = vld [vmem:[%s5280_s9] sm:$0xf] }
 0x3ab   : > { %v2099_v45 = vrot.slane %v2091_v4, 3  ;;  %v2005_v39 = vadd.f32 %v1997_v20, %v1941_v26  ;;  %v1999_v23 = vrot.slane %v1991_v28, 1  ;;  %v2040_v36 = vrot.slane %v2032_v51, 2  ;;  %v3069_v4 = vld [vmem:[%s5298_s28 + $0x8] sm:$0xff]  ;;  %v3070_v20 = vld [vmem:[%s5298_s28 + $0x10] sm:$0xff] }
 0x3ac   : > { %v2047_v52 = vadd.f32 %v2039_v56, %v1987_v44  ;;  %v2046_v50 = vadd.f32 %v2038_v11, %v1986_v43  ;;  %v2092_v10 = vmul.f32 %v5266_v62, %v1881_v15  ;;  %v1810_v42 = vadd.f32 %v5095_v37, %v5235_v0  ;;  %v3067_v51 = vld [vmem:[%s5280_s9 + $0x8] sm:$0xf]  ;;  %s4019_s9 = sshll.u32 %s4084_s1, 4  ;;  %s4020_s9 = int_to_ptr.vmem [resolvable:$false] %s4019_s9 }
 0x3ad   : > { %v2057_v25 = vrot.slane %v2049_v12, 2  ;;  %v2109_v57 = vmul.f32 %v2072_v58, %v1808_v46  ;;  %v1943_v5 = vmul.f32 %v1924_v21, %v1885_v2  ;;  %v2051_v6 = vmul.f32 %v2020_v32, %v1885_v2  ;;  %p4022_p3 = scmp.lt.s32.totalorder %s5620_s0, %s4020_s9 }
 0x3ae   : > { %v5278_v35 = vadd.f32 %v2097_v33, %v2045_v8  ;;  %v2098_v18 = vrot.slane %v2090_v49, 3  ;;  %v2048_v54 = vadd.f32 %v2040_v36, %v1988_v24  ;;  %v2111_v31 = vmul.f32 %v2080_v41, %v1885_v2 }
 0x3af   : > { %v5283_v9 = vadd.f32 %v2099_v45, %v2047_v52  ;;  %v2065_v15 = vadd.f32 %v2057_v25, %v2005_v39  ;;  %v2007_v34 = vadd.f32 %v1999_v23, %v1943_v5  ;;  %v1887_v37 = vadd.f32 %v5097_v17, %v5235_v0  ;;  %v3068_v17 = vld [vmem:[%s5298_s28] sm:$0xff] }
 0x3b0   : > { %v5287_v46 = vadd.f32 %v2098_v18, %v2046_v50  ;;  %v2100_v58 = vrot.slane %v2092_v10, 3  ;;  %v1990_v21 = vmul.f32 %v5231_v7, %v1810_v42  ;;  %v2050_v32 = vmul.f32 %v5252_v16, %v1810_v42  ;;  %v3072_v25 = vld [vmem:[%s5298_s28 + $0x20] sm:$0xf]  ;;  %v3073_v18 = vld [vmem:[%s5298_s28 + $0x28] sm:$0xf] }
 0x3b1   : > { %v2117_v41 = vrot.slane %v2109_v57, 3  ;;  %v2059_v2 = vrot.slane %v2051_v6, 2  ;;  %v5292_v59 = vmul.f32 %v5254_v27, %v1810_v42  ;;  %v3105_v47 = vrot.slane %v3066_v3, %v5784_v14  ;;  %v3074_v57 = vld [vmem:[%s5298_s28 + $0x30] sm:$0xf] }
 0x3b2   : > { %v5295_v48 = vadd.f32 %v2100_v58, %v2048_v54  ;;  %v2119_v30 = vrot.slane %v2111_v31, 3  ;;  %v3109_v7 = vrot.slane %v3066_v3, %v5783_v19  ;;  %v3113_v0 = vrot.slane %v3066_v3, %v5785_v63 }
 0x3b3   : > { %v5303_v16 = vadd.f32 %v2117_v41, %v2065_v15  ;;  %v2067_v27 = vadd.f32 %v2059_v2, %v2007_v34  ;;  %v1942_v53 = vmul.f32 %v5250_v55, %v1810_v42  ;;  %v1944_v44 = vmul.f32 %v5257_v60, %v1887_v37  ;;  %v3071_v55 = vld [vmem:[%s5298_s28 + $0x18] sm:$0xff] }
 0x3b4   : > { %v1998_v28 = vrot.slane %v1990_v21, 1  ;;  %v2058_v29 = vrot.slane %v2050_v32, 2  ;;  %v1992_v43 = vmul.f32 %v5239_v22, %v1887_v37  ;;  %v5311_v13 = vmul.f32 %v5261_v1, %v1887_v37 }
 0x3b5   : > { %v2118_v33 = vrot.slane %v5292_v59, 3  ;;  %v3080_v56 = vrot.slane %v3065_v38, %v5784_v14  ;;  %v3117_v26 = vrot.slane %v3066_v3, %v5786_v61  ;;  %v3122_v12 = vmul.f32 %v3105_v47, %v3068_v17 }
 0x3b6   : > { %v3084_v60 = vrot.slane %v3065_v38, %v5783_v19  ;;  %v3088_v8 = vrot.slane %v3065_v38, %v5785_v63  ;;  %v3123_v11 = vmul.f32 %v3109_v7, %v3069_v4  ;;  %v3124_v22 = vmul.f32 %v3113_v0, %v3070_v20 }
 0x3b7   : > { %v5321_v1 = vmul.f32 %v5266_v62, %v1887_v37  ;;  %v3146_v49 = vrot.slane %v3067_v51, %v5784_v14  ;;  %v3150_v24 = vrot.slane %v3067_v51, %v5783_v19  ;;  %v3154_v52 = vrot.slane %v3067_v51, %v5785_v63  ;;  %v3075_v63 = vld [vmem:[%s5298_s28 + $0x38] sm:$0xf]  ;;  %s4021_s28 = scalar_lea.vmem %s4020_s9, 512 }
 0x3b8   : > { %v5326_v45 = vadd.f32 %v2119_v30, %v2067_v27  ;;  %v2006_v39 = vadd.f32 %v1998_v28, %v1942_v53  ;;  %v2000_v23 = vrot.slane %v1992_v43, 1  ;;  %v3092_v50 = vrot.slane %v3065_v38, %v5786_v61  ;;  %p4023_p4 = scmp.lt.s32.totalorder %s4021_s28, %s4015_s5 }
 0x3b9   : > { %v2060_v36 = vrot.slane %v5311_v13, 2  ;;  %v3097_v10 = vmul.f32 %v3080_v56, %v3068_v17  ;;  %v3125_v42 = vmul.f32 %v3117_v26, %v3071_v55  ;;  %v3130_v62 = vrot.slane %v3122_v12, 1 }
 0x3ba   : > { %v3098_v14 = vmul.f32 %v3084_v60, %v3069_v4  ;;  %v3099_v5 = vmul.f32 %v3088_v8, %v3070_v20  ;;  %v3131_v19 = vrot.slane %v3123_v11, 1  ;;  %v3132_v6 = vrot.slane %v3124_v22, 1  ;;  %p4024_p5 = por %p4023_p4, %p4022_p3 }
 0x3bb   : > { %v3158_v54 = vrot.slane %v3067_v51, %v5786_v61  ;;  %v3163_v31 = vmul.f32 %v3146_v49, %v3068_v17  ;;  %v3164_v3 = vmul.f32 %v3150_v24, %v3069_v4  ;;  %v3165_v15 = vmul.f32 %v3154_v52, %v3070_v20 }
 0x3bc   : > { %v2066_v34 = vadd.f32 %v2058_v29, %v2006_v39  ;;  %v2008_v37 = vadd.f32 %v2000_v23, %v1944_v44  ;;  %v2120_v58 = vrot.slane %v5321_v1, 3  ;;  %v3100_v21 = vmul.f32 %v3092_v50, %v3071_v55  ;;  %p4025_p7 = pnand %p4024_p5, %p4018_p2 }
 0x3bd   : > { %v3133_v32 = vrot.slane %v3125_v42, 1  ;;  %v3138_v41 = vadd.f32 %v3130_v62, %v3097_v10  ;;  %v3439_v2 = vmul.f32 %v3105_v47, %v3072_v25  ;;  %v3441_v30 = vmul.f32 %v3113_v0, %v3074_v57 }
 0x3be   : > { %v3139_v38 = vadd.f32 %v3131_v19, %v3098_v14  ;;  %v3140_v27 = vadd.f32 %v3132_v6, %v3099_v5  ;;  %v3440_v53 = vmul.f32 %v3109_v7, %v3073_v18  ;;  %v3442_v28 = vmul.f32 %v3117_v26, %v3075_v63 }
 0x3bf   : > { %v3166_v43 = vmul.f32 %v3158_v54, %v3071_v55  ;;  %v3171_v13 = vrot.slane %v3163_v31, 2  ;;  %v3172_v12 = vrot.slane %v3164_v3, 2  ;;  %v3173_v61 = vrot.slane %v3165_v15, 2 }
 0x3c0   : > { %v3323_v17 = vmul.f32 %v3146_v49, %v3072_v25  ;;  %v3324_v4 = vmul.f32 %v3150_v24, %v3073_v18  ;;  %v3325_v20 = vmul.f32 %v3154_v52, %v3074_v57  ;;  %v3326_v29 = vmul.f32 %v3158_v54, %v3075_v63 }
 0x3c1   : > { %v3435_v44 = vmul.f32 %v3080_v56, %v3072_v25  ;;  %v3437_v51 = vmul.f32 %v3088_v8, %v3074_v57  ;;  %v3447_v11 = vrot.slane %v3439_v2, 1  ;;  %v3449_v22 = vrot.slane %v3441_v30, 1 }
 0x3c2   : > { %v3436_v1 = vmul.f32 %v3084_v60, %v3073_v18  ;;  %v3438_v39 = vmul.f32 %v3092_v50, %v3075_v63  ;;  %v3448_v47 = vrot.slane %v3440_v53, 1  ;;  %v3450_v0 = vrot.slane %v3442_v28, 1 }
 0x3c3   : > { %v2068_v23 = vadd.f32 %v2060_v36, %v2008_v37  ;;  %v3141_v10 = vadd.f32 %v3133_v32, %v3100_v21  ;;  %v3174_v7 = vrot.slane %v3166_v43, 2  ;;  %v5336_v26 = vadd.f32 %v3171_v13, %v3138_v41 }
 0x3c4   : > { %v5340_v55 = vadd.f32 %v2118_v33, %v2066_v34  ;;  %v5342_v49 = vadd.f32 %v3172_v12, %v3139_v38  ;;  %v5344_v24 = vadd.f32 %v3173_v61, %v3140_v27  ;;  %v3331_v56 = vrot.slane %v3323_v17, 2  ;;  %v2898_v61 = vpop.permute.xlu0 %2897 }
 0x3c5   : > { %v3332_v8 = vrot.slane %v3324_v4, 2  ;;  %v3333_v52 = vrot.slane %v3325_v20, 2  ;;  %v3334_v60 = vrot.slane %v3326_v29, 2  ;;  %v3455_v50 = vadd.f32 %v3447_v11, %v3435_v44 }
 0x3c6   : > { %v3456_v42 = vadd.f32 %v3448_v47, %v3436_v1  ;;  %v3457_v62 = vadd.f32 %v3449_v22, %v3437_v51  ;;  %v3458_v36 = vadd.f32 %v3450_v0, %v3438_v39  ;;  %v5346_v25 = vadd.f32 %v2120_v58, %v2068_v23 }
 0x3c7   : > { %v5348_v57 = vadd.f32 %v3174_v7, %v3141_v10  ;;  %v3195_v59 = vrot.slane %v5336_v26, 4  ;;  %v3227_v33 = vrot.slane %v5336_v26, 2  ;;  %v3196_v14 = vrot.slane %v5342_v49, 4 }
 0x3c8   : > { %v3197_v5 = vrot.slane %v5344_v24, 4  ;;  %v3228_v19 = vrot.slane %v5342_v49, 2  ;;  %v4083_v6 = vmov 1966171168   ;;  %v5355_v63 = vadd.f32 %v3331_v56, %v3138_v41 }
 0x3c9   : > { %v3570_v18 = vunpack.c.l.s4 %v4083_v6  ;;  %v5357_v54 = vadd.f32 %v3332_v8, %v3139_v38  ;;  %v5359_v31 = vadd.f32 %v3333_v52, %v3140_v27  ;;  %v5361_v3 = vadd.f32 %v3334_v60, %v3141_v10 }
 0x3ca   : > { %v5363_v15 = vadd.f32 %v3455_v50, %v3331_v56  ;;  %v5365_v34 = vadd.f32 %v3456_v42, %v3332_v8  ;;  %v5367_v37 = vadd.f32 %v3457_v62, %v3333_v52  ;;  %v5369_v58 = vadd.f32 %v3458_v36, %v3334_v60  ;;  %v2903_v42 = vpop.permute.xlu1 %2902 }
 0x3cb   : > { %v3198_v21 = vrot.slane %v5348_v57, 4  ;;  %v3229_v32 = vrot.slane %v5344_v24, 2  ;;  %v3230_v41 = vrot.slane %v5348_v57, 2  ;;  %v5728_v2 = vrot.slane %v5336_v26, 6 }
 0x3cc   : > { %v5726_v30 = vrot.slane %v5342_v49, 6  ;;  %v5727_v38 = vrot.slane %v5344_v24, 6  ;;  %v3258_v27 = vrot.slane %v5348_v57, 6  ;;  %v3571_v53 = vunpack.c.0.s8 %v3570_v18 }
 0x3ce   : > { %v5397_v56 = vsub.s32 %v3571_v53, %v5781_v40 }
 0x46e   : > { %v2977_v17 = vpop.f32.mrb[20].mxu0 }
 0x46f   : > { %v5386_v51 = vadd.f32 %v2977_v17, %v2898_v61  ;;  %v2979_v22 = vpop.f32.mrb[21].mxu0 }
 0x470   : > { %v3054_v11 = vpop.f32.mrb[20].mxu1  ;;  %v5393_v23 = vadd.f32 %v2979_v22, %v2898_v61 }
 0x471   : > { %v5391_v0 = vadd.f32 %v3054_v11, %v2898_v61  ;;  %v3056_v10 = vpop.f32.mrb[21].mxu1  ;;  %v3183_v52 = vmul.f32 %v5336_v26, %v5386_v51  ;;  %v3203_v60 = vmul.f32 %v3195_v59, %v5386_v51  ;;  %v3235_v50 = vmul.f32 %v3227_v33, %v5386_v51 }
 0x472   : > { %v5399_v8 = vadd.f32 %v3056_v10, %v2898_v61  ;;  %v2983_v62 = vpop.f32.mrb[22].mxu0  ;;  %v3184_v36 = vmul.f32 %v5342_v49, %v5393_v23  ;;  %v3204_v6 = vmul.f32 %v3196_v14, %v5393_v23 }
 0x473   : > { %v3185_v40 = vmul.f32 %v5344_v24, %v5391_v0  ;;  %v3205_v18 = vmul.f32 %v3197_v5, %v5391_v0  ;;  %v5419_v53 = vadd.f32 %v2983_v62, %v2903_v42  ;;  %v2985_v17 = vpop.f32.mrb[23].mxu0  ;;  %v3187_v22 = vadd.f32 %v3183_v52, %v5278_v35 }
 0x474   : > { %v3060_v61 = vpop.f32.mrb[22].mxu1  ;;  %v3186_v11 = vmul.f32 %v5348_v57, %v5399_v8  ;;  %v3206_v10 = vmul.f32 %v3198_v21, %v5399_v8  ;;  %v5429_v47 = vadd.f32 %v2985_v17, %v2903_v42  ;;  %v3188_v1 = vadd.f32 %v3184_v36, %v5287_v46 }
 0x475   : > { %v5427_v7 = vadd.f32 %v3060_v61, %v2903_v42  ;;  %v3062_v39 = vpop.f32.mrb[23].mxu1  ;;  %v3189_v62 = vadd.f32 %v3185_v40, %v5283_v9  ;;  %v3207_v20 = vadd.f32 %v3203_v60, %v5278_v35  ;;  %v3208_v52 = vadd.f32 %v3204_v6, %v5287_v46 }
 0x476   : > { %v5433_v44 = vadd.f32 %v3062_v39, %v2903_v42  ;;  %v3190_v29 = vadd.f32 %v3186_v11, %v5295_v48  ;;  %v3209_v4 = vadd.f32 %v3205_v18, %v5283_v9  ;;  %v3210_v61 = vadd.f32 %v3206_v10, %v5295_v48 }
 0x477   : > { %v3211_v17 = vmul.f32 %v5336_v26, %v5419_v53  ;;  %v3212_v36 = vmul.f32 %v5342_v49, %v5429_v47  ;;  %v3213_v39 = vmul.f32 %v5344_v24, %v5427_v7  ;;  %v3219_v35 = vmul.f32 %v3195_v59, %v5419_v53 }
 0x478   : > { %v3214_v42 = vmul.f32 %v5348_v57, %v5433_v44  ;;  %v3220_v9 = vmul.f32 %v3196_v14, %v5429_v47  ;;  %v3221_v60 = vmul.f32 %v3197_v5, %v5427_v7  ;;  %v3222_v40 = vmul.f32 %v3198_v21, %v5433_v44 }
 0x479   : > { %v3215_v46 = vadd.f32 %v3211_v17, %v5303_v16  ;;  %v3216_v48 = vadd.f32 %v3212_v36, %v5340_v55  ;;  %v3217_v6 = vadd.f32 %v3213_v39, %v5326_v45  ;;  %v3223_v18 = vadd.f32 %v3219_v35, %v5303_v16 }
 0x47a   : > { %v3218_v59 = vadd.f32 %v3214_v42, %v5346_v25  ;;  %v3224_v14 = vadd.f32 %v3220_v9, %v5340_v55  ;;  %v3225_v11 = vadd.f32 %v3221_v60, %v5326_v45  ;;  %v3226_v10 = vadd.f32 %v3222_v40, %v5346_v25 }
 0x47b   : > { %v3236_v5 = vmul.f32 %v3228_v19, %v5393_v23  ;;  %v3237_v21 = vmul.f32 %v3229_v32, %v5391_v0  ;;  %v3238_v17 = vmul.f32 %v3230_v41, %v5399_v8  ;;  %v3243_v36 = vrot.slane %v3235_v50, 1 }
 0x47c   : > { %v3263_v16 = vmul.f32 %v5728_v2, %v5386_v51  ;;  %v3264_v45 = vmul.f32 %v5726_v30, %v5393_v23  ;;  %v3265_v39 = vmul.f32 %v5727_v38, %v5391_v0  ;;  %v3266_v42 = vmul.f32 %v3258_v27, %v5399_v8 }
 0x47d   : > { %v3244_v55 = vrot.slane %v3236_v5, 1  ;;  %v3245_v25 = vrot.slane %v3237_v21, 1  ;;  %v3246_v35 = vrot.slane %v3238_v17, 1  ;;  %v3251_v50 = vadd.f32 %v3243_v36, %v3187_v22 }
 0x47e   : > { %v3271_v9 = vrot.slane %v3263_v16, 1  ;;  %v3272_v60 = vrot.slane %v3264_v45, 1  ;;  %v3273_v13 = vrot.slane %v3265_v39, 1  ;;  %v3274_v43 = vrot.slane %v3266_v42, 1 }
 0x47f   : > { %v3252_v40 = vadd.f32 %v3244_v55, %v3188_v1  ;;  %v3253_v12 = vadd.f32 %v3245_v25, %v3189_v62  ;;  %v3254_v28 = vadd.f32 %v3246_v35, %v3190_v29  ;;  %v3283_v21 = vmul.f32 %v3227_v33, %v5419_v53 }
 0x480   : > { %v3279_v30 = vadd.f32 %v3271_v9, %v3207_v20  ;;  %v3280_v5 = vadd.f32 %v3272_v60, %v3208_v52  ;;  %v3281_v38 = vadd.f32 %v3273_v13, %v3209_v4  ;;  %v3282_v2 = vadd.f32 %v3274_v43, %v3210_v61 }
 0x481   : > { %v3284_v17 = vmul.f32 %v3228_v19, %v5429_v47  ;;  %v3285_v1 = vmul.f32 %v3229_v32, %v5427_v7  ;;  %v3286_v29 = vmul.f32 %v3230_v41, %v5433_v44  ;;  %v3291_v20 = vrot.slane %v3283_v21, 1 }
 0x482   : > { %v5787_v22 = vrot.slane %v5336_v26, 6  ;;  %v5788_v33 = vrot.slane %v5342_v49, 6  ;;  %v5789_v19 = vrot.slane %v5344_v24, 6  ;;  %v3306_v32 = vmul.f32 %v3258_v27, %v5433_v44 }
 0x483   : > { %v3292_v13 = vrot.slane %v3284_v17, 1  ;;  %v3293_v4 = vrot.slane %v3285_v1, 1  ;;  %v3294_v41 = vrot.slane %v3286_v29, 1  ;;  %v3299_v61 = vadd.f32 %v3291_v20, %v3215_v46 }
 0x484   : > { %v3303_v62 = vmul.f32 %v5787_v22, %v5419_v53  ;;  %v3304_v43 = vmul.f32 %v5788_v33, %v5429_v47  ;;  %v3305_v52 = vmul.f32 %v5789_v19, %v5427_v7  ;;  %v3314_v25 = vrot.slane %v3306_v32, 1 }
 0x485   : > { %v3300_v26 = vadd.f32 %v3292_v13, %v3216_v48  ;;  %v3301_v45 = vadd.f32 %v3293_v4, %v3217_v6  ;;  %v3302_v49 = vadd.f32 %v3294_v41, %v3218_v59  ;;  %v5790_v35 = vrot.slane %v5355_v63, 4 }
 0x486   : > { %v3311_v36 = vrot.slane %v3303_v62, 1  ;;  %v3312_v16 = vrot.slane %v3304_v43, 1  ;;  %v3313_v55 = vrot.slane %v3305_v52, 1  ;;  %v3322_v60 = vadd.f32 %v3314_v25, %v3226_v10 }
 0x487   : > { %v3355_v24 = vmul.f32 %v5790_v35, %v5386_v51  ;;  %v5791_v57 = vrot.slane %v5357_v54, 4  ;;  %v5792_v46 = vrot.slane %v5359_v31, 4  ;;  %v5793_v6 = vrot.slane %v5361_v3, 4 }
 0x488   : > { %v3319_v39 = vadd.f32 %v3311_v36, %v3223_v18  ;;  %v3320_v42 = vadd.f32 %v3312_v16, %v3224_v14  ;;  %v3321_v9 = vadd.f32 %v3313_v55, %v3225_v11  ;;  %v3375_v14 = vmul.f32 %v5355_v63, %v5386_v51 }
 0x489   : > { %v3356_v27 = vmul.f32 %v5791_v57, %v5393_v23  ;;  %v3357_v48 = vmul.f32 %v5792_v46, %v5391_v0  ;;  %v3358_v59 = vmul.f32 %v5793_v6, %v5399_v8  ;;  %v3363_v18 = vrot.slane %v3355_v24, 2 }
 0x48a   : > { %v3376_v11 = vmul.f32 %v5357_v54, %v5393_v23  ;;  %v3377_v17 = vmul.f32 %v5359_v31, %v5391_v0  ;;  %v3378_v1 = vmul.f32 %v5361_v3, %v5399_v8  ;;  %v3383_v22 = vrot.slane %v3375_v14, 2 }
 0x48b   : > { %v3364_v10 = vrot.slane %v3356_v27, 2  ;;  %v3365_v21 = vrot.slane %v3357_v48, 2  ;;  %v3366_v29 = vrot.slane %v3358_v59, 2  ;;  %v3371_v20 = vadd.f32 %v3363_v18, %v3251_v50 }
 0x48c   : > { %v3384_v62 = vrot.slane %v3376_v11, 2  ;;  %v3385_v13 = vrot.slane %v3377_v17, 2  ;;  %v3386_v4 = vrot.slane %v3378_v1, 2  ;;  %v3391_v52 = vadd.f32 %v3383_v22, %v3279_v30 }
 0x48d   : > { %v3372_v33 = vadd.f32 %v3364_v10, %v3252_v40  ;;  %v3373_v43 = vadd.f32 %v3365_v21, %v3253_v12  ;;  %v3374_v19 = vadd.f32 %v3366_v29, %v3254_v28  ;;  %v5794_v41 = vmov %v5790_v35 }
 0x48e   : > { %v3392_v32 = vadd.f32 %v3384_v62, %v3280_v5  ;;  %v3395_v36 = vmul.f32 %v5794_v41, %v5419_v53  ;;  %v3393_v16 = vadd.f32 %v3385_v13, %v3281_v38  ;;  %v3394_v55 = vadd.f32 %v3386_v4, %v3282_v2 }
 0x48f   : > { %v5795_v25 = vmov %v5791_v57  ;;  %v5796_v50 = vmov %v5792_v46  ;;  %v5797_v12 = vmov %v5793_v6  ;;  %v3415_v5 = vmul.f32 %v5355_v63, %v5419_v53 }
 0x490   : > { %v3396_v35 = vmul.f32 %v5795_v25, %v5429_v47  ;;  %v3397_v40 = vmul.f32 %v5796_v50, %v5427_v7  ;;  %v3398_v28 = vmul.f32 %v5797_v12, %v5433_v44  ;;  %v3403_v30 = vrot.slane %v3395_v36, 2 }
 0x491   : > { %v3416_v38 = vmul.f32 %v5357_v54, %v5429_v47  ;;  %v3417_v57 = vmul.f32 %v5359_v31, %v5427_v7  ;;  %v3418_v27 = vmul.f32 %v5361_v3, %v5433_v44  ;;  %v3423_v6 = vrot.slane %v3415_v5, 2 }
 0x492   : > { %v3404_v2 = vrot.slane %v3396_v35, 2  ;;  %v3405_v24 = vrot.slane %v3397_v40, 2  ;;  %v3406_v46 = vrot.slane %v3398_v28, 2  ;;  %v3411_v48 = vadd.f32 %v3403_v30, %v3299_v61 }
 0x493   : > { %v3424_v59 = vrot.slane %v3416_v38, 2  ;;  %v3425_v11 = vrot.slane %v3417_v57, 2  ;;  %v3426_v10 = vrot.slane %v3418_v27, 2  ;;  %v3431_v21 = vadd.f32 %v3423_v6, %v3319_v39 }
 0x494   : > { %v3412_v18 = vadd.f32 %v3404_v2, %v3300_v26  ;;  %v3413_v14 = vadd.f32 %v3405_v24, %v3301_v45  ;;  %v3414_v63 = vadd.f32 %v3406_v46, %v3302_v49  ;;  %v5798_v54 = vrot.slane %v5363_v15, 6 }
 0x495   : > { %v3432_v17 = vadd.f32 %v3424_v59, %v3320_v42  ;;  %v3433_v29 = vadd.f32 %v3425_v11, %v3321_v9  ;;  %v3434_v31 = vadd.f32 %v3426_v10, %v3322_v60  ;;  %v5799_v3 = vrot.slane %v5365_v34, 6 }
 0x496   : > { %v3475_v1 = vmul.f32 %v5798_v54, %v5386_v51  ;;  %v5800_v61 = vrot.slane %v5367_v37, 6  ;;  %v5801_v45 = vrot.slane %v5369_v58, 6  ;;  %v5802_v42 = vrot.slane %v5363_v15, 2 }
 0x497   : > { %v3476_v22 = vmul.f32 %v5799_v3, %v5393_v23  ;;  %v5803_v9 = vrot.slane %v5365_v34, 2  ;;  %v5804_v41 = vrot.slane %v5367_v37, 2  ;;  %v5805_v25 = vrot.slane %v5369_v58, 2 }
 0x498   : > { %v3477_v26 = vmul.f32 %v5800_v61, %v5391_v0  ;;  %v3478_v49 = vmul.f32 %v5801_v45, %v5399_v8  ;;  %v3483_v39 = vrot.slane %v3475_v1, 3  ;;  %v3503_v62 = vmul.f32 %v5802_v42, %v5386_v51 }
 0x499   : > { %v3504_v60 = vmul.f32 %v5803_v9, %v5393_v23  ;;  %v3484_v13 = vrot.slane %v3476_v22, 3  ;;  %v3505_v36 = vmul.f32 %v5804_v41, %v5391_v0  ;;  %v3506_v35 = vmul.f32 %v5805_v25, %v5399_v8 }
 0x49a   : > { %v3485_v4 = vrot.slane %v3477_v26, 3  ;;  %v3486_v50 = vrot.slane %v3478_v49, 3  ;;  %v3491_v40 = vadd.f32 %v3483_v39, %v3371_v20  ;;  %v3511_v12 = vrot.slane %v3503_v62, 3 }
 0x49b   : > { %v3512_v28 = vrot.slane %v3504_v60, 3  ;;  %v3492_v30 = vadd.f32 %v3484_v13, %v3372_v33  ;;  %v3513_v5 = vrot.slane %v3505_v36, 3  ;;  %v3514_v38 = vrot.slane %v3506_v35, 3 }
 0x49c   : > { %v3493_v51 = vadd.f32 %v3485_v4, %v3373_v43  ;;  %v3494_v2 = vadd.f32 %v3486_v50, %v3374_v19  ;;  %v3519_v23 = vadd.f32 %v3511_v12, %v3391_v52  ;;  %v5806_v57 = vmov %v5798_v54 }
 0x49d   : > { %v3520_v24 = vadd.f32 %v3512_v28, %v3392_v32  ;;  %v3523_v27 = vmul.f32 %v5806_v57, %v5419_v53  ;;  %v3521_v0 = vadd.f32 %v3513_v5, %v3393_v16  ;;  %v3522_v46 = vadd.f32 %v3514_v38, %v3394_v55 }
 0x49e   : > { %v5807_v8 = vmov %v5799_v3  ;;  %v5808_v20 = vmov %v5800_v61  ;;  %v5809_v43 = vmov %v5801_v45  ;;  %v5810_v32 = vmov %v5802_v42 }
 0x49f   : > { %v3524_v6 = vmul.f32 %v5807_v8, %v5429_v47  ;;  %v3525_v33 = vmul.f32 %v5808_v20, %v5427_v7  ;;  %v3526_v19 = vmul.f32 %v5809_v43, %v5433_v44  ;;  %v3531_v52 = vrot.slane %v3523_v27, 3 }
 0x4a0   : > { %v3543_v59 = vmul.f32 %v5810_v32, %v5419_v53  ;;  %v5811_v16 = vmov %v5803_v9  ;;  %v5812_v54 = vmov %v5804_v41  ;;  %v5813_v3 = vmov %v5805_v25 }
 0x4a1   : > { %v3544_v55 = vmul.f32 %v5811_v16, %v5429_v47  ;;  %v3532_v11 = vrot.slane %v3524_v6, 3  ;;  %v3533_v10 = vrot.slane %v3525_v33, 3  ;;  %v3545_v1 = vmul.f32 %v5812_v54, %v5427_v7 }
 0x4a2   : > { %v3546_v22 = vmul.f32 %v5813_v3, %v5433_v44  ;;  %v3534_v61 = vrot.slane %v3526_v19, 3  ;;  %v3539_v26 = vadd.f32 %v3531_v52, %v3411_v48  ;;  %v3551_v45 = vrot.slane %v3543_v59, 3 }
 0x4a3   : > { %v3552_v15 = vrot.slane %v3544_v55, 3  ;;  %v3540_v53 = vadd.f32 %v3532_v11, %v3412_v18  ;;  %v3541_v49 = vadd.f32 %v3533_v10, %v3413_v14  ;;  %v3553_v39 = vrot.slane %v3545_v1, 3 }
 0x4a4   : > { %v3554_v34 = vrot.slane %v3546_v22, 3  ;;  %v3542_v47 = vadd.f32 %v3534_v61, %v3414_v63  ;;  %v3559_v42 = vadd.f32 %v3551_v45, %v3431_v21  ;;  %v3567_v9 = vcombine.low %v3491_v40, %v3492_v30 }
 0x4a5   : > { %v3560_v62 = vadd.f32 %v3552_v15, %v3432_v17  ;;  %v3561_v37 = vadd.f32 %v3553_v39, %v3433_v29  ;;  %v3568_v60 = vcombine.low %v3493_v51, %v3494_v2  ;;  %v3601_v13 = vcombine.high %v3519_v23, %v3520_v24 }
 0x4a6   : > { %v3562_v7 = vadd.f32 %v3554_v34, %v3434_v31  ;;  %v3575_v58 = vrot.slane %v3567_v9, %v5397_v56  ;;  %v3602_v44 = vcombine.high %v3521_v0, %v3522_v46  ;;  %v3632_v48 = vcombine.low %v3539_v26, %v3540_v53 }
 0x4a7   : > { %v3633_v4 = vcombine.low %v3541_v49, %v3542_v47  ;;  %v3582_v18 = vrot.slane %v3568_v60, %v5397_v56  ;;  %v3609_v14 = vrot.slane %v3601_v13, %v5397_v56  ;;  %v3663_v41 = vcombine.high %v3559_v42, %v3560_v62 }
 0x4a8   : > { %v3664_v63 = vcombine.high %v3561_v37, %v3562_v7  ;;  %v3616_v21 = vrot.slane %v3602_v44, %v5397_v56  ;;  %v3640_v17 = vrot.slane %v3632_v48, %v5397_v56  ;;  %v5814_v35 = vlaneseq }
 0x4a9   : > { %v3647_v29 = vrot.slane %v3633_v4, %v5397_v56  ;;  %v3583_v31 = vcombine.low %v3575_v58, %v3582_v18  ;;  %v3671_v36 = vrot.slane %v3663_v41, %v5397_v56 }
 0x4aa   : > { %v3678_v25 = vrot.slane %v3664_v63, %v5397_v56  ;;  %vm3594_vm1 = vcmp.lt.s32.totalorder %v5814_v35, 512  ;;  %v3617_v50 = vcombine.low %v3609_v14, %v3616_v21 }
 0x4ab   : > { %v3648_v40 = vcombine.low %v3640_v17, %v3647_v29  ;;  %v3590_v12 = vrot.slane %v3583_v31, %v5397_v56 }
 0x4ac   : > { %v3679_v28 = vcombine.low %v3671_v36, %v3678_v25  ;;  %v3624_v30 = vrot.slane %v3617_v50, %v5397_v56 }
 0x4ad   : > { %v3655_v51 = vrot.slane %v3648_v40, %v5397_v56  ;;  %3596 = vst.msk [vmem:[%s909_s3] sm:$0xf] %vm3594_vm1, %v3590_v12 }
 0x4ae   : > { %v3686_v5 = vrot.slane %v3679_v28, %v5397_v56  ;;  %3858 = vst.msk [vmem:[%s909_s3 + $0x4] sm:$0xf] %vm3594_vm1, %v3624_v30 }
 0x4af   : > { %3859 = vst.msk [vmem:[%s909_s3 + $0x8] sm:$0xf] %vm3594_vm1, %v3655_v51 }
 0x4b0   : > { %3860 = vst.msk [vmem:[%s909_s3 + $0xc] sm:$0xf] %vm3594_vm1, %v3686_v5 }
 0x4b1   : > { %4028 = shalt.err (!%p4025_p7)
}
 0x4b2   : > { %s4029_s3 = scalar_lea.hbm %s5616_s7, 256  ;;  %s4033_s1 = scalar_lea.hbm %s5816_s4, 512 }
 0x4b3   : > { %p4030_p10 = scmp.ne.s32.totalorder %s5616_s7, %s4029_s3  ;;  %p4034_p13 = scmp.lt.u32.totalorder %s5616_s7, %s5816_s4 }
 0x4b4   : > { %p4035_p0 = scmp.lt.u32.totalorder %s4033_s1, %s4029_s3  ;;  %p4037_p2 = scmp.lt.u32.totalorder %s4029_s3, %s5616_s7 }
 0x4b5   : > { %p4031_p11 = pnand %p4030_p10, %p4261_p6 }
 0x4b6   : > { %p4036_p1 = por %p4035_p0, %p4034_p13 }
 0x4b7   : > { %p4032_p12 = pneg %p4031_p11 }
 0x4b8   : > { %p4038_p3 = por %p4037_p2, %p4036_p1 }
 0x4ba   : > { %p4039_p4 = pnand %p4038_p3, %p4032_p12 }
 0x4bc   : > { %4042 = shalt.err (!%p4039_p4)
}
 0x4bd   : > { %s4085_s5 = smov 64   ;;  %s4086_s28 = smov 128  }
 0x4be   : > { %s4087_s12 = smov 4   ;;  %s5817_s10 = scalar_lea.sflag [#allocation5], %s5264_s25 }
 0x4bf   : > { %3934 = dma.vmem_to_hbm [thread:$0]  (%p4261_p6), %s5620_s0, 256, %s5616_s7, %s5817_s10, %s4085_s5, %s4086_s28, %s4087_s12  }
 0x4c0 PF: > { %s5818_s8 = sld [smem:[#allocation7_spill]]  ;;  %p3937_p5 = pnand %p3822_p9, %p4265_p8 }
 0x4c6   : > { %s3719_s1 = sand.u32 1, %s5818_s8  }
 0x4c7   : > { %s3720_s3 = scalar_lea.sflag [#allocation5], %s3719_s1 }
 0x4c8   : > { %4060 = dma.done.wait (!%p3937_p5), %s3720_s3, 256  }
 0x4c9   : > { %4062 = vsyncadd (!%p3937_p5), %s3720_s3, 4294967040  ;;  %s5820_s30 = sld [smem:[#allocation8_spill]]  ;;  %s5821_s9 = sld [smem:[#allocation9_spill]] }
 0x4ca   : > { %s5822_s29 = smov %s4069_s2  ;;  %s5823_s2 = smov %s4073_s6 }
 0x4cf   : > { %p35_p7 = scmp.ge.s32.totalorder %s5820_s30, 4   ;;  %s5824_s6 = smov %s5821_s9 }
 0x4d1   :  { %37 = sbr.rel (!%p35_p7) target bundleno = 20 (0x14), region = 244 }
 0x4d8   :  { %3725 = vsyncpa [#allocation5], 1 }
 0x4d9   :  { %3727 = vsyncpa [#allocation5 + $0x1], 1 }

</bundles_post_ra>
